<compile_context>
chip_gen: v6e
topology: v6e:2x2x1
jax: 0.10.0
libtpu: 0.0.40
codegen_flags: <defaults>
</compile_context>

<pallas_src>
import numpy as np
import jax
import jax.numpy as jnp
from jax import lax
from jax.experimental import pallas as pl
from jax.experimental.pallas import tpu as pltpu


# ----------------------------------------------------------------------------
# Gaussian-kernel (KNRM) constants — identical to the PyTorch helpers.
# ----------------------------------------------------------------------------
def kernal_mus(n_kernels):
    l_mu = [1.0]
    if n_kernels == 1:
        return l_mu
    bin_size = 2.0 / (n_kernels - 1)
    l_mu.append(1.0 - bin_size / 2.0)
    for i in range(1, n_kernels - 1):
        l_mu.append(l_mu[i] - bin_size)
    return l_mu


def kernel_sigmas(n_kernels, sigma_val):
    return [0.001] + [sigma_val] * (n_kernels - 1)


# ----------------------------------------------------------------------------
# Fused Pallas kernel: per batch b (grid=(B,)) compute
#   * selection scores  sel[b, e]  (get_intersect_matrix + proj_select)
#   * denoise tensor    den[b, e, i, :] = sum_l att_{e<-i}[l] * H[b, e, l, :]
#     (get_intersect_matrix_att + proj_att + masked softmax + weighted sum)
#
# Inputs are pre-flattened to (B, E*L, ...) in the wrapper; the block-diagonal
# pooling masks Wa/Ws/Wc and the per-row mu/inv2s2 columns are precomputed there.
# ----------------------------------------------------------------------------
def make_text_channel(B, E, L, H, K, w_att, b_att, w_sel, b_sel):
    EL = E * L

    def kernel(hn_ref, h_ref, wa_ref, ws_ref, wc_ref, mq_ref, mu_ref, cc_ref,
               den_ref, sel_ref):
        hn = hn_ref[0]                                                # (EL, H) normalized
        # All pairwise token similarities in a single MXU push.
        sim = lax.dot_general(hn, hn, (((1,), (1,)), ((), ())),
                              preferred_element_type=jnp.float32)     # (EL, EL)

        # Stack the K Gaussian kernels along sublanes (EL is a multiple of 8, so the
        # concat is tile-aligned): one exp burst + one pooling matmul per mask.
        sim_k = jnp.concatenate([sim] * K, axis=0)                    # (K*EL, EL)
        diff = sim_k - mu_ref[...]                                    # mu_ref: (K*EL, 1)
        gauss = jnp.exp(-(diff * diff) * cc_ref[...])                 # (K*EL, EL)

        # Pooling over the doc axis via MXU: columns of Wa/Ws select evidence block i.
        pool_att = lax.dot_general(gauss, wa_ref[0], (((1,), (0,)), ((), ())),
                                   preferred_element_type=jnp.float32)  # (K*EL, E)
        pool_sel = lax.dot_general(gauss, ws_ref[0], (((1,), (0,)), ((), ())),
                                   preferred_element_type=jnp.float32)  # (K*EL, E)
        log_att = jnp.log(jnp.maximum(pool_att, 1e-10))
        log_sel = jnp.log(jnp.maximum(pool_sel, 1e-10))

        # proj_att / proj_select: weighted reduce over K (tile-aligned row slices).
        score_att = jnp.full((EL, E), b_att, jnp.float32)
        score_sel = jnp.zeros((EL, E), jnp.float32)
        for k in range(K):
            score_att = score_att + w_att[k] * log_att[k * EL:(k + 1) * EL, :]
            score_sel = score_sel + w_sel[k] * log_sel[k * EL:(k + 1) * EL, :]

        # ---- evidence-selection scores (get_intersect_matrix) ----------------
        wc = wc_ref[0]                                                # (EL, E) claim mask (block diag)
        num = jnp.sum(wc * score_sel, axis=0, keepdims=True)          # (1, E)
        den = jnp.sum(wc, axis=0, keepdims=True)                      # (1, E)
        sel_ref[0] = num / (den + 1e-10) + b_sel                      # (1, E)

        # ---- attention + denoise (get_intersect_matrix_att) ------------------
        mq = mq_ref[0]                                                # (EL, 1) mask_text
        sc = jnp.where(mq > 0.5, score_att, -10000.0)                 # masked_fill
        hh = h_ref[0]                                                 # (EL, H) un-normalized
        for e in range(E):
            blk = sc[e * L:(e + 1) * L, :]                            # (L, E) scores, query evidence e
            m = jnp.max(blk, axis=0, keepdims=True)
            p = jnp.exp(blk - m)
            att = p / jnp.sum(p, axis=0, keepdims=True)               # softmax over L, per doc i
            d_e = lax.dot_general(att, hh[e * L:(e + 1) * L, :],
                                  (((0,), (0,)), ((), ())),
                                  preferred_element_type=jnp.float32)  # (E, H): row i
            den_ref[0, e] = d_e

    return pl.pallas_call(
        kernel,
        out_shape=(jax.ShapeDtypeStruct((B, E, E, H), jnp.float32),   # [b, e, i, H]
                   jax.ShapeDtypeStruct((B, 1, E), jnp.float32)),
        grid_spec=pltpu.PrefetchScalarGridSpec(
            num_scalar_prefetch=0,
            grid=(B,),
            in_specs=[
                pl.BlockSpec((1, EL, H), lambda b: (b, 0, 0)),        # hn (normalized)
                pl.BlockSpec((1, EL, H), lambda b: (b, 0, 0)),        # h
                pl.BlockSpec((1, EL, E), lambda b: (b, 0, 0)),        # Wa (att pooling mask)
                pl.BlockSpec((1, EL, E), lambda b: (b, 0, 0)),        # Ws (sel pooling mask)
                pl.BlockSpec((1, EL, E), lambda b: (b, 0, 0)),        # Wc (claim mask, block diag)
                pl.BlockSpec((1, EL, 1), lambda b: (b, 0, 0)),        # mq (mask_text column)
                pl.BlockSpec((K * EL, 1), lambda b: (0, 0)),          # mu per row
                pl.BlockSpec((K * EL, 1), lambda b: (0, 0)),          # 1/(2 sigma^2) per row
            ],
            out_specs=(
                pl.BlockSpec((1, E, E, H), lambda b: (b, 0, 0, 0)),
                pl.BlockSpec((1, 1, E), lambda b: (b, 0, 0)),
            ),
        ),
        compiler_params=pltpu.CompilerParams(
            dimension_semantics=("parallel",)),
    )


# ----------------------------------------------------------------------------
# Plain-JAX glue (small linears / MLPs / softmax over the evidence axis).
# ----------------------------------------------------------------------------
def proj_gat_apply(x, p):
    h = jnp.maximum(jnp.einsum('...d,kd->...k', x, p['gat_w1']) + p['gat_b1'], 0.0)
    return jnp.einsum('...k,ok->...o', h, p['gat_w2']) + p['gat_b2']


def proj_gat_usr_apply(x, p):
    h = jnp.maximum(jnp.einsum('...d,kd->...k', x, p['gatu_w1']), 0.0)
    return jnp.einsum('...k,ok->...o', h, p['gatu_w2'])


def channel_usr_jax(user_embed, consts, params):
    """User channel (mode 'FF'): tiny (U=4, DU=8) all-ones-mask attention — kept in
    fused XLA rather than a dedicated Pallas kernel (launch overhead dominated)."""
    mu = jnp.asarray(consts['mu'], jnp.float32)
    cc = jnp.asarray(consts['inv2s2'], jnp.float32)
    w_att = jnp.asarray(consts['w_att'], jnp.float32)
    b_att = consts['b_att']

    unorm = jnp.sqrt(jnp.sum(user_embed * user_embed, axis=-1, keepdims=True))
    un = user_embed / jnp.maximum(unorm, 1e-12)
    # sim[b, e(query), i(doc), u, w]
    sim = jnp.einsum('beud,biwd->beiuw', un, un)
    g = jnp.exp(-(sim[..., None] - mu) ** 2 * cc)                 # (B,E,E,U,U,K)
    pool = jnp.sum(g, axis=4)                                     # sum over doc tokens w
    score = jnp.einsum('beiuk,k->beiu',
                       jnp.log(jnp.maximum(pool, 1e-10)), w_att) + b_att
    att = jax.nn.softmax(score, axis=3)                           # over query tokens u
    denoise_u = jnp.einsum('beiu,beud->bied', att, user_embed)    # [b, i, e, DU]

    user_inputs = jnp.mean(user_embed, axis=2)                    # (B, E, DU)
    w_de_u = jax.nn.softmax(proj_gat_usr_apply(denoise_u, params), axis=2)
    inputs_att_de_usr = jnp.sum(denoise_u * w_de_u, axis=2)       # (B, E, DU)
    return user_inputs, inputs_att_de_usr


def run_forward(params, consts, cfg, inp, msk, seg, Rs, user_metadata):
    B, EVI, L, H = cfg['B'], cfg['EVI'], cfg['L'], cfg['H']
    E = EVI
    EL = E * L
    K = len(consts['mu'])

    # ---- pred_model (BERT) stub ------------------------------------------
    # TODO(synk): pred_model is an external BERT passed into __init__; replaced
    # by a deterministic embedding + tanh encoder (glue, not part of this module).
    inp_f = inp.reshape(-1, L)
    seg_i = seg.reshape(-1, L).astype(jnp.int32)
    hid = jnp.tanh(params['word_emb'][inp_f] + params['seg_emb'][seg_i]
                   + params['pos_emb'][None, :, :])                  # (B*E, L, H)
    pooled = jnp.tanh(hid[:, 0, :] @ params['pooler_w'].T)           # (B*E, H)

    # ---- reshape_input_and_masks -----------------------------------------
    mask_text = msk.reshape(-1, L).astype(jnp.float32)
    mask_text = mask_text.at[:, 0].set(0.0)
    segf = seg.reshape(-1, L).astype(jnp.float32)
    mask_claim = (1.0 - segf) * mask_text
    mask_evidence = segf * mask_text
    hnorm = jnp.sqrt(jnp.sum(hid * hid, axis=-1, keepdims=True))
    hid_norm = hid / jnp.maximum(hnorm, 1e-12)

    hn_flat = hid_norm.reshape(B, EL, H)
    h_flat = hid.reshape(B, EL, H)

    # Block-diagonal pooling-mask matrices (layout plumbing kept in the wrapper).
    blockind = jnp.asarray(
        (np.arange(EL)[:, None] // L == np.arange(E)[None, :]).astype(np.float32))
    mt = mask_text.reshape(B, EL)
    mc = mask_claim.reshape(B, EL)
    me = mask_evidence.reshape(B, EL)
    Wa = mt[:, :, None] * blockind[None]        # att pooling: attn_d = mask_text[i]
    Ws = me[:, :, None] * blockind[None]        # sel pooling: attn_d = mask_evidence[e]
    Wc = mc[:, :, None] * blockind[None]        # sel averaging: attn_q = mask_claim[e]
    mq = mt[:, :, None]                         # att masked_fill: attn_q = mask_text[e]

    mu_col = jnp.asarray(
        np.repeat(np.asarray(consts['mu'], np.float32), EL).reshape(K * EL, 1))
    cc_col = jnp.asarray(
        np.repeat(np.asarray(consts['inv2s2'], np.float32), EL).reshape(K * EL, 1))

    # ---- channel_text: fused Pallas kernel ---------------------------------
    text_call = make_text_channel(B, E, L, H, K,
                                  consts['w_att'], consts['b_att'],
                                  consts['w_sel'], consts['b_sel'])
    den_out, sel_out = text_call(hn_flat, h_flat, Wa, Ws, Wc, mq, mu_col, cc_col)
    log_pooling_sum = sel_out.reshape(B, E, 1)            # (B, E, 1)
    denoise = jnp.swapaxes(den_out, 1, 2)                 # [b, i, e, H]

    # ---- att_prior_mr ------------------------------------------------------
    R_p, R_u, R_k = Rs
    delta = (jnp.einsum('bet,t->be', R_p, params['att_prior_P'])
             + jnp.einsum('beu,u->be', R_u, params['att_prior_U'])
             + jnp.einsum('bew,w->be', R_k, params['att_prior_K']))[..., None]
    log_pooling_sum = log_pooling_sum + delta             # mode != 'FF-I'
    select_prob = jax.nn.softmax(log_pooling_sum, axis=1)  # (B, E, 1)

    # ---- GAT aggregation over the evidence axis ----------------------------
    inputs3 = pooled.reshape(B, E, H)
    own = jnp.broadcast_to(inputs3[:, :, None, :], (B, E, E, H))
    weight_de_in = jnp.concatenate([own, denoise], axis=-1)   # (B, E, E, 2H)
    w_de = jax.nn.softmax(proj_gat_apply(weight_de_in, params), axis=2)
    inputs_att_de = jnp.sum(denoise * w_de, axis=2)           # (B, E, H)
    inputs_att = jnp.concatenate([inputs3, inputs_att_de], axis=-1)  # (B, E, 2H)

    # ---- load_user_embed (pretrained_user_embed=False path) ---------------
    # TODO(synk): add_user_embed / pretrained-embedding path reads .pt files;
    # using the user_emb Linear path instead.
    user_embed = jnp.einsum('beuf,df->beud', user_metadata, params['user_emb_w'])

    # ---- channel_usr (mode 'FF') — plain JAX -------------------------------
    user_inputs, inputs_att_de_usr = channel_usr_jax(user_embed, consts, params)
    usr_combined = jnp.concatenate([user_inputs, inputs_att_de_usr], axis=-1)
    usr_combined = jnp.einsum('bed,od->beo', usr_combined, params['proj_user_w'])

    # ---- final classification ----------------------------------------------
    inputs_att = inputs_att + usr_combined
    inference_feature = (jnp.einsum('bed,od->beo', inputs_att, params['proj_inf_w'])
                         + params['proj_inf_b'])
    class_prob = jax.nn.softmax(inference_feature, axis=2)
    prob = jnp.sum(select_prob * class_prob, axis=1)          # (B, num_labels)
    logits = jnp.log(prob)
    return logits, prob


# ----------------------------------------------------------------------------
if __name__ == "__main__":
    cfg = dict(B=2, EVI=3, L=16, H=32, U=4, DU=8)
    B, EVI, L, H = cfg['B'], cfg['EVI'], cfg['L'], cfg['H']
    U, DU = cfg['U'], cfg['DU']
    K, SIGMA = 11, 0.1
    NUM_LABELS = 3
    NUM_TWEETS, NUM_WORDS, N_FIELDS = 4, 5, 6
    VOCAB = 50

    key = jax.random.PRNGKey(0)
    ks = jax.random.split(key, 24)
    nrm = lambda k, s, std=0.05: (std * jax.random.normal(k, s)).astype(jnp.float32)

    params = {
        # BERT stub
        'word_emb': nrm(ks[0], (VOCAB, H), 0.5),
        'seg_emb': nrm(ks[1], (2, H), 0.5),
        'pos_emb': nrm(ks[2], (L, H), 0.5),
        'pooler_w': nrm(ks[3], (H, H)),
        # module parameters (torch Linear weights are stored (out, in))
        'att_prior_P': nrm(ks[4], (NUM_TWEETS,)),
        'att_prior_U': nrm(ks[5], (U,)),
        'att_prior_K': nrm(ks[6], (NUM_WORDS,)),
        'user_emb_w': nrm(ks[7], (DU, N_FIELDS)),
        'gat_w1': nrm(ks[8], (128, 2 * H)), 'gat_b1': nrm(ks[9], (128,)),
        'gat_w2': nrm(ks[10], (1, 128)), 'gat_b2': nrm(ks[11], (1,)),
        'gatu_w1': nrm(ks[12], (128, DU)), 'gatu_w2': nrm(ks[13], (1, 128)),
        'proj_user_w': nrm(ks[14], (2 * H, 2 * DU)),
        'proj_inf_w': nrm(ks[15], (NUM_LABELS, 2 * H)),
        'proj_inf_b': nrm(ks[16], (NUM_LABELS,)),
    }
    # TODO(synk): pr_param, param_trans_mat, proj_pred_P, proj_pred_interact and
    # param_pred_K are declared in __init__ but never used in forward() — omitted.

    # Small KNRM parameters baked into the Pallas kernel as compile-time constants.
    mus = kernal_mus(K)
    sigmas = kernel_sigmas(K, SIGMA)
    consts = dict(
        mu=[float(m) for m in mus],
        inv2s2=[float(1.0 / (2.0 * s * s)) for s in sigmas],
        w_att=[float(v) for v in np.asarray(nrm(ks[17], (K,)))],
        b_att=float(np.asarray(nrm(ks[18], (1,)))[0]),
        w_sel=[float(v) for v in np.asarray(nrm(ks[19], (K,)))],
        b_sel=float(np.asarray(nrm(ks[20], (1,)))[0]),
    )

    # Deterministic example inputs.
    inp = jax.random.randint(ks[21], (B, EVI, L), 0, VOCAB, dtype=jnp.int32)
    lens = (L - (np.arange(B * EVI).reshape(B, EVI) % 4) * 2)
    msk = jnp.asarray((np.arange(L)[None, None, :] < lens[:, :, None]),
                      dtype=jnp.float32)
    seg = jnp.asarray(np.broadcast_to((np.arange(L) >= 5).astype(np.float32),
                                      (B, EVI, L)))
    R_p = nrm(ks[22], (B, EVI, NUM_TWEETS), 1.0)
    R_u = nrm(ks[23], (B, EVI, U), 1.0)
    R_k = nrm(jax.random.PRNGKey(1), (B, EVI, NUM_WORDS), 1.0)
    user_metadata = nrm(jax.random.PRNGKey(2), (B, EVI, U, N_FIELDS), 1.0)

    logits, prob = run_forward(params, consts, cfg, inp, msk, seg,
                               (R_p, R_u, R_k), user_metadata)
    jax.block_until_ready((logits, prob))
    assert logits.shape == (B, NUM_LABELS) and prob.shape == (B, NUM_LABELS)
    assert bool(jnp.all(jnp.isfinite(prob)))
    print("KERNEL_OK")
</pallas_src>

<mosaic_0001>
module attributes {stable_mosaic.version = 11 : i64} {
  func.func @kernel(%arg0: i32, %arg1: memref<1x48x32xf32, #tpu.memory_space<vmem>>, %arg2: memref<1x48x32xf32, #tpu.memory_space<vmem>>, %arg3: memref<1x48x3xf32, #tpu.memory_space<vmem>>, %arg4: memref<1x48x3xf32, #tpu.memory_space<vmem>>, %arg5: memref<1x48x3xf32, #tpu.memory_space<vmem>>, %arg6: memref<1x48x1xf32, #tpu.memory_space<vmem>>, %arg7: memref<528x1xf32, #tpu.memory_space<vmem>>, %arg8: memref<528x1xf32, #tpu.memory_space<vmem>>, %arg9: memref<1x3x3x32xf32, #tpu.memory_space<vmem>>, %arg10: memref<1x1x3xf32, #tpu.memory_space<vmem>>) attributes {dimension_semantics = [#tpu.dimension_semantics<parallel>], iteration_bounds = array<i64: 2>, scalar_prefetch = 0 : i64, scratch_operands = 0 : i64, tpu.core_type = #tpu.core_type<tc>, window_params = [{transform_indices = @transform_0, window_bounds = array<i64: 1, 48, 32>}, {transform_indices = @transform_1, window_bounds = array<i64: 1, 48, 32>}, {transform_indices = @transform_2, window_bounds = array<i64: 1, 48, 3>}, {transform_indices = @transform_3, window_bounds = array<i64: 1, 48, 3>}, {transform_indices = @transform_4, window_bounds = array<i64: 1, 48, 3>}, {transform_indices = @transform_5, window_bounds = array<i64: 1, 48, 1>}, {pipeline_mode = #tpu.pipeline_mode<synchronous>, transform_indices = @transform_6, window_bounds = array<i64: 528, 1>}, {pipeline_mode = #tpu.pipeline_mode<synchronous>, transform_indices = @transform_7, window_bounds = array<i64: 528, 1>}, {transform_indices = @transform_8, window_bounds = array<i64: 1, 3, 3, 32>}, {transform_indices = @transform_9, window_bounds = array<i64: 1, 1, 3>}]} {
    %c0 = arith.constant 0 : index
    %c0_0 = arith.constant 0 : index
    %c0_1 = arith.constant 0 : index
    %0 = vector.load %arg1[%c0, %c0_0, %c0_1] : memref<1x48x32xf32, #tpu.memory_space<vmem>>, vector<1x48x32xf32>
    %1 = vector.shape_cast %0 : vector<1x48x32xf32> to vector<48x32xf32>
    %cst = arith.constant dense<0.000000e+00> : vector<48x48xf32>
    %2 = tpu.matmul %1, %1, %cst {dimension_numbers = #tpu.dot_dimension_numbers<[1], [1], [0], [0], [0, 0, 1, 0], [], []>} : vector<48x32xf32>, vector<48x32xf32>, vector<48x48xf32> -> vector<48x48xf32>
    %3 = tpu.concatenate %2, %2, %2, %2, %2, %2, %2, %2, %2, %2, %2 in 0 : vector<48x48xf32>, vector<48x48xf32>, vector<48x48xf32>, vector<48x48xf32>, vector<48x48xf32>, vector<48x48xf32>, vector<48x48xf32>, vector<48x48xf32>, vector<48x48xf32>, vector<48x48xf32>, vector<48x48xf32> -> vector<528x48xf32>
    %c0_2 = arith.constant 0 : index
    %c0_3 = arith.constant 0 : index
    %4 = vector.load %arg7[%c0_2, %c0_3] : memref<528x1xf32, #tpu.memory_space<vmem>>, vector<528x1xf32>
    %5 = vector.broadcast %4 : vector<528x1xf32> to vector<528x48xf32>
    %6 = arith.subf %3, %5 : vector<528x48xf32>
    %7 = arith.mulf %6, %6 : vector<528x48xf32>
    %cst_4 = arith.constant 0.000000e+00 : f32
    %8 = vector.broadcast %cst_4 : f32 to vector<528x48xf32>
    %9 = arith.subf %8, %7 : vector<528x48xf32>
    %c0_5 = arith.constant 0 : index
    %c0_6 = arith.constant 0 : index
    %10 = vector.load %arg8[%c0_5, %c0_6] : memref<528x1xf32, #tpu.memory_space<vmem>>, vector<528x1xf32>
    %11 = vector.broadcast %10 : vector<528x1xf32> to vector<528x48xf32>
    %12 = arith.mulf %9, %11 : vector<528x48xf32>
    %13 = math.exp %12 : vector<528x48xf32>
    %c0_7 = arith.constant 0 : index
    %c0_8 = arith.constant 0 : index
    %c0_9 = arith.constant 0 : index
    %14 = vector.load %arg3[%c0_7, %c0_8, %c0_9] : memref<1x48x3xf32, #tpu.memory_space<vmem>>, vector<1x48x3xf32>
    %15 = vector.shape_cast %14 : vector<1x48x3xf32> to vector<48x3xf32>
    %cst_10 = arith.constant dense<0.000000e+00> : vector<528x3xf32>
    %16 = tpu.matmul %13, %15, %cst_10 {dimension_numbers = #tpu.dot_dimension_numbers<[1], [0], [0], [1], [0, 0, 1, 1], [], []>} : vector<528x48xf32>, vector<48x3xf32>, vector<528x3xf32> -> vector<528x3xf32>
    %c0_11 = arith.constant 0 : index
    %c0_12 = arith.constant 0 : index
    %c0_13 = arith.constant 0 : index
    %17 = vector.load %arg4[%c0_11, %c0_12, %c0_13] : memref<1x48x3xf32, #tpu.memory_space<vmem>>, vector<1x48x3xf32>
    %18 = vector.shape_cast %17 : vector<1x48x3xf32> to vector<48x3xf32>
    %cst_14 = arith.constant dense<0.000000e+00> : vector<528x3xf32>
    %19 = tpu.matmul %13, %18, %cst_14 {dimension_numbers = #tpu.dot_dimension_numbers<[1], [0], [0], [1], [0, 0, 1, 1], [], []>} : vector<528x48xf32>, vector<48x3xf32>, vector<528x3xf32> -> vector<528x3xf32>
    %cst_15 = arith.constant 1.000000e-10 : f32
    %20 = vector.broadcast %cst_15 : f32 to vector<528x3xf32>
    %21 = arith.maximumf %16, %20 : vector<528x3xf32>
    %22 = math.log %21 : vector<528x3xf32>
    %cst_16 = arith.constant 1.000000e-10 : f32
    %23 = vector.broadcast %cst_16 : f32 to vector<528x3xf32>
    %24 = arith.maximumf %19, %23 : vector<528x3xf32>
    %25 = math.log %24 : vector<528x3xf32>
    %cst_17 = arith.constant 0.00916434265 : f32
    %26 = vector.broadcast %cst_17 : f32 to vector<48x3xf32>
    %cst_18 = arith.constant 0.000000e+00 : f32
    %27 = vector.broadcast %cst_18 : f32 to vector<48x3xf32>
    %28 = vector.extract_strided_slice %22 {offsets = [0, 0], sizes = [48, 3], strides = [1, 1]} : vector<528x3xf32> to vector<48x3xf32>
    %cst_19 = arith.constant -0.015163742 : f32
    %29 = vector.broadcast %cst_19 : f32 to vector<48x3xf32>
    %30 = arith.mulf %29, %28 : vector<48x3xf32>
    %31 = arith.addf %26, %30 : vector<48x3xf32>
    %32 = vector.extract_strided_slice %25 {offsets = [0, 0], sizes = [48, 3], strides = [1, 1]} : vector<528x3xf32> to vector<48x3xf32>
    %cst_20 = arith.constant -0.00980281084 : f32
    %33 = vector.broadcast %cst_20 : f32 to vector<48x3xf32>
    %34 = arith.mulf %33, %32 : vector<48x3xf32>
    %35 = arith.addf %27, %34 : vector<48x3xf32>
    %36 = vector.extract_strided_slice %22 {offsets = [48, 0], sizes = [48, 3], strides = [1, 1]} : vector<528x3xf32> to vector<48x3xf32>
    %cst_21 = arith.constant 0.0469813906 : f32
    %37 = vector.broadcast %cst_21 : f32 to vector<48x3xf32>
    %38 = arith.mulf %37, %36 : vector<48x3xf32>
    %39 = arith.addf %31, %38 : vector<48x3xf32>
    %40 = vector.extract_strided_slice %25 {offsets = [48, 0], sizes = [48, 3], strides = [1, 1]} : vector<528x3xf32> to vector<48x3xf32>
    %cst_22 = arith.constant 0.0331421085 : f32
    %41 = vector.broadcast %cst_22 : f32 to vector<48x3xf32>
    %42 = arith.mulf %41, %40 : vector<48x3xf32>
    %43 = arith.addf %35, %42 : vector<48x3xf32>
    %44 = vector.extract_strided_slice %22 {offsets = [96, 0], sizes = [48, 3], strides = [1, 1]} : vector<528x3xf32> to vector<48x3xf32>
    %cst_23 = arith.constant -0.00270352699 : f32
    %45 = vector.broadcast %cst_23 : f32 to vector<48x3xf32>
    %46 = arith.mulf %45, %44 : vector<48x3xf32>
    %47 = arith.addf %39, %46 : vector<48x3xf32>
    %48 = vector.extract_strided_slice %25 {offsets = [96, 0], sizes = [48, 3], strides = [1, 1]} : vector<528x3xf32> to vector<48x3xf32>
    %cst_24 = arith.constant 0.0520363115 : f32
    %49 = vector.broadcast %cst_24 : f32 to vector<48x3xf32>
    %50 = arith.mulf %49, %48 : vector<48x3xf32>
    %51 = arith.addf %43, %50 : vector<48x3xf32>
    %52 = vector.extract_strided_slice %22 {offsets = [144, 0], sizes = [48, 3], strides = [1, 1]} : vector<528x3xf32> to vector<48x3xf32>
    %cst_25 = arith.constant -0.0117167458 : f32
    %53 = vector.broadcast %cst_25 : f32 to vector<48x3xf32>
    %54 = arith.mulf %53, %52 : vector<48x3xf32>
    %55 = arith.addf %47, %54 : vector<48x3xf32>
    %56 = vector.extract_strided_slice %25 {offsets = [144, 0], sizes = [48, 3], strides = [1, 1]} : vector<528x3xf32> to vector<48x3xf32>
    %cst_26 = arith.constant 0.0797630175 : f32
    %57 = vector.broadcast %cst_26 : f32 to vector<48x3xf32>
    %58 = arith.mulf %57, %56 : vector<48x3xf32>
    %59 = arith.addf %51, %58 : vector<48x3xf32>
    %60 = vector.extract_strided_slice %22 {offsets = [192, 0], sizes = [48, 3], strides = [1, 1]} : vector<528x3xf32> to vector<48x3xf32>
    %cst_27 = arith.constant 0.0786514505 : f32
    %61 = vector.broadcast %cst_27 : f32 to vector<48x3xf32>
    %62 = arith.mulf %61, %60 : vector<48x3xf32>
    %63 = arith.addf %55, %62 : vector<48x3xf32>
    %64 = vector.extract_strided_slice %25 {offsets = [192, 0], sizes = [48, 3], strides = [1, 1]} : vector<528x3xf32> to vector<48x3xf32>
    %cst_28 = arith.constant -0.0664139241 : f32
    %65 = vector.broadcast %cst_28 : f32 to vector<48x3xf32>
    %66 = arith.mulf %65, %64 : vector<48x3xf32>
    %67 = arith.addf %59, %66 : vector<48x3xf32>
    %68 = vector.extract_strided_slice %22 {offsets = [240, 0], sizes = [48, 3], strides = [1, 1]} : vector<528x3xf32> to vector<48x3xf32>
    %cst_29 = arith.constant -0.0105831875 : f32
    %69 = vector.broadcast %cst_29 : f32 to vector<48x3xf32>
    %70 = arith.mulf %69, %68 : vector<48x3xf32>
    %71 = arith.addf %63, %70 : vector<48x3xf32>
    %72 = vector.extract_strided_slice %25 {offsets = [240, 0], sizes = [48, 3], strides = [1, 1]} : vector<528x3xf32> to vector<48x3xf32>
    %cst_30 = arith.constant -0.0070268861 : f32
    %73 = vector.broadcast %cst_30 : f32 to vector<48x3xf32>
    %74 = arith.mulf %73, %72 : vector<48x3xf32>
    %75 = arith.addf %67, %74 : vector<48x3xf32>
    %76 = vector.extract_strided_slice %22 {offsets = [288, 0], sizes = [48, 3], strides = [1, 1]} : vector<528x3xf32> to vector<48x3xf32>
    %cst_31 = arith.constant 0.0471067578 : f32
    %77 = vector.broadcast %cst_31 : f32 to vector<48x3xf32>
    %78 = arith.mulf %77, %76 : vector<48x3xf32>
    %79 = arith.addf %71, %78 : vector<48x3xf32>
    %80 = vector.extract_strided_slice %25 {offsets = [288, 0], sizes = [48, 3], strides = [1, 1]} : vector<528x3xf32> to vector<48x3xf32>
    %cst_32 = arith.constant 0.0624391213 : f32
    %81 = vector.broadcast %cst_32 : f32 to vector<48x3xf32>
    %82 = arith.mulf %81, %80 : vector<48x3xf32>
    %83 = arith.addf %75, %82 : vector<48x3xf32>
    %84 = vector.extract_strided_slice %22 {offsets = [336, 0], sizes = [48, 3], strides = [1, 1]} : vector<528x3xf32> to vector<48x3xf32>
    %cst_33 = arith.constant 0.0350966826 : f32
    %85 = vector.broadcast %cst_33 : f32 to vector<48x3xf32>
    %86 = arith.mulf %85, %84 : vector<48x3xf32>
    %87 = arith.addf %79, %86 : vector<48x3xf32>
    %88 = vector.extract_strided_slice %25 {offsets = [336, 0], sizes = [48, 3], strides = [1, 1]} : vector<528x3xf32> to vector<48x3xf32>
    %cst_34 = arith.constant -0.0135839134 : f32
    %89 = vector.broadcast %cst_34 : f32 to vector<48x3xf32>
    %90 = arith.mulf %89, %88 : vector<48x3xf32>
    %91 = arith.addf %83, %90 : vector<48x3xf32>
    %92 = vector.extract_strided_slice %22 {offsets = [384, 0], sizes = [48, 3], strides = [1, 1]} : vector<528x3xf32> to vector<48x3xf32>
    %cst_35 = arith.constant -0.0980133935 : f32
    %93 = vector.broadcast %cst_35 : f32 to vector<48x3xf32>
    %94 = arith.mulf %93, %92 : vector<48x3xf32>
    %95 = arith.addf %87, %94 : vector<48x3xf32>
    %96 = vector.extract_strided_slice %25 {offsets = [384, 0], sizes = [48, 3], strides = [1, 1]} : vector<528x3xf32> to vector<48x3xf32>
    %cst_36 = arith.constant 0.0631400868 : f32
    %97 = vector.broadcast %cst_36 : f32 to vector<48x3xf32>
    %98 = arith.mulf %97, %96 : vector<48x3xf32>
    %99 = arith.addf %91, %98 : vector<48x3xf32>
    %100 = vector.extract_strided_slice %22 {offsets = [432, 0], sizes = [48, 3], strides = [1, 1]} : vector<528x3xf32> to vector<48x3xf32>
    %cst_37 = arith.constant -0.0290503707 : f32
    %101 = vector.broadcast %cst_37 : f32 to vector<48x3xf32>
    %102 = arith.mulf %101, %100 : vector<48x3xf32>
    %103 = arith.addf %95, %102 : vector<48x3xf32>
    %104 = vector.extract_strided_slice %25 {offsets = [432, 0], sizes = [48, 3], strides = [1, 1]} : vector<528x3xf32> to vector<48x3xf32>
    %cst_38 = arith.constant -0.00469129253 : f32
    %105 = vector.broadcast %cst_38 : f32 to vector<48x3xf32>
    %106 = arith.mulf %105, %104 : vector<48x3xf32>
    %107 = arith.addf %99, %106 : vector<48x3xf32>
    %108 = vector.extract_strided_slice %22 {offsets = [480, 0], sizes = [48, 3], strides = [1, 1]} : vector<528x3xf32> to vector<48x3xf32>
    %cst_39 = arith.constant -0.0227466282 : f32
    %109 = vector.broadcast %cst_39 : f32 to vector<48x3xf32>
    %110 = arith.mulf %109, %108 : vector<48x3xf32>
    %111 = arith.addf %103, %110 : vector<48x3xf32>
    %112 = vector.extract_strided_slice %25 {offsets = [480, 0], sizes = [48, 3], strides = [1, 1]} : vector<528x3xf32> to vector<48x3xf32>
    %cst_40 = arith.constant -0.0378084332 : f32
    %113 = vector.broadcast %cst_40 : f32 to vector<48x3xf32>
    %114 = arith.mulf %113, %112 : vector<48x3xf32>
    %115 = arith.addf %107, %114 : vector<48x3xf32>
    %c0_41 = arith.constant 0 : index
    %c0_42 = arith.constant 0 : index
    %c0_43 = arith.constant 0 : index
    %116 = vector.load %arg5[%c0_41, %c0_42, %c0_43] : memref<1x48x3xf32, #tpu.memory_space<vmem>>, vector<1x48x3xf32>
    %117 = vector.shape_cast %116 : vector<1x48x3xf32> to vector<48x3xf32>
    %118 = arith.mulf %117, %115 : vector<48x3xf32>
    %cst_44 = arith.constant dense<0.000000e+00> : vector<3xf32>
    %119 = vector.multi_reduction <add>, %118, %cst_44 [0] : vector<48x3xf32> to vector<3xf32>
    %120 = vector.shape_cast %119 : vector<3xf32> to vector<1x3xf32>
    %cst_45 = arith.constant dense<0.000000e+00> : vector<3xf32>
    %121 = vector.multi_reduction <add>, %117, %cst_45 [0] : vector<48x3xf32> to vector<3xf32>
    %122 = vector.shape_cast %121 : vector<3xf32> to vector<1x3xf32>
    %cst_46 = arith.constant 1.000000e-10 : f32
    %123 = vector.broadcast %cst_46 : f32 to vector<1x3xf32>
    %124 = arith.addf %122, %123 : vector<1x3xf32>
    %125 = arith.divf %120, %124 : vector<1x3xf32>
    %cst_47 = arith.constant -0.0207895488 : f32
    %126 = vector.broadcast %cst_47 : f32 to vector<1x3xf32>
    %127 = arith.addf %125, %126 : vector<1x3xf32>
    %c0_48 = arith.constant 0 : index
    %c0_49 = arith.constant 0 : index
    %c0_50 = arith.constant 0 : index
    %128 = vector.load %arg10[%c0_48, %c0_49, %c0_50] : memref<1x1x3xf32, #tpu.memory_space<vmem>>, vector<1x1x3xf32>
    %129 = vector.shape_cast %128 : vector<1x1x3xf32> to vector<1x3xf32>
    %130 = vector.shape_cast %127 : vector<1x3xf32> to vector<1x1x3xf32>
    tpu.vector_store %arg10[%c0_48, %c0_49, %c0_50], %130 {strides = array<i32>} : memref<1x1x3xf32, #tpu.memory_space<vmem>>, vector<1x1x3xf32>,
    %c0_51 = arith.constant 0 : index
    %c0_52 = arith.constant 0 : index
    %c0_53 = arith.constant 0 : index
    %131 = vector.load %arg6[%c0_51, %c0_52, %c0_53] : memref<1x48x1xf32, #tpu.memory_space<vmem>>, vector<1x48x1xf32>
    %132 = vector.shape_cast %131 : vector<1x48x1xf32> to vector<48x1xf32>
    %cst_54 = arith.constant 5.000000e-01 : f32
    %133 = vector.broadcast %cst_54 : f32 to vector<48x1xf32>
    %134 = arith.cmpf ogt, %132, %133 : vector<48x1xf32>
    %cst_55 = arith.constant -1.000000e+04 : f32
    %135 = vector.shape_cast %134 : vector<48x1xi1> to vector<48x1xi1>
    %136 = vector.broadcast %135 : vector<48x1xi1> to vector<48x3xi1>
    %137 = vector.broadcast %cst_55 : f32 to vector<48x3xf32>
    %138 = arith.select %136, %111, %137 : vector<48x3xi1>, vector<48x3xf32>
    %c0_56 = arith.constant 0 : index
    %c0_57 = arith.constant 0 : index
    %c0_58 = arith.constant 0 : index
    %139 = vector.load %arg2[%c0_56, %c0_57, %c0_58] : memref<1x48x32xf32, #tpu.memory_space<vmem>>, vector<1x48x32xf32>
    %140 = vector.shape_cast %139 : vector<1x48x32xf32> to vector<48x32xf32>
    %141 = vector.extract_strided_slice %138 {offsets = [0, 0], sizes = [16, 3], strides = [1, 1]} : vector<48x3xf32> to vector<16x3xf32>
    %cst_59 = arith.constant dense<0xFF800000> : vector<3xf32>
    %142 = vector.multi_reduction <maximumf>, %141, %cst_59 [0] : vector<16x3xf32> to vector<3xf32>
    %143 = vector.shape_cast %142 : vector<3xf32> to vector<1x3xf32>
    %144 = vector.broadcast %143 : vector<1x3xf32> to vector<16x3xf32>
    %145 = arith.subf %141, %144 : vector<16x3xf32>
    %146 = math.exp %145 : vector<16x3xf32>
    %cst_60 = arith.constant dense<0.000000e+00> : vector<3xf32>
    %147 = vector.multi_reduction <add>, %146, %cst_60 [0] : vector<16x3xf32> to vector<3xf32>
    %148 = vector.shape_cast %147 : vector<3xf32> to vector<1x3xf32>
    %149 = vector.broadcast %148 : vector<1x3xf32> to vector<16x3xf32>
    %150 = arith.divf %146, %149 : vector<16x3xf32>
    %151 = vector.extract_strided_slice %140 {offsets = [0, 0], sizes = [16, 32], strides = [1, 1]} : vector<48x32xf32> to vector<16x32xf32>
    %cst_61 = arith.constant dense<0.000000e+00> : vector<3x32xf32>
    %152 = tpu.matmul %150, %151, %cst_61 {dimension_numbers = #tpu.dot_dimension_numbers<[0], [0], [1], [1], [0, 1, 1, 1], [], []>} : vector<16x3xf32>, vector<16x32xf32>, vector<3x32xf32> -> vector<3x32xf32>
    %c0_62 = arith.constant 0 : index
    %c0_63 = arith.constant 0 : index
    %c0_64 = arith.constant 0 : index
    %c0_65 = arith.constant 0 : index
    %153 = vector.load %arg9[%c0_62, %c0_63, %c0_64, %c0_65] : memref<1x3x3x32xf32, #tpu.memory_space<vmem>>, vector<1x1x3x32xf32>
    %154 = vector.shape_cast %153 : vector<1x1x3x32xf32> to vector<3x32xf32>
    %155 = vector.shape_cast %152 : vector<3x32xf32> to vector<1x1x3x32xf32>
    tpu.vector_store %arg9[%c0_62, %c0_63, %c0_64, %c0_65], %155 {strides = array<i32>} : memref<1x3x3x32xf32, #tpu.memory_space<vmem>>, vector<1x1x3x32xf32>,
    %156 = vector.extract_strided_slice %138 {offsets = [16, 0], sizes = [16, 3], strides = [1, 1]} : vector<48x3xf32> to vector<16x3xf32>
    %cst_66 = arith.constant dense<0xFF800000> : vector<3xf32>
    %157 = vector.multi_reduction <maximumf>, %156, %cst_66 [0] : vector<16x3xf32> to vector<3xf32>
    %158 = vector.shape_cast %157 : vector<3xf32> to vector<1x3xf32>
    %159 = vector.broadcast %158 : vector<1x3xf32> to vector<16x3xf32>
    %160 = arith.subf %156, %159 : vector<16x3xf32>
    %161 = math.exp %160 : vector<16x3xf32>
    %cst_67 = arith.constant dense<0.000000e+00> : vector<3xf32>
    %162 = vector.multi_reduction <add>, %161, %cst_67 [0] : vector<16x3xf32> to vector<3xf32>
    %163 = vector.shape_cast %162 : vector<3xf32> to vector<1x3xf32>
    %164 = vector.broadcast %163 : vector<1x3xf32> to vector<16x3xf32>
    %165 = arith.divf %161, %164 : vector<16x3xf32>
    %166 = vector.extract_strided_slice %140 {offsets = [16, 0], sizes = [16, 32], strides = [1, 1]} : vector<48x32xf32> to vector<16x32xf32>
    %cst_68 = arith.constant dense<0.000000e+00> : vector<3x32xf32>
    %167 = tpu.matmul %165, %166, %cst_68 {dimension_numbers = #tpu.dot_dimension_numbers<[0], [0], [1], [1], [0, 1, 1, 1], [], []>} : vector<16x3xf32>, vector<16x32xf32>, vector<3x32xf32> -> vector<3x32xf32>
    %c0_69 = arith.constant 0 : index
    %c1 = arith.constant 1 : index
    %c0_70 = arith.constant 0 : index
    %c0_71 = arith.constant 0 : index
    %168 = vector.load %arg9[%c0_69, %c1, %c0_70, %c0_71] : memref<1x3x3x32xf32, #tpu.memory_space<vmem>>, vector<1x1x3x32xf32>
    %169 = vector.shape_cast %168 : vector<1x1x3x32xf32> to vector<3x32xf32>
    %170 = vector.shape_cast %167 : vector<3x32xf32> to vector<1x1x3x32xf32>
    tpu.vector_store %arg9[%c0_69, %c1, %c0_70, %c0_71], %170 {strides = array<i32>} : memref<1x3x3x32xf32, #tpu.memory_space<vmem>>, vector<1x1x3x32xf32>,
    %171 = vector.extract_strided_slice %138 {offsets = [32, 0], sizes = [16, 3], strides = [1, 1]} : vector<48x3xf32> to vector<16x3xf32>
    %cst_72 = arith.constant dense<0xFF800000> : vector<3xf32>
    %172 = vector.multi_reduction <maximumf>, %171, %cst_72 [0] : vector<16x3xf32> to vector<3xf32>
    %173 = vector.shape_cast %172 : vector<3xf32> to vector<1x3xf32>
    %174 = vector.broadcast %173 : vector<1x3xf32> to vector<16x3xf32>
    %175 = arith.subf %171, %174 : vector<16x3xf32>
    %176 = math.exp %175 : vector<16x3xf32>
    %cst_73 = arith.constant dense<0.000000e+00> : vector<3xf32>
    %177 = vector.multi_reduction <add>, %176, %cst_73 [0] : vector<16x3xf32> to vector<3xf32>
    %178 = vector.shape_cast %177 : vector<3xf32> to vector<1x3xf32>
    %179 = vector.broadcast %178 : vector<1x3xf32> to vector<16x3xf32>
    %180 = arith.divf %176, %179 : vector<16x3xf32>
    %181 = vector.extract_strided_slice %140 {offsets = [32, 0], sizes = [16, 32], strides = [1, 1]} : vector<48x32xf32> to vector<16x32xf32>
    %cst_74 = arith.constant dense<0.000000e+00> : vector<3x32xf32>
    %182 = tpu.matmul %180, %181, %cst_74 {dimension_numbers = #tpu.dot_dimension_numbers<[0], [0], [1], [1], [0, 1, 1, 1], [], []>} : vector<16x3xf32>, vector<16x32xf32>, vector<3x32xf32> -> vector<3x32xf32>
    %c0_75 = arith.constant 0 : index
    %c2 = arith.constant 2 : index
    %c0_76 = arith.constant 0 : index
    %c0_77 = arith.constant 0 : index
    %183 = vector.load %arg9[%c0_75, %c2, %c0_76, %c0_77] : memref<1x3x3x32xf32, #tpu.memory_space<vmem>>, vector<1x1x3x32xf32>
    %184 = vector.shape_cast %183 : vector<1x1x3x32xf32> to vector<3x32xf32>
    %185 = vector.shape_cast %182 : vector<3x32xf32> to vector<1x1x3x32xf32>
    tpu.vector_store %arg9[%c0_75, %c2, %c0_76, %c0_77], %185 {strides = array<i32>} : memref<1x3x3x32xf32, #tpu.memory_space<vmem>>, vector<1x1x3x32xf32>,
    return
  }
  func.func @transform_0(%arg0: i32) -> (i32, i32, i32) {
    %c0_i32 = arith.constant 0 : i32
    %c0_i32_0 = arith.constant 0 : i32
    %c0_i32_1 = arith.constant 0 : i32
    return %arg0, %c0_i32, %c0_i32_0 : i32, i32, i32
  }
  func.func @transform_1(%arg0: i32) -> (i32, i32, i32) {
    %c0_i32 = arith.constant 0 : i32
    %c0_i32_0 = arith.constant 0 : i32
    %c0_i32_1 = arith.constant 0 : i32
    return %arg0, %c0_i32, %c0_i32_0 : i32, i32, i32
  }
  func.func @transform_2(%arg0: i32) -> (i32, i32, i32) {
    %c0_i32 = arith.constant 0 : i32
    %c0_i32_0 = arith.constant 0 : i32
    %c0_i32_1 = arith.constant 0 : i32
    return %arg0, %c0_i32, %c0_i32_0 : i32, i32, i32
  }
  func.func @transform_3(%arg0: i32) -> (i32, i32, i32) {
    %c0_i32 = arith.constant 0 : i32
    %c0_i32_0 = arith.constant 0 : i32
    %c0_i32_1 = arith.constant 0 : i32
    return %arg0, %c0_i32, %c0_i32_0 : i32, i32, i32
  }
  func.func @transform_4(%arg0: i32) -> (i32, i32, i32) {
    %c0_i32 = arith.constant 0 : i32
    %c0_i32_0 = arith.constant 0 : i32
    %c0_i32_1 = arith.constant 0 : i32
    return %arg0, %c0_i32, %c0_i32_0 : i32, i32, i32
  }
  func.func @transform_5(%arg0: i32) -> (i32, i32, i32) {
    %c0_i32 = arith.constant 0 : i32
    %c0_i32_0 = arith.constant 0 : i32
    %c0_i32_1 = arith.constant 0 : i32
    return %arg0, %c0_i32, %c0_i32_0 : i32, i32, i32
  }
  func.func @transform_6(%arg0: i32) -> (i32, i32) {
    %c0_i32 = arith.constant 0 : i32
    %c0_i32_0 = arith.constant 0 : i32
    %c0_i32_1 = arith.constant 0 : i32
    return %c0_i32, %c0_i32_0 : i32, i32
  }
  func.func @transform_7(%arg0: i32) -> (i32, i32) {
    %c0_i32 = arith.constant 0 : i32
    %c0_i32_0 = arith.constant 0 : i32
    %c0_i32_1 = arith.constant 0 : i32
    return %c0_i32, %c0_i32_0 : i32, i32
  }
  func.func @transform_8(%arg0: i32) -> (i32, i32, i32, i32) {
    %c0_i32 = arith.constant 0 : i32
    %c0_i32_0 = arith.constant 0 : i32
    %c0_i32_1 = arith.constant 0 : i32
    %c0_i32_2 = arith.constant 0 : i32
    return %arg0, %c0_i32, %c0_i32_0, %c0_i32_1 : i32, i32, i32, i32
  }
  func.func @transform_9(%arg0: i32) -> (i32, i32, i32) {
    %c0_i32 = arith.constant 0 : i32
    %c0_i32_0 = arith.constant 0 : i32
    %c0_i32_1 = arith.constant 0 : i32
    return %arg0, %c0_i32, %c0_i32_0 : i32, i32, i32
  }
}

</mosaic_0001>

<bundles_post_ra>
// kernel: tpu_custom_call.1
= control target key start
LH: loop header
LB: loop body
LE: loop exit
PB: predicated region body
PF: predicated region fallthrough
CT: control target
= control target key end

     0   :  { %s7133_s0 = inlined_call_operand.vmem [shape: f32[2,48,32], index: 0, kind: input, shape index: {}]   ;;  %s7134_s1 = inlined_call_operand.vmem [shape: f32[2,48,32], index: 1, kind: input, shape index: {}]   ;;  %s7135_s2 = inlined_call_operand.vmem [shape: f32[2,48,3], index: 2, kind: input, shape index: {}]   ;;  %s7136_s3 = inlined_call_operand.vmem [shape: f32[2,48,3], index: 3, kind: input, shape index: {}]   ;;  %s7137_s4 = inlined_call_operand.vmem [shape: f32[2,48,3], index: 4, kind: input, shape index: {}]   ;;  %s7138_s5 = inlined_call_operand.vmem [shape: f32[2,48,1], index: 5, kind: input, shape index: {}]   ;;  %s7139_s6 = inlined_call_operand.vmem [shape: f32[528,1], index: 6, kind: input, shape index: {}]   ;;  %s7140_s7 = inlined_call_operand.vmem [shape: f32[528,1], index: 7, kind: input, shape index: {}]   ;;  %s7141_s8 = inlined_call_operand.vmem [shape: f32[2,3,3,32], index: 8, kind: output, shape index: {0}]   ;;  %s7142_s9 = inlined_call_operand.hbm [shape: f32[2,1,3], index: 9, kind: output, shape index: {1}]  }
   0x1   :  { %7156 = sst [smem:[#allocation37_spill]] %s7133_s0 }
   0x2   :  { %15 = vsyncpa [#allocation3], 0 }
   0x3   :  { %17 = vsyncpa [#allocation3 + $0x1], 0  ;;  %s5265_s30 = smov 0   ;;  %s5267_s10 = smov 0  }
   0x4   :  { %s5269_s11 = smov 0   ;;  %s5271_s12 = smov 0  }
   0x5 LB: > { %s5286_s13 = sadd.s32 4294967295, %s5209_s12   ;;  %s4083_s14 = sadd.s32 4294967294, %s5209_s12   ;;  %s5209_s12 = sphi %s5271_s12, %s7228_s12   ;;  %s5205_s11 = sphi %s5269_s11, %s7227_s11   ;;  %s5201_s10 = sphi %s5267_s10, %s7226_s10   ;;  %s5197_s30 = sphi %s5265_s30, %s7225_s30  }
   0x6   : > { %s5290_s15 = sadd.s32 1, %s5209_s12   ;;  %s254_s16 = sadd.s32 1, %s5205_s11 }
   0x7   : > { %s251_s17 = ssub.s32 %s5209_s12, %s5290_s15  ;;  %p264_p0 = scmp.ne.s32.totalorder %s5205_s11, %s5201_s10 }
   0x8   : > { %p252_p1 = scmp.eq.s32.totalorder %s251_s17, 0  ;;  %p265_p2 = scmp.eq.s32.totalorder %s5286_s13, 1 }
   0x9   : > { %p270_p3 = scmp.ne.s32.totalorder %s5201_s10, %s5197_s30  ;;  %p271_p4 = scmp.eq.s32.totalorder %s4083_s14, 1 }
   0xa   : > { %s5301_s18 = scalar_select %p252_p1, %s5205_s11, %s254_s16  }
   0xb   : > { %p5303_p5 = por %p265_p2, %p264_p0  ;;  %p5307_p6 = por %p271_p4, %p270_p3 }
   0xc   : > { %p4086_p7 = scmp.ge.s32.totalorder %s5209_s12, 1  ;;  %p343_p8 = scmp.lt.s32.totalorder %s5209_s12, 3 }
   0xe   : > { %p344_p9 = pnand %p4086_p7, %p343_p8 }
  0x10   : > { %347 = sbr.rel (%p344_p9) target bundleno = 1078 (0x436), region = 52 }
  0x15   : > { %v565_v0 = vld [vmem:[%s7139_s6 + $0x10] sm:$0xff]  ;;  %v563_v1 = vld [vmem:[%s7139_s6] sm:$0xff]  ;;  %p408_p10 = scmp.lt.s32.totalorder %s5286_s13, 1  ;;  %v7143_v2 = vmov 0   ;;  %v566_v3 = vld [vmem:[%s7139_s6 + $0x18] sm:$0xff]  ;;  %vm449_vm0 = vcmask 261120  }
  0x16   : > { %4732 = vset.pattern.permute.xlu1 %v7143_v2  ;;  %4731 = vset.pattern.permute.xlu0 %v7143_v2  ;;  %v564_v4 = vld [vmem:[%s7139_s6 + $0x8] sm:$0xff]  ;;  %s7159_s0 = sld [smem:[#allocation37_spill]]  ;;  %v1157_v7 = vld [vmem:[%s7140_s7] sm:$0xff]  ;;  %v1160_v13 = vld [vmem:[%s7140_s7 + $0x18] sm:$0xff]  ;;  %vm1757_vm7 = vcmask 392192   ;;  %vm3424_vm8 = vcmask 23552  }
  0x17   : > { %641 = vperm.xlu1 %4732, %v565_v0   ;;  %631 = vperm.xlu0 %4731, %v563_v1   ;;  %s5323_s25 = scalar_select %p408_p10, %s5286_s13, 1  ;;  %v1158_v6 = vld [vmem:[%s7140_s7 + $0x8] sm:$0xff]  ;;  %v567_v11 = vld [vmem:[%s7139_s6 + $0x20] sm:$0xff]  ;;  %v1159_v14 = vld [vmem:[%s7140_s7 + $0x10] sm:$0xff]  ;;  %vm5213_vm11 = vmmov 0  }
  0x18   : > { %v568_v10 = vld [vmem:[%s7139_s6 + $0x28] sm:$0xff]  ;;  %v570_v16 = vld [vmem:[%s7139_s6 + $0x38] sm:$0xff]  ;;  %v569_v17 = vld [vmem:[%s7139_s6 + $0x30] sm:$0xff]  ;;  %s4243_s28 = sshll.u32 %s5286_s13, 4 }
  0x19   : > { %s5332_s14 = smul.u32 48, %s5323_s25  ;;  %v1162_v19 = vld [vmem:[%s7140_s7 + $0x28] sm:$0xff]  ;;  %v1161_v20 = vld [vmem:[%s7140_s7 + $0x20] sm:$0xff]  ;;  %v1164_v23 = vld [vmem:[%s7140_s7 + $0x38] sm:$0xff] }
  0x1a   : > { %v572_v21 = vld [vmem:[%s7139_s6 + $0x48] sm:$0xff]  ;;  %v571_v22 = vld [vmem:[%s7139_s6 + $0x40] sm:$0xff]  ;;  %v1163_v24 = vld [vmem:[%s7140_s7 + $0x30] sm:$0xff] }
  0x1b   : > { %646 = vperm.xlu1 %4732, %v566_v3   ;;  %636 = vperm.xlu0 %4731, %v564_v4   ;;  %v574_v25 = vld [vmem:[%s7139_s6 + $0x58] sm:$0xff]  ;;  %v573_v26 = vld [vmem:[%s7139_s6 + $0x50] sm:$0xff]  ;;  %v1166_v27 = vld [vmem:[%s7140_s7 + $0x48] sm:$0xff]  ;;  %s5580_s22 = scalar_lea.vmem %s7135_s2, %s5332_s14  ;;  %s5586_s24 = scalar_lea.vmem %s7136_s3, %s5332_s14 }
  0x1c   : > { %s412_s21 = scalar_lea.vmem %s7159_s0, %s5332_s14  ;;  %v1165_v28 = vld [vmem:[%s7140_s7 + $0x40] sm:$0xff]  ;;  %v576_v29 = vld [vmem:[%s7139_s6 + $0x68] sm:$0xff]  ;;  %v1168_v31 = vld [vmem:[%s7140_s7 + $0x58] sm:$0xff]  ;;  %s5910_s16 = scalar_lea.vmem %s7138_s5, %s5332_s14 }
  0x1d   : > { %v448_v5 = vld [vmem:[%s412_s21 + $0x28] sm:$0xff]  ;;  %v447_v8 = vld [vmem:[%s412_s21 + $0x20] sm:$0xff]  ;;  %v446_v12 = vld [vmem:[%s412_s21 + $0x18] sm:$0xff]  ;;  %s6985_s26 = scalar_lea.vmem %s7134_s1, %s5332_s14 }
  0x1e   : > { %4411 = vmatprep.subr.msk.mxu0 %vm449_vm0, %v448_v5  ;;  %v443_v9 = vld [vmem:[%s412_s21] sm:$0xff]  ;;  %v445_v15 = vld [vmem:[%s412_s21 + $0x10] sm:$0xff]  ;;  %v444_v18 = vld [vmem:[%s412_s21 + $0x8] sm:$0xff]  ;;  %s6907_s21 = scalar_lea.vmem %s7137_s4, %s5332_s14  ;;  %s406_s14 = sand.u32 1, %s5201_s10  }
  0x1f   : > { %4412 = vmatpush3.xpose.msk.msra.mxu0 %vm449_vm0, %v448_v5  ;;  %4423 = vmatprep.mubr.msk.f32.mxu0 %vm449_vm0, %v443_v9  ;;  %v575_v30 = vld [vmem:[%s7139_s6 + $0x60] sm:$0xff]  ;;  %v1167_v32 = vld [vmem:[%s7140_s7 + $0x50] sm:$0xff]  ;;  %v578_v33 = vld [vmem:[%s7139_s6 + $0x78] sm:$0xff]  ;;  %s7072_s27 = scalar_lea.vmem [#allocation2], %s406_s14 }
  0x20   : > { %1230 = vperm.xlu1 %4732, %v1158_v6   ;;  %1225 = vperm.xlu0 %4731, %v1157_v7   ;;  %v577_v34 = vld [vmem:[%s7139_s6 + $0x70] sm:$0xff]  ;;  %v1170_v35 = vld [vmem:[%s7140_s7 + $0x68] sm:$0xff]  ;;  %v1169_v36 = vld [vmem:[%s7140_s7 + $0x60] sm:$0xff]  ;;  %s3943_s23 = sshll.u32 %s7072_s27, 4  ;;  %s3944_s23 = int_to_ptr.vmem [resolvable:$true] %s3943_s23 }
  0x21   : > { %4413 = vmatprep.subr.msk.mxu0 %vm449_vm0, %v447_v8  ;;  %v580_v37 = vld [vmem:[%s7139_s6 + $0x88] sm:$0xff]  ;;  %v579_v38 = vld [vmem:[%s7139_s6 + $0x80] sm:$0xff]  ;;  %v1172_v39 = vld [vmem:[%s7140_s7 + $0x78] sm:$0xff] }
  0x22   : > { %v1171_v40 = vld [vmem:[%s7140_s7 + $0x70] sm:$0xff]  ;;  %v582_v41 = vld [vmem:[%s7139_s6 + $0x98] sm:$0xff]  ;;  %v1174_v43 = vld [vmem:[%s7140_s7 + $0x88] sm:$0xff] }
  0x23   : > { %4414 = vmatpush3.xpose.msk.msra.mxu0 %vm449_vm0, %v447_v8  ;;  %v581_v42 = vld [vmem:[%s7139_s6 + $0x90] sm:$0xff]  ;;  %v1173_v44 = vld [vmem:[%s7140_s7 + $0x80] sm:$0xff]  ;;  %v584_v45 = vld [vmem:[%s7139_s6 + $0xa8] sm:$0xff] }
  0x24   : > { %656 = vperm.xlu1 %4732, %v568_v10   ;;  %651 = vperm.xlu0 %4731, %v567_v11   ;;  %v583_v46 = vld [vmem:[%s7139_s6 + $0xa0] sm:$0xff]  ;;  %v1176_v47 = vld [vmem:[%s7140_s7 + $0x98] sm:$0xff]  ;;  %v1175_v48 = vld [vmem:[%s7140_s7 + $0x90] sm:$0xff] }
  0x25   : > { %4415 = vmatprep.subr.msk.mxu0 %vm449_vm0, %v446_v12  ;;  %v586_v49 = vld [vmem:[%s7139_s6 + $0xb8] sm:$0xff]  ;;  %v585_v50 = vld [vmem:[%s7139_s6 + $0xb0] sm:$0xff]  ;;  %v1178_v51 = vld [vmem:[%s7140_s7 + $0xa8] sm:$0xff] }
  0x26   : > { %v1177_v52 = vld [vmem:[%s7140_s7 + $0xa0] sm:$0xff]  ;;  %v588_v53 = vld [vmem:[%s7139_s6 + $0xc8] sm:$0xff]  ;;  %v1180_v55 = vld [vmem:[%s7140_s7 + $0xb8] sm:$0xff] }
  0x27   : > { %4416 = vmatpush3.xpose.msk.msra.mxu0 %vm449_vm0, %v446_v12  ;;  %v587_v54 = vld [vmem:[%s7139_s6 + $0xc0] sm:$0xff]  ;;  %v1179_v56 = vld [vmem:[%s7140_s7 + $0xb0] sm:$0xff]  ;;  %v590_v57 = vld [vmem:[%s7139_s6 + $0xd8] sm:$0xff] }
  0x28   : > { %1240 = vperm.xlu1 %4732, %v1160_v13   ;;  %1235 = vperm.xlu0 %4731, %v1159_v14   ;;  %v589_v58 = vld [vmem:[%s7139_s6 + $0xd0] sm:$0xff]  ;;  %v1182_v59 = vld [vmem:[%s7140_s7 + $0xc8] sm:$0xff]  ;;  %v1181_v60 = vld [vmem:[%s7140_s7 + $0xc0] sm:$0xff] }
  0x29   : > { %4417 = vmatprep.subr.msk.mxu0 %vm449_vm0, %v445_v15  ;;  %v592_v61 = vld [vmem:[%s7139_s6 + $0xe8] sm:$0xff]  ;;  %v591_v62 = vld [vmem:[%s7139_s6 + $0xe0] sm:$0xff]  ;;  %v1184_v63 = vld [vmem:[%s7140_s7 + $0xd8] sm:$0xff] }
  0x2a   : > { %v1183_v0 = vld [vmem:[%s7140_s7 + $0xd0] sm:$0xff]  ;;  %v594_v1 = vld [vmem:[%s7139_s6 + $0xf8] sm:$0xff]  ;;  %v1186_v4 = vld [vmem:[%s7140_s7 + $0xe8] sm:$0xff] }
  0x2b   : > { %4418 = vmatpush3.xpose.msk.msra.mxu0 %vm449_vm0, %v445_v15  ;;  %v593_v3 = vld [vmem:[%s7139_s6 + $0xf0] sm:$0xff]  ;;  %v596_v6 = vld [vmem:[%s7139_s6 + $0x108] sm:$0xff]  ;;  %v595_v7 = vld [vmem:[%s7139_s6 + $0x100] sm:$0xff] }
  0x2c   : > { %666 = vperm.xlu1 %4732, %v570_v16   ;;  %661 = vperm.xlu0 %4731, %v569_v17   ;;  %v1188_v10 = vld [vmem:[%s7140_s7 + $0xf8] sm:$0xff]  ;;  %v1187_v11 = vld [vmem:[%s7140_s7 + $0xf0] sm:$0xff] }
  0x2d   : > { %4419 = vmatprep.subr.msk.mxu0 %vm449_vm0, %v444_v18  ;;  %v598_v14 = vld [vmem:[%s7139_s6 + $0x118] sm:$0xff] }
  0x2f   : > { %4420 = vmatpush3.xpose.msk.msra.mxu0 %vm449_vm0, %v444_v18 }
  0x30   : > { %1250 = vperm.xlu1 %4732, %v1162_v19   ;;  %1245 = vperm.xlu0 %4731, %v1161_v20   ;;  %v1189_v19 = vld [vmem:[%s7140_s7 + $0x100] sm:$0xff] }
  0x31   : > { %4421 = vmatprep.subr.msk.mxu0 %vm449_vm0, %v443_v9 }
  0x33   : > { %4422 = vmatpush3.xpose.msk.msra.mxu0 %vm449_vm0, %v443_v9 }
  0x34   : > { %676 = vperm.xlu1 %4732, %v572_v21   ;;  %671 = vperm.xlu0 %4731, %v571_v22   ;;  %v600_v22 = vld [vmem:[%s7139_s6 + $0x128] sm:$0xff] }
  0x36   : > { %4424 = vmatmul.mubr.msk.f32.vlgmr.msra.gmra.mxu0 %vm449_vm0, %v444_v18  ;;  %v1190_v18 = vld [vmem:[%s7140_s7 + $0x108] sm:$0xff] }
  0x37   : > { %4426 = vmatprep.mubr.msk.f32.mxu0 %vm449_vm0, %v445_v15  ;;  %v597_v15 = vld [vmem:[%s7139_s6 + $0x110] sm:$0xff] }
  0x38   : > { %1260 = vperm.xlu1 %4732, %v1164_v23   ;;  %1255 = vperm.xlu0 %4731, %v1163_v24   ;;  %v599_v23 = vld [vmem:[%s7139_s6 + $0x120] sm:$0xff] }
  0x3a   : > { %4427 = vmatmul.mubr.msk.f32.gmra.mxu0 %vm449_vm0, %v446_v12 }
  0x3b   : > { %4429 = vmatprep.mubr.msk.f32.mxu0 %vm449_vm0, %v447_v8 }
  0x3c   : > { %686 = vperm.xlu1 %4732, %v574_v25   ;;  %681 = vperm.xlu0 %4731, %v573_v26   ;;  %v1756_v26 = vld [vmem:[%s5580_s22 + $0x28] sm:$0xff] }
  0x3d   : > { %4432 = vmatprep.subr.mxu1 %v1756_v26 }
  0x3e   : > { %4430 = vmatmul.mubr.msk.f32.gmra.mxu0 %vm449_vm0, %v448_v5  ;;  %v1185_v5 = vld [vmem:[%s7140_s7 + $0xe0] sm:$0xff]  ;;  %4433 = vmatpush3.msra.mxu1 %v1756_v26  ;;  %vm3463_vm0 = vcmask 16384  }
  0x3f   : > { %v1201_v26 = vld [vmem:[%s7140_s7 + $0x160] sm:$0xff] }
  0x40   : > { %1270 = vperm.xlu1 %4732, %v1166_v27   ;;  %1265 = vperm.xlu0 %4731, %v1165_v28   ;;  %v5594_v27 = vld [vmem:[%s5586_s24 + $0x28] sm:$0xff]  ;;  %v1192_v28 = vld [vmem:[%s7140_s7 + $0x118] sm:$0xff] }
  0x41   : > { %7160 = vst [vmem:[#allocation5_spill] sm:$0xff] %v5594_v27  ;;  %4543 = vmatprep.subr.mxu0 %v5594_v27 }
  0x42   : > { %4544 = vmatpush3.msra.mxu0 %v5594_v27 }
  0x44   : > { %696 = vperm.xlu1 %4732, %v576_v29   ;;  %691 = vperm.xlu0 %4731, %v575_v30   ;;  %v1191_v29 = vld [vmem:[%s7140_s7 + $0x110] sm:$0xff]  ;;  %v1755_v30 = vld [vmem:[%s5580_s22 + $0x20] sm:$0xff] }
  0x45   : > { %4434 = vmatprep.subr.mxu1 %v1755_v30 }
  0x46   : > { %4435 = vmatpush3.msra.mxu1 %v1755_v30  ;;  %v612_v30 = vld [vmem:[%s7139_s6 + $0x188] sm:$0xff] }
  0x48   : > { %1280 = vperm.xlu1 %4732, %v1168_v31   ;;  %1275 = vperm.xlu0 %4731, %v1167_v32   ;;  %v5606_v31 = vld [vmem:[%s5586_s24 + $0x20] sm:$0xff] }
  0x49   : > { %7161 = vst [vmem:[#allocation6_spill] sm:$0xff] %v5606_v31  ;;  %4545 = vmatprep.subr.mxu0 %v5606_v31 }
  0x4a   : > { %4546 = vmatpush3.msra.mxu0 %v5606_v31 }
  0x4c   : > { %706 = vperm.xlu1 %4732, %v578_v33   ;;  %701 = vperm.xlu0 %4731, %v577_v34   ;;  %v1754_v34 = vld [vmem:[%s5580_s22 + $0x18] sm:$0xff] }
  0x4d   : > { %4436 = vmatprep.subr.mxu1 %v1754_v34 }
  0x4e   : > { %4437 = vmatpush3.msra.mxu1 %v1754_v34  ;;  %v611_v34 = vld [vmem:[%s7139_s6 + $0x180] sm:$0xff] }
  0x50   : > { %1290 = vperm.xlu1 %4732, %v1170_v35   ;;  %1285 = vperm.xlu0 %4731, %v1169_v36   ;;  %v5615_v35 = vld [vmem:[%s5586_s24 + $0x18] sm:$0xff] }
  0x51   : > { %7162 = vst [vmem:[#allocation7_spill] sm:$0xff] %v5615_v35  ;;  %v602_v36 = vld [vmem:[%s7139_s6 + $0x138] sm:$0xff]  ;;  %4547 = vmatprep.subr.mxu0 %v5615_v35 }
  0x52   : > { %4548 = vmatpush3.msra.mxu0 %v5615_v35 }
  0x54   : > { %716 = vperm.xlu1 %4732, %v580_v37   ;;  %711 = vperm.xlu0 %4731, %v579_v38   ;;  %v601_v37 = vld [vmem:[%s7139_s6 + $0x130] sm:$0xff] }
  0x58   : > { %1300 = vperm.xlu1 %4732, %v1172_v39   ;;  %1295 = vperm.xlu0 %4731, %v1171_v40   ;;  %v1753_v40 = vld [vmem:[%s5580_s22 + $0x10] sm:$0xff] }
  0x59   : > { %4438 = vmatprep.subr.mxu1 %v1753_v40 }
  0x5a   : > { %4439 = vmatpush3.msra.mxu1 %v1753_v40  ;;  %v1204_v40 = vld [vmem:[%s7140_s7 + $0x178] sm:$0xff] }
  0x5c   : > { %726 = vperm.xlu1 %4732, %v582_v41   ;;  %721 = vperm.xlu0 %4731, %v581_v42   ;;  %v5632_v41 = vld [vmem:[%s5586_s24 + $0x10] sm:$0xff]  ;;  %v1752_v42 = vld [vmem:[%s5580_s22 + $0x8] sm:$0xff] }
  0x5d   : > { %7163 = vst [vmem:[#allocation8_spill] sm:$0xff] %v5632_v41  ;;  %4549 = vmatprep.subr.mxu0 %v5632_v41  ;;  %4440 = vmatprep.subr.mxu1 %v1752_v42 }
  0x5e   : > { %4550 = vmatpush3.msra.mxu0 %v5632_v41  ;;  %4441 = vmatpush3.msra.mxu1 %v1752_v42  ;;  %v1203_v42 = vld [vmem:[%s7140_s7 + $0x170] sm:$0xff] }
  0x60   : > { %1310 = vperm.xlu1 %4732, %v1174_v43   ;;  %1305 = vperm.xlu0 %4731, %v1173_v44   ;;  %v5636_v43 = vld [vmem:[%s5586_s24 + $0x8] sm:$0xff] }
  0x61   : > { %7164 = vst [vmem:[#allocation9_spill] sm:$0xff] %v5636_v43  ;;  %v1194_v44 = vld [vmem:[%s7140_s7 + $0x128] sm:$0xff]  ;;  %4551 = vmatprep.subr.mxu0 %v5636_v43 }
  0x62   : > { %4552 = vmatpush3.msra.mxu0 %v5636_v43 }
  0x64   : > { %736 = vperm.xlu1 %4732, %v584_v45   ;;  %731 = vperm.xlu0 %4731, %v583_v46   ;;  %v1193_v45 = vld [vmem:[%s7140_s7 + $0x120] sm:$0xff] }
  0x68   : > { %1320 = vperm.xlu1 %4732, %v1176_v47   ;;  %1315 = vperm.xlu0 %4731, %v1175_v48   ;;  %v1751_v48 = vld [vmem:[%s5580_s22] sm:$0xff]  ;;  %s5149_s22 = scalar_lea.vmem %s3944_s23, 16 }
  0x69   : > { %4442 = vmatprep.subr.mxu1 %v1751_v48  ;;  %p5150_p11 = scmp.ne.s32.totalorder %s3944_s23, %s5149_s22 }
  0x6a   : > { %4443 = vmatpush3.msra.mxu1 %v1751_v48  ;;  %v614_v48 = vld [vmem:[%s7139_s6 + $0x198] sm:$0xff] }
  0x6b   : > { %4675 = vmatprep.subr.mxu1 %v5594_v27  ;;  %p5151_p12 = pnand %p5150_p11, %p5303_p5 }
  0x6c   : > { %746 = vperm.xlu1 %4732, %v586_v49   ;;  %741 = vperm.xlu0 %4731, %v585_v50   ;;  %v5653_v49 = vld [vmem:[%s5586_s24] sm:$0xff]  ;;  %v604_v50 = vld [vmem:[%s7139_s6 + $0x148] sm:$0xff]  ;;  %s5214_s24 = smov [#allocation2]  }
  0x6d   : > { %7165 = vst [vmem:[#allocation10_spill] sm:$0xff] %v5653_v49  ;;  %4553 = vmatprep.subr.mxu0 %v5653_v49  ;;  %p5152_p13 = pneg %p5151_p12 }
  0x6e   : > { %4554 = vmatpush3.msra.mxu0 %v5653_v49 }
  0x70   : > { %1330 = vperm.xlu1 %4732, %v1178_v51   ;;  %1325 = vperm.xlu0 %4731, %v1177_v52   ;;  %v603_v51 = vld [vmem:[%s7139_s6 + $0x140] sm:$0xff] }
  0x74   : > { %756 = vperm.xlu1 %4732, %v588_v53   ;;  %751 = vperm.xlu0 %4731, %v587_v54   ;;  %v1196_v54 = vld [vmem:[%s7140_s7 + $0x138] sm:$0xff] }
  0x78   : > { %1340 = vperm.xlu1 %4732, %v1180_v55   ;;  %1335 = vperm.xlu0 %4731, %v1179_v56   ;;  %v1195_v55 = vld [vmem:[%s7140_s7 + $0x130] sm:$0xff] }
  0x7c   : > { %766 = vperm.xlu1 %4732, %v590_v57   ;;  %761 = vperm.xlu0 %4731, %v589_v58   ;;  %v606_v58 = vld [vmem:[%s7139_s6 + $0x158] sm:$0xff] }
  0x80   : > { %1350 = vperm.xlu1 %4732, %v1182_v59   ;;  %1345 = vperm.xlu0 %4731, %v1181_v60   ;;  %v605_v59 = vld [vmem:[%s7139_s6 + $0x150] sm:$0xff] }
  0x84   : > { %776 = vperm.xlu1 %4732, %v592_v61   ;;  %771 = vperm.xlu0 %4731, %v591_v62   ;;  %v1198_v62 = vld [vmem:[%s7140_s7 + $0x148] sm:$0xff] }
  0x88   : > { %1360 = vperm.xlu1 %4732, %v1184_v63   ;;  %1355 = vperm.xlu0 %4731, %v1183_v0   ;;  %v1197_v63 = vld [vmem:[%s7140_s7 + $0x140] sm:$0xff] }
  0x8c   : > { %786 = vperm.xlu1 %4732, %v594_v1   ;;  %781 = vperm.xlu0 %4731, %v593_v3   ;;  %v608_v3 = vld [vmem:[%s7139_s6 + $0x168] sm:$0xff] }
  0x90   : > { %1370 = vperm.xlu1 %4732, %v1186_v4   ;;  %1365 = vperm.xlu0 %4731, %v1185_v5   ;;  %v607_v4 = vld [vmem:[%s7139_s6 + $0x160] sm:$0xff] }
  0x92   : > { %v5536_v8 = vpop.permute.xlu1 %641  ;;  %v5538_v9 = vpop.permute.xlu0 %631 }
  0x94   : > { %796 = vperm.xlu1 %4732, %v596_v6   ;;  %791 = vperm.xlu0 %4731, %v595_v7   ;;  %v1200_v7 = vld [vmem:[%s7140_s7 + $0x158] sm:$0xff] }
  0x96   : > { %v5546_v12 = vpop.permute.xlu1 %646  ;;  %v5548_v13 = vpop.permute.xlu0 %636 }
  0x98   : > { %1380 = vperm.xlu1 %4732, %v1188_v10   ;;  %1375 = vperm.xlu0 %4731, %v1187_v11   ;;  %v1199_v10 = vld [vmem:[%s7140_s7 + $0x150] sm:$0xff] }
  0x9b   : > { %v5556_v16 = vpop.permute.xlu1 %1230  ;;  %v5558_v17 = vpop.permute.xlu0 %1225 }
  0x9c   : > { %806 = vperm.xlu1 %4732, %v598_v14   ;;  %801 = vperm.xlu0 %4731, %v597_v15   ;;  %v610_v15 = vld [vmem:[%s7139_s6 + $0x178] sm:$0xff] }
  0x9f   : > { %v5566_v20 = vpop.permute.xlu1 %656  ;;  %v5568_v21 = vpop.permute.xlu0 %651 }
  0xa0   : > { %1390 = vperm.xlu1 %4732, %v1190_v18   ;;  %1385 = vperm.xlu0 %4731, %v1189_v19   ;;  %v609_v18 = vld [vmem:[%s7139_s6 + $0x170] sm:$0xff] }
  0xa3   : > { %v5588_v24 = vpop.permute.xlu1 %1240  ;;  %v5590_v25 = vpop.permute.xlu0 %1235 }
  0xa4   : > { %816 = vperm.xlu1 %4732, %v600_v22   ;;  %811 = vperm.xlu0 %4731, %v599_v23   ;;  %v1202_v23 = vld [vmem:[%s7140_s7 + $0x168] sm:$0xff] }
  0xa7   : > { %v5608_v32 = vpop.permute.xlu1 %666  ;;  %v5610_v33 = vpop.permute.xlu0 %661 }
  0xa8   : > { %1400 = vperm.xlu1 %4732, %v1192_v28   ;;  %1395 = vperm.xlu0 %4731, %v1191_v29  }
  0xab   : > { %v5625_v38 = vpop.permute.xlu1 %1250  ;;  %v5627_v39 = vpop.permute.xlu0 %1245 }
  0xac   : > { %826 = vperm.xlu1 %4732, %v602_v36   ;;  %821 = vperm.xlu0 %4731, %v601_v37  }
  0xaf   : > { %v5646_v46 = vpop.permute.xlu1 %676  ;;  %v5648_v47 = vpop.permute.xlu0 %671 }
  0xb0   : > { %1410 = vperm.xlu1 %4732, %v1194_v44   ;;  %1405 = vperm.xlu0 %4731, %v1193_v45  }
  0xb3   : > { %v5663_v52 = vpop.permute.xlu1 %1260  ;;  %v5665_v53 = vpop.permute.xlu0 %1255 }
  0xb4   : > { %836 = vperm.xlu1 %4732, %v604_v50   ;;  %831 = vperm.xlu0 %4731, %v603_v51   ;;  %v613_v50 = vld [vmem:[%s7139_s6 + $0x190] sm:$0xff] }
  0xb7   : > { %v5675_v56 = vpop.permute.xlu1 %686  ;;  %v5677_v57 = vpop.permute.xlu0 %681 }
  0xb8   : > { %1420 = vperm.xlu1 %4732, %v1196_v54   ;;  %1415 = vperm.xlu0 %4731, %v1195_v55   ;;  %v1206_v55 = vld [vmem:[%s7140_s7 + $0x188] sm:$0xff] }
  0xbb   : > { %v5685_v60 = vpop.permute.xlu1 %1270  ;;  %v5687_v61 = vpop.permute.xlu0 %1265 }
  0xbc   : > { %846 = vperm.xlu1 %4732, %v606_v58   ;;  %841 = vperm.xlu0 %4731, %v605_v59   ;;  %v1205_v58 = vld [vmem:[%s7140_s7 + $0x180] sm:$0xff] }
  0xbf   : > { %v5695_v0 = vpop.permute.xlu1 %696  ;;  %v5697_v1 = vpop.permute.xlu0 %691 }
  0xc0   : > { %1430 = vperm.xlu1 %4732, %v1198_v62   ;;  %1425 = vperm.xlu0 %4731, %v1197_v63   ;;  %v616_v63 = vld [vmem:[%s7139_s6 + $0x1a8] sm:$0xff] }
  0xc3   : > { %v5705_v5 = vpop.permute.xlu1 %1280  ;;  %v5707_v6 = vpop.permute.xlu0 %1275 }
  0xc4   : > { %7166 = vst [vmem:[#allocation11_spill] sm:$0xff] %v5705_v5  ;;  %856 = vperm.xlu1 %4732, %v608_v3   ;;  %851 = vperm.xlu0 %4731, %v607_v4   ;;  %v615_v3 = vld [vmem:[%s7139_s6 + $0x1a0] sm:$0xff] }
  0xc7   : > { %v5715_v11 = vpop.permute.xlu1 %706  ;;  %v5717_v14 = vpop.permute.xlu0 %701 }
  0xc8   : > { %1440 = vperm.xlu1 %4732, %v1200_v7   ;;  %1435 = vperm.xlu0 %4731, %v1199_v10   ;;  %v1208_v10 = vld [vmem:[%s7140_s7 + $0x198] sm:$0xff] }
  0xcb   : > { %v5725_v19 = vpop.permute.xlu1 %1290  ;;  %v5727_v22 = vpop.permute.xlu0 %1285 }
  0xcc   : > { %7167 = vst [vmem:[#allocation12_spill] sm:$0xff] %v5725_v19  ;;  %7168 = vst [vmem:[#allocation13_spill] sm:$0xff] %v5727_v22  ;;  %866 = vperm.xlu1 %4732, %v610_v15   ;;  %861 = vperm.xlu0 %4731, %v609_v18   ;;  %v1207_v15 = vld [vmem:[%s7140_s7 + $0x190] sm:$0xff] }
  0xcf   : > { %v5735_v28 = vpop.permute.xlu1 %716  ;;  %v5737_v29 = vpop.permute.xlu0 %711 }
  0xd0   : > { %7169 = vst [vmem:[#allocation14_spill] sm:$0xff] %v5735_v28  ;;  %1450 = vperm.xlu1 %4732, %v1202_v23   ;;  %1445 = vperm.xlu0 %4731, %v1201_v26   ;;  %v618_v26 = vld [vmem:[%s7139_s6 + $0x1b8] sm:$0xff] }
  0xd3   : > { %v5745_v36 = vpop.permute.xlu1 %1300  ;;  %v5747_v37 = vpop.permute.xlu0 %1295 }
  0xd4   : > { %7170 = vst [vmem:[#allocation15_spill] sm:$0xff] %v5745_v36  ;;  %7171 = vst [vmem:[#allocation16_spill] sm:$0xff] %v5747_v37  ;;  %876 = vperm.xlu1 %4732, %v612_v30   ;;  %871 = vperm.xlu0 %4731, %v611_v34   ;;  %v617_v30 = vld [vmem:[%s7139_s6 + $0x1b0] sm:$0xff] }
  0xd5   : > { %v3467_v37 = vld [vmem:[%s5910_s16 + $0x10] sm:$0xff] }
  0xd6   : > { %vm3473_vm4 = vcmp.gt.f32.partialorder %v3467_v37, 0.5 }
  0xd7   : > { %v5755_v44 = vpop.permute.xlu1 %726  ;;  %v5757_v45 = vpop.permute.xlu0 %721 }
  0xd8   : > { %7172 = vst [vmem:[#allocation17_spill] sm:$0xff] %v5755_v44  ;;  %1460 = vperm.xlu1 %4732, %v1204_v40   ;;  %1455 = vperm.xlu0 %4731, %v1203_v42   ;;  %v1210_v42 = vld [vmem:[%s7140_s7 + $0x1a8] sm:$0xff] }
  0xdb   : > { %v5765_v51 = vpop.permute.xlu1 %1310  ;;  %v5767_v54 = vpop.permute.xlu0 %1305 }
  0xdc   : > { %7173 = vst [vmem:[#allocation18_spill] sm:$0xff] %v5765_v51  ;;  %7174 = vst [vmem:[#allocation19_spill] sm:$0xff] %v5767_v54  ;;  %886 = vperm.xlu1 %4732, %v614_v48   ;;  %881 = vperm.xlu0 %4731, %v613_v50   ;;  %v1209_v48 = vld [vmem:[%s7140_s7 + $0x1a0] sm:$0xff]  ;;  %v1215_v54 = vld [vmem:[%s7140_s7 + $0x1d0] sm:$0xff] }
  0xdf   : > { %v5775_v59 = vpop.permute.xlu1 %736  ;;  %v5777_v62 = vpop.permute.xlu0 %731 }
  0xe0   : > { %7175 = vst [vmem:[#allocation20_spill] sm:$0xff] %v5775_v59  ;;  %7176 = vst [vmem:[#allocation21_spill] sm:$0xff] %v5777_v62  ;;  %1470 = vperm.xlu1 %4732, %v1206_v55   ;;  %1465 = vperm.xlu0 %4731, %v1205_v58   ;;  %v620_v58 = vld [vmem:[%s7139_s6 + $0x1c8] sm:$0xff] }
  0xe3   : > { %v5785_v4 = vpop.permute.xlu1 %1320  ;;  %v5787_v7 = vpop.permute.xlu0 %1315 }
  0xe4   : > { %7177 = vst [vmem:[#allocation22_spill] sm:$0xff] %v5785_v4  ;;  %7178 = vst [vmem:[#allocation23_spill] sm:$0xff] %v5787_v7  ;;  %896 = vperm.xlu1 %4732, %v616_v63   ;;  %891 = vperm.xlu0 %4731, %v615_v3   ;;  %v619_v63 = vld [vmem:[%s7139_s6 + $0x1c0] sm:$0xff] }
  0xe7   : > { %v5795_v18 = vpop.permute.xlu1 %746  ;;  %v5797_v23 = vpop.permute.xlu0 %741 }
  0xe8   : > { %7179 = vst [vmem:[#allocation24_spill] sm:$0xff] %v5797_v23  ;;  %1480 = vperm.xlu1 %4732, %v1208_v10   ;;  %1475 = vperm.xlu0 %4731, %v1207_v15   ;;  %v1212_v15 = vld [vmem:[%s7140_s7 + $0x1b8] sm:$0xff] }
  0xeb   : > { %v5805_v34 = vpop.permute.xlu1 %1330  ;;  %v5807_v40 = vpop.permute.xlu0 %1325 }
  0xec   : > { %7180 = vst [vmem:[#allocation25_spill] sm:$0xff] %v5805_v34  ;;  %7181 = vst [vmem:[#allocation26_spill] sm:$0xff] %v5807_v40  ;;  %906 = vperm.xlu1 %4732, %v618_v26   ;;  %901 = vperm.xlu0 %4731, %v617_v30   ;;  %v1211_v26 = vld [vmem:[%s7140_s7 + $0x1b0] sm:$0xff] }
  0xef   : > { %v757_v50 = vpop.permute.xlu1 %756  ;;  %v752_v55 = vpop.permute.xlu0 %751 }
  0xf0   : > { %1490 = vperm.xlu1 %4732, %v1210_v42   ;;  %1485 = vperm.xlu0 %4731, %v1209_v48  }
  0xf3   : > { %v5821_v3 = vpop.permute.xlu1 %1340  ;;  %v5823_v10 = vpop.permute.xlu0 %1335 }
  0xf4   : > { %7182 = vst [vmem:[#allocation27_spill] sm:$0xff] %v5823_v10  ;;  %916 = vperm.xlu1 %4732, %v620_v58   ;;  %911 = vperm.xlu0 %4731, %v619_v63   ;;  %v622_v58 = vld [vmem:[%s7139_s6 + $0x1d8] sm:$0xff]  ;;  %v621_v63 = vld [vmem:[%s7139_s6 + $0x1d0] sm:$0xff] }
  0xf6   : > { %v5835_v48 = vpop.f32.mrf.mxu0 }
  0xf7   : > { %v5831_v30 = vpop.permute.xlu1 %766  ;;  %v5833_v42 = vpop.permute.xlu0 %761  ;;  %v984_v10 = vsub.f32 %v5835_v48, %v757_v50  ;;  %v624_v50 = vld [vmem:[%s7139_s6 + $0x1e8] sm:$0xff] }
  0xf8   : > { %1500 = vperm.xlu1 %4732, %v1212_v15   ;;  %1495 = vperm.xlu0 %4731, %v1211_v26   ;;  %v1214_v15 = vld [vmem:[%s7140_s7 + $0x1c8] sm:$0xff]  ;;  %v1213_v26 = vld [vmem:[%s7140_s7 + $0x1c0] sm:$0xff]  ;;  %v5852_v40 = vpop.f32.mrf.mxu0 }
  0xf9   : > { %v1050_v4 = vmul.f32 %v984_v10, %v984_v10  ;;  %v983_v35 = vsub.f32 %v5852_v40, %v752_v55  ;;  %v1216_v10 = vld [vmem:[%s7140_s7 + $0x1d8] sm:$0xff] }
  0xfa   : > { %v5864_v51 = vpop.f32.mrf.mxu0 }
  0xfb   : > { %v1351_v2 = vpop.permute.xlu1 %1350  ;;  %v1346_v49 = vpop.permute.xlu0 %1345  ;;  %v1116_v7 = vsub.f32 0.0, %v1050_v4  ;;  %v626_v4 = vld [vmem:[%s7139_s6 + $0x1f8] sm:$0xff] }
  0xfc   : > { %926 = vperm.xlu1 %4732, %v622_v58   ;;  %921 = vperm.xlu0 %4731, %v621_v63   ;;  %v623_v58 = vld [vmem:[%s7139_s6 + $0x1e0] sm:$0xff]  ;;  %v5875_v31 = vpop.f32.mrf.mxu0 }
  0xff   : > { %v777_v34 = vpop.permute.xlu1 %776  ;;  %v5850_v43 = vpop.permute.xlu0 %771 }
 0x100   : > { %1510 = vperm.xlu1 %4732, %v1214_v15   ;;  %1505 = vperm.xlu0 %4731, %v1213_v26   ;;  %v5870_v15 = vmul.f32 %v1351_v2, %v1116_v7  ;;  %v1049_v26 = vmul.f32 %v983_v35, %v983_v35  ;;  %v625_v2 = vld [vmem:[%s7139_s6 + $0x1f0] sm:$0xff] }
 0x102   : > { %7183 = vst [vmem:[#allocation28_spill] sm:$0xff] %v5870_v15  ;;  %v1115_v59 = vsub.f32 0.0, %v1049_v26  ;;  %v1220_v15 = vld [vmem:[%s7140_s7 + $0x1f8] sm:$0xff] }
 0x103   : > { %v5860_v63 = vpop.permute.xlu1 %1360  ;;  %v5862_v41 = vpop.permute.xlu0 %1355 }
 0x104   : > { %936 = vperm.xlu1 %4732, %v624_v50   ;;  %931 = vperm.xlu0 %4731, %v623_v58   ;;  %v5880_v55 = vmul.f32 %v1346_v49, %v1115_v59  ;;  %v5889_v50 = vpop.f32.mrf.mxu0  ;;  %v1217_v49 = vld [vmem:[%s7140_s7 + $0x1e0] sm:$0xff] }
 0x105   : > { %v982_v59 = vsub.f32 %v5889_v50, %v5795_v18  ;;  %v627_v18 = vld [vmem:[%s7139_s6 + $0x200] sm:$0xff] }
 0x106   : > { %7184 = vst [vmem:[#allocation29_spill] sm:$0xff] %v5880_v55 }
 0x107   : > { %v787_v23 = vpop.permute.xlu1 %786  ;;  %v782_v36 = vpop.permute.xlu0 %781  ;;  %v1048_v26 = vmul.f32 %v982_v59, %v982_v59 }
 0x108   : > { %1520 = vperm.xlu1 %4732, %v1216_v10   ;;  %1515 = vperm.xlu0 %4731, %v1215_v54   ;;  %v1218_v54 = vld [vmem:[%s7140_s7 + $0x1e8] sm:$0xff]  ;;  %v990_v27 = vsub.f32 %v5835_v48, %v787_v23  ;;  %v989_v5 = vsub.f32 %v5852_v40, %v782_v36  ;;  %v962_v23 = vsub.f32 %v5864_v51, %v5546_v12  ;;  %v3469_v12 = vld [vmem:[%s5910_s16 + $0x20] sm:$0xff] }
 0x109   : > { %vm3475_vm6 = vcmp.gt.f32.partialorder %v3469_v12, 0.5 }
 0x10b   : > { %v5885_v35 = vpop.permute.xlu1 %1370  ;;  %v5887_v7 = vpop.permute.xlu0 %1365 }
 0x10c   : > { %946 = vperm.xlu1 %4732, %v626_v4   ;;  %941 = vperm.xlu0 %4731, %v625_v2   ;;  %v628_v4 = vld [vmem:[%s7139_s6 + $0x208] sm:$0xff]  ;;  %v1114_v2 = vsub.f32 0.0, %v1048_v26  ;;  %v1219_v26 = vld [vmem:[%s7140_s7 + $0x1f0] sm:$0xff] }
 0x10e   : > { %v5921_v59 = vmul.f32 %v5821_v3, %v1114_v2  ;;  %v961_v2 = vsub.f32 %v5875_v31, %v5536_v8  ;;  %v1221_v8 = vld [vmem:[%s7140_s7 + $0x200] sm:$0xff] }
 0x10f   : > { %v5899_v58 = vpop.permute.xlu1 %796  ;;  %v5901_v10 = vpop.permute.xlu0 %791 }
 0x110   : > { %7185 = vst [vmem:[#allocation30_spill] sm:$0xff] %v5899_v58  ;;  %7186 = vst [vmem:[#allocation31_spill] sm:$0xff] %v5901_v10  ;;  %1530 = vperm.xlu1 %4732, %v1218_v54   ;;  %1525 = vperm.xlu0 %4731, %v1217_v49   ;;  %v3466_v49 = vld [vmem:[%s5910_s16 + $0x8] sm:$0xff]  ;;  %v988_v10 = vsub.f32 %v5889_v50, %v777_v34  ;;  %v986_v34 = vsub.f32 %v5864_v51, %v5831_v30 }
 0x111   : > { %7187 = vst [vmem:[#allocation32_spill] sm:$0xff] %v5921_v59  ;;  %vm3472_vm1 = vcmp.gt.f32.partialorder %v3466_v49, 0.5  ;;  %v985_v59 = vsub.f32 %v5875_v31, %v5833_v42  ;;  %v5948_v49 = vpop.f32.mrf.mxu0 }
 0x112   : > { %v1052_v42 = vmul.f32 %v986_v34, %v986_v34  ;;  %v963_v28 = vsub.f32 %v5948_v49, %v5568_v21  ;;  %v1056_v34 = vmul.f32 %v990_v27, %v990_v27 }
 0x113   : > { %v5915_v58 = vpop.permute.xlu1 %1380  ;;  %v5917_v54 = vpop.permute.xlu0 %1375 }
 0x114   : > { %956 = vperm.xlu1 %4732, %v628_v4   ;;  %951 = vperm.xlu0 %4731, %v627_v18   ;;  %v960_v4 = vsub.f32 %v5835_v48, %v5548_v13  ;;  %v3465_v18 = vld [vmem:[%s5910_s16] sm:$0xff]  ;;  %v1222_v13 = vld [vmem:[%s7140_s7 + $0x208] sm:$0xff] }
 0x115   : > { %vm3471_vm2 = vcmp.gt.f32.partialorder %v3465_v18, 0.5  ;;  %v1122_v18 = vsub.f32 0.0, %v1056_v34 }
 0x116   : > { %v1026_v30 = vmul.f32 %v960_v4, %v960_v4  ;;  %v1118_v4 = vsub.f32 0.0, %v1052_v42 }
 0x117   : > { %v5932_v55 = vpop.permute.xlu1 %806  ;;  %v5934_v3 = vpop.permute.xlu0 %801 }
 0x118   : > { %7188 = vst [vmem:[#allocation33_spill] sm:$0xff] %v5932_v55  ;;  %7189 = vst [vmem:[#allocation34_spill] sm:$0xff] %v5934_v3  ;;  %1540 = vperm.xlu1 %4732, %v1220_v15   ;;  %1535 = vperm.xlu0 %4731, %v1219_v26   ;;  %v3468_v55 = vld [vmem:[%s5910_s16 + $0x18] sm:$0xff]  ;;  %v1054_v3 = vmul.f32 %v988_v10, %v988_v10  ;;  %v7190_v15 = vmov 0   ;;  %v1051_v26 = vmul.f32 %v985_v59, %v985_v59  ;;  %v3470_v59 = vld [vmem:[%s5910_s16 + $0x28] sm:$0xff]  ;;  %s3941_s16 = scalar_lea.hbm %s7142_s9, %s4243_s28 }
 0x119   : > { %v3478_v62 = vsel %vm3472_vm1, 1, %v7190_v15  ;;  %v1027_v10 = vmul.f32 %v961_v2, %v961_v2  ;;  %vm3474_vm3 = vcmp.gt.f32.partialorder %v3468_v55, 0.5  ;;  %v3477_v36 = vsel %vm3471_vm2, 1, %v7190_v15 }
 0x11a   : > { %v1117_v22 = vsub.f32 0.0, %v1051_v26  ;;  %v1092_v2 = vsub.f32 0.0, %v1026_v30  ;;  %vm3476_vm5 = vcmp.gt.f32.partialorder %v3470_v59, 0.5  ;;  %v987_v30 = vsub.f32 %v5948_v49, %v5850_v43 }
 0x11b   : > { %v5955_v19 = vpop.permute.xlu1 %1390  ;;  %v5957_v44 = vpop.permute.xlu0 %1385  ;;  %v1028_v55 = vmul.f32 %v962_v23, %v962_v23  ;;  %v964_v26 = vsub.f32 %v5889_v50, %v5566_v20  ;;  %v966_v43 = vsub.f32 %v5835_v48, %v5608_v32  ;;  %vm3578_vm1 = vcmask 130048  }
 0x11c   : > { %7191 = vst [vmem:[#allocation35_spill] sm:$0xff] %v5955_v19  ;;  %7192 = vst [vmem:[#allocation36_spill] sm:$0xff] %v5957_v44  ;;  %1550 = vperm.xlu1 %4732, %v1222_v13   ;;  %1545 = vperm.xlu0 %4731, %v1221_v8   ;;  %v1120_v19 = vsub.f32 0.0, %v1054_v3  ;;  %v1055_v44 = vmul.f32 %v989_v5, %v989_v5  ;;  %v5968_v13 = vmul.f32 %v5860_v63, %v1118_v4 }
 0x11d   : > { %v5971_v21 = vmul.f32 %v5862_v41, %v1117_v22  ;;  %v3480_v8 = vsel %vm3474_vm3, 1, %v7190_v15  ;;  %v1093_v3 = vsub.f32 0.0, %v1027_v10  ;;  %v3479_v63 = vsel %vm3473_vm4, 1, %v7190_v15 }
 0x11e   : > { %v5981_v5 = vmul.f32 %v5885_v35, %v1120_v19  ;;  %v965_v41 = vsub.f32 %v5852_v40, %v5610_v33  ;;  %v1029_v22 = vmul.f32 %v963_v28, %v963_v28  ;;  %v1121_v19 = vsub.f32 0.0, %v1055_v44 }
 0x11f   : > { %v5973_v42 = vpop.permute.xlu1 %816  ;;  %v5975_v27 = vpop.permute.xlu0 %811  ;;  %v1053_v37 = vmul.f32 %v987_v30, %v987_v30  ;;  %v959_v35 = vsub.f32 %v5852_v40, %v5538_v9  ;;  %v5995_v33 = vmul.f32 %v5915_v58, %v1122_v18  ;;  %v1555_v20 = vmul.f32 %v5590_v25, %v1093_v3 }
 0x120   : > { %3487 = vperm.xlu1 %4732, %v3478_v62   ;;  %3484 = vperm.xlu0 %4731, %v3477_v36   ;;  %v1554_v62 = vmul.f32 %v5556_v16, %v1092_v2  ;;  %v6005_v44 = vmul.f32 %v5917_v54, %v1121_v19  ;;  %v3482_v16 = vsel %vm3476_vm5, 1, %v7190_v15  ;;  %v1031_v9 = vmul.f32 %v965_v41, %v965_v41 }
 0x121   : > { %v1095_v4 = vsub.f32 0.0, %v1029_v22  ;;  %v1119_v58 = vsub.f32 0.0, %v1053_v37  ;;  %v1025_v34 = vmul.f32 %v959_v35, %v959_v35  ;;  %v1094_v23 = vsub.f32 0.0, %v1028_v55 }
 0x122   : > { %v1030_v36 = vmul.f32 %v964_v26, %v964_v26  ;;  %v3481_v2 = vsel %vm3475_vm6, 1, %v7190_v15  ;;  %v1621_v32 = vmul.f32 1.442695, %v1554_v62  ;;  %v967_v25 = vsub.f32 %v5875_v31, %v5648_v47 }
 0x123   : > { %v5997_v28 = vpop.permute.xlu1 %1400  ;;  %v5999_v10 = vpop.permute.xlu0 %1395  ;;  %v6014_v54 = vmul.f32 %v5887_v7, %v1119_v58  ;;  %v1623_v41 = vmul.f32 1.442695, %v1555_v20  ;;  %v1097_v22 = vsub.f32 0.0, %v1031_v9  ;;  %v1557_v18 = vmul.f32 %v5627_v39, %v1095_v4 }
 0x124   : > { %3493 = vperm.xlu1 %4732, %v3480_v8   ;;  %3490 = vperm.xlu0 %4731, %v3479_v63   ;;  %v1091_v8 = vsub.f32 0.0, %v1025_v34  ;;  %v1032_v63 = vmul.f32 %v966_v43, %v966_v43  ;;  %v968_v47 = vsub.f32 %v5864_v51, %v5646_v46  ;;  %v1556_v7 = vmul.f32 %v5588_v24, %v1094_v23 }
 0x125   : > { %v1096_v12 = vsub.f32 0.0, %v1030_v36  ;;  %4733 = vpow2.f32 %v1621_v32  ;;  %v1033_v30 = vmul.f32 %v967_v25, %v967_v25  ;;  %v969_v55 = vsub.f32 %v5948_v49, %v5677_v57 }
 0x126   : > { %v1553_v15 = vmul.f32 %v5558_v17, %v1091_v8  ;;  %v971_v17 = vsub.f32 %v5852_v40, %v5697_v1  ;;  %4735 = vpow2.f32 %v1623_v41  ;;  %v1098_v39 = vsub.f32 0.0, %v1032_v63 }
 0x127   : > { %v6016_v59 = vpop.permute.xlu1 %826  ;;  %v6018_v3 = vpop.permute.xlu0 %821  ;;  %v1559_v46 = vmul.f32 %v5665_v53, %v1097_v22  ;;  %v1627_v37 = vmul.f32 1.442695, %v1557_v18  ;;  %v1034_v24 = vmul.f32 %v968_v47, %v968_v47  ;;  %v1625_v35 = vmul.f32 1.442695, %v1556_v7 }
 0x128   : > { %3499 = vperm.xlu1 %4732, %v3482_v16   ;;  %3496 = vperm.xlu0 %4731, %v3481_v2   ;;  %v1619_v26 = vmul.f32 1.442695, %v1553_v15  ;;  %v970_v43 = vsub.f32 %v5889_v50, %v5675_v56  ;;  %v1558_v57 = vmul.f32 %v5625_v38, %v1096_v12  ;;  %v1099_v20 = vsub.f32 0.0, %v1033_v30 }
 0x129   : > { %v1035_v16 = vmul.f32 %v969_v55, %v969_v55  ;;  %v972_v1 = vsub.f32 %v5835_v48, %v5695_v0  ;;  %v1560_v53 = vmul.f32 %v5663_v52, %v1098_v39  ;;  %v1037_v58 = vmul.f32 %v971_v17, %v971_v17 }
 0x12a   : > { %4737 = vpow2.f32 %v1619_v26  ;;  %v1631_v34 = vmul.f32 1.442695, %v1559_v46  ;;  %v1100_v23 = vsub.f32 0.0, %v1034_v24  ;;  %v1036_v36 = vmul.f32 %v970_v43, %v970_v43  ;;  %v7195_v24 = vld [vmem:[#allocation11_spill] sm:$0xff] }
 0x12b   : > { %v6027_v19 = vpop.permute.xlu1 %1410  ;;  %v6029_v62 = vpop.permute.xlu0 %1405  ;;  %4739 = vpow2.f32 %v1627_v37  ;;  %v1629_v56 = vmul.f32 1.442695, %v1558_v57  ;;  %v973_v38 = vsub.f32 %v5875_v31, %v5717_v14  ;;  %v1561_v2 = vmul.f32 %v5687_v61, %v1099_v20 }
 0x12c   : > { %4741 = vpow2.f32 %v1625_v35  ;;  %v1101_v32 = vsub.f32 0.0, %v1035_v16  ;;  %v1038_v0 = vmul.f32 %v972_v1, %v972_v1  ;;  %v1633_v41 = vmul.f32 1.442695, %v1560_v53  ;;  %v7196_v1 = vld [vmem:[#allocation17_spill] sm:$0xff] }
 0x12d   : > { %v1103_v52 = vsub.f32 0.0, %v1037_v58  ;;  %4743 = vpow2.f32 %v1631_v34  ;;  %v974_v63 = vsub.f32 %v5864_v51, %v5715_v11  ;;  %v1562_v22 = vmul.f32 %v5685_v60, %v1100_v23  ;;  %v7193_v11 = vld [vmem:[#allocation13_spill] sm:$0xff]  ;;  %v7197_v58 = vld [vmem:[#allocation12_spill] sm:$0xff] }
 0x12e   : > { %v1102_v18 = vsub.f32 0.0, %v1036_v36  ;;  %4745 = vpow2.f32 %v1629_v56  ;;  %v1039_v15 = vmul.f32 %v973_v38, %v973_v38  ;;  %v1635_v14 = vmul.f32 1.442695, %v1561_v2 }
 0x12f   : > { %v6037_v9 = vpop.permute.xlu1 %836  ;;  %v6039_v4 = vpop.permute.xlu0 %831  ;;  %v975_v61 = vsub.f32 %v5948_v49, %v5737_v29  ;;  %v1563_v47 = vmul.f32 %v5707_v6, %v1101_v32  ;;  %v1104_v26 = vsub.f32 0.0, %v1038_v0  ;;  %4747 = vpow2.f32 %v1633_v41  ;;  %v7194_v29 = vld [vmem:[#allocation14_spill] sm:$0xff]  ;;  %v7198_v0 = vld [vmem:[#allocation5_spill] sm:$0xff] }
 0x130   : > { %v977_v60 = vsub.f32 %v5852_v40, %v5757_v45  ;;  %v1565_v17 = vmul.f32 %v7193_v11, %v1103_v52  ;;  %v1040_v46 = vmul.f32 %v974_v63, %v974_v63  ;;  %v1637_v37 = vmul.f32 1.442695, %v1562_v22  ;;  %v7199_v52 = vld [vmem:[#allocation21_spill] sm:$0xff]  ;;  %v7200_v22 = vld [vmem:[#allocation16_spill] sm:$0xff] }
 0x131   : > { %v976_v6 = vsub.f32 %v5889_v50, %v7194_v29  ;;  %v1564_v35 = vmul.f32 %v7195_v24, %v1102_v18  ;;  %v1105_v43 = vsub.f32 0.0, %v1039_v15  ;;  %4749 = vpow2.f32 %v1635_v14  ;;  %v7202_v11 = vld [vmem:[#allocation20_spill] sm:$0xff] }
 0x132   : > { %v4734_v30 = vpop.eup %4733  ;;  %v1041_v57 = vmul.f32 %v975_v61, %v975_v61  ;;  %v1639_v20 = vmul.f32 1.442695, %v1563_v47  ;;  %v978_v53 = vsub.f32 %v5835_v48, %v7196_v1  ;;  %v1566_v34 = vmul.f32 %v7197_v58, %v1104_v26  ;;  %v7201_v47 = vld [vmem:[#allocation6_spill] sm:$0xff]  ;;  %v7206_v58 = vld [vmem:[#allocation7_spill] sm:$0xff] }
 0x133   : > { %v6047_v25 = vpop.permute.xlu1 %1420  ;;  %v6049_v8 = vpop.permute.xlu0 %1415  ;;  %v1043_v23 = vmul.f32 %v977_v60, %v977_v60  ;;  %v1643_v36 = vmul.f32 1.442695, %v1565_v17  ;;  %v1106_v38 = vsub.f32 0.0, %v1040_v46  ;;  %4751 = vpow2.f32 %v1637_v37 }
 0x134   : > { %v4736_v55 = vpop.eup %4735  ;;  %v1042_v2 = vmul.f32 %v976_v6, %v976_v6  ;;  %v1641_v32 = vmul.f32 1.442695, %v1564_v35  ;;  %v979_v63 = vsub.f32 %v5875_v31, %v7199_v52  ;;  %v1567_v18 = vmul.f32 %v7200_v22, %v1105_v43  ;;  %v7204_v35 = vld [vmem:[#allocation24_spill] sm:$0xff] }
 0x135   : > { %v1107_v15 = vsub.f32 0.0, %v1041_v57  ;;  %4753 = vpow2.f32 %v1639_v20  ;;  %v1109_v26 = vsub.f32 0.0, %v1043_v23  ;;  %v980_v17 = vsub.f32 %v5864_v51, %v7202_v11  ;;  %v7205_v57 = vld [vmem:[#allocation19_spill] sm:$0xff] }
 0x136   : > { %4755 = vpow2.f32 %v1643_v36  ;;  %v1108_v37 = vsub.f32 0.0, %v1042_v2  ;;  %v1045_v6 = vmul.f32 %v979_v63, %v979_v63  ;;  %v1647_v24 = vmul.f32 1.442695, %v1567_v18  ;;  %v7207_v23 = vld [vmem:[#allocation23_spill] sm:$0xff] }
 0x137   : > { %v6057_v7 = vpop.permute.xlu1 %846  ;;  %v6059_v12 = vpop.permute.xlu0 %841  ;;  %4757 = vpow2.f32 %v1641_v32  ;;  %v981_v43 = vsub.f32 %v5948_v49, %v7204_v35  ;;  %v1569_v20 = vmul.f32 %v7205_v57, %v1107_v15  ;;  %v1571_v36 = vmul.f32 %v7207_v23, %v1109_v26  ;;  %v7208_v32 = vld [vmem:[#allocation18_spill] sm:$0xff]  ;;  %v7209_v15 = vld [vmem:[#allocation8_spill] sm:$0xff] }
 0x138   : > { %v4738_v39 = vpop.eup %4737 }
 0x139   : > { %4444 = vmatprep.mubr.msk.f32.mxu1 %vm1757_vm7, %v4738_v39  ;;  %4555 = vmatprep.mubr.msk.f32.mxu0 %vm1757_vm7, %v4738_v39  ;;  %v4740_v56 = vpop.eup %4739  ;;  %v7203_v39 = vld [vmem:[#allocation15_spill] sm:$0xff]  ;;  %v1047_v52 = vmul.f32 %v981_v43, %v981_v43  ;;  %v1651_v63 = vmul.f32 1.442695, %v1569_v20  ;;  %v7213_v20 = vld [vmem:[#allocation25_spill] sm:$0xff] }
 0x13a   : > { %4445 = vmatmul.mubr.msk.f32.vlgmr.msra.gmra.mxu1 %vm1757_vm7, %v4734_v30  ;;  %4556 = vmatmul.mubr.msk.f32.vlgmr.msra.gmra.mxu0 %vm1757_vm7, %v4734_v30  ;;  %v4742_v41 = vpop.eup %4741  ;;  %v1044_v30 = vmul.f32 %v978_v53, %v978_v53  ;;  %v1568_v46 = vmul.f32 %v7203_v39, %v1106_v38  ;;  %v1046_v38 = vmul.f32 %v980_v17, %v980_v17  ;;  %v1655_v17 = vmul.f32 1.442695, %v1571_v36  ;;  %v7211_v39 = vld [vmem:[#allocation26_spill] sm:$0xff]  ;;  %v7214_v36 = vld [vmem:[#allocation27_spill] sm:$0xff] }
 0x13b   : > { %v6069_v16 = vpop.permute.xlu1 %1430  ;;  %v6071_v45 = vpop.permute.xlu0 %1425  ;;  %4447 = vmatprep.mubr.msk.f32.mxu1 %vm1757_vm7, %v4736_v55  ;;  %4558 = vmatprep.mubr.msk.f32.mxu0 %vm1757_vm7, %v4736_v55  ;;  %v1645_v55 = vmul.f32 1.442695, %v1566_v34 }
 0x13c   : > { %4681 = vmatpush3.msra.mxu1 %v7198_v0  ;;  %v4744_v60 = vpop.eup %4743  ;;  %v1110_v34 = vsub.f32 0.0, %v1044_v30  ;;  %v1649_v2 = vmul.f32 1.442695, %v1568_v46  ;;  %v1570_v0 = vmul.f32 %v7208_v32, %v1108_v37  ;;  %v7210_v30 = vld [vmem:[#allocation22_spill] sm:$0xff]  ;;  %v1112_v26 = vsub.f32 0.0, %v1046_v38 }
 0x13d   : > { %4676 = vmatprep.subr.mxu1 %v7201_v47  ;;  %v4746_v29 = vpop.eup %4745  ;;  %4759 = vpow2.f32 %v1645_v55  ;;  %v1113_v37 = vsub.f32 0.0, %v1047_v52  ;;  %v7215_v32 = vld [vmem:[#allocation10_spill] sm:$0xff] }
 0x13e   : > { %4448 = vmatmul.mubr.msk.f32.gmra.mxu1 %vm1757_vm7, %v4742_v41  ;;  %4559 = vmatmul.mubr.msk.f32.gmra.mxu0 %vm1757_vm7, %v4742_v41  ;;  %v1111_v41 = vsub.f32 0.0, %v1045_v6  ;;  %4761 = vpow2.f32 %v1647_v24  ;;  %v1572_v55 = vmul.f32 %v7210_v30, %v1110_v34  ;;  %v7212_v24 = vld [vmem:[#allocation9_spill] sm:$0xff]  ;;  %v7216_v30 = vld [vmem:[#allocation32_spill] sm:$0xff] }
 0x13f   : > { %v6084_v14 = vpop.permute.xlu1 %856  ;;  %v6086_v61 = vpop.permute.xlu0 %851  ;;  %4450 = vmatprep.mubr.msk.f32.mxu1 %vm1757_vm7, %v4740_v56  ;;  %4561 = vmatprep.mubr.msk.f32.mxu0 %vm1757_vm7, %v4740_v56  ;;  %4763 = vpow2.f32 %v1649_v2 }
 0x140   : > { %4682 = vmatpush3.msra.mxu1 %v7201_v47  ;;  %v4748_v56 = vpop.eup %4747  ;;  %v1573_v46 = vmul.f32 %v7211_v39, %v1111_v41  ;;  %4765 = vpow2.f32 %v1651_v63  ;;  %v1657_v57 = vmul.f32 1.442695, %v1572_v55  ;;  %v1665_v55 = vmul.f32 1.442695, %v7216_v30  ;;  %v7222_v30 = vld [vmem:[#allocation33_spill] sm:$0xff] }
 0x141   : > { %4677 = vmatprep.subr.mxu1 %v7206_v58  ;;  %v4750_v47 = vpop.eup %4749 }
 0x142   : > { %4451 = vmatmul.mubr.msk.f32.gmra.mxu1 %vm1757_vm7, %v4746_v29  ;;  %4562 = vmatmul.mubr.msk.f32.gmra.mxu0 %vm1757_vm7, %v4746_v29  ;;  %v4752_v11 = vpop.eup %4751  ;;  %v1659_v23 = vmul.f32 1.442695, %v1573_v46 }
 0x143   : > { %v6100_v1 = vpop.permute.xlu1 %1440  ;;  %v6102_v53 = vpop.permute.xlu0 %1435  ;;  %4453 = vmatprep.mubr.msk.f32.mxu1 %vm1757_vm7, %v4744_v60  ;;  %4564 = vmatprep.mubr.msk.f32.mxu0 %vm1757_vm7, %v4744_v60  ;;  %v1653_v60 = vmul.f32 1.442695, %v1570_v0 }
 0x144   : > { %4683 = vmatpush3.msra.mxu1 %v7206_v58  ;;  %v4754_v35 = vpop.eup %4753  ;;  %v1574_v58 = vmul.f32 %v7213_v20, %v1112_v26  ;;  %v1671_v20 = vmul.f32 1.442695, %v5971_v21  ;;  %v1673_v21 = vmul.f32 1.442695, %v5968_v13  ;;  %v1677_v13 = vmul.f32 1.442695, %v5981_v5 }
 0x145   : > { %4678 = vmatprep.subr.mxu1 %v7209_v15  ;;  %v4756_v43 = vpop.eup %4755  ;;  %4767 = vpow2.f32 %v1653_v60  ;;  %v7217_v60 = vld [vmem:[#allocation29_spill] sm:$0xff] }
 0x146   : > { %4454 = vmatmul.mubr.msk.f32.gmra.mxu1 %vm1757_vm7, %v4748_v56  ;;  %4565 = vmatmul.mubr.msk.f32.gmra.mxu0 %vm1757_vm7, %v4748_v56  ;;  %v4758_v34 = vpop.eup %4757  ;;  %4769 = vpow2.f32 %v1655_v17  ;;  %v1575_v56 = vmul.f32 %v7214_v36, %v1113_v37  ;;  %v1661_v0 = vmul.f32 1.442695, %v1574_v58  ;;  %v7218_v37 = vld [vmem:[#allocation31_spill] sm:$0xff]  ;;  %v7220_v36 = vld [vmem:[#allocation30_spill] sm:$0xff] }
 0x147   : > { %v6112_v22 = vpop.permute.xlu1 %866  ;;  %v6114_v18 = vpop.permute.xlu0 %861  ;;  %4456 = vmatprep.mubr.msk.f32.mxu1 %vm1757_vm7, %v4750_v47  ;;  %4567 = vmatprep.mubr.msk.f32.mxu0 %vm1757_vm7, %v4750_v47  ;;  %4771 = vpow2.f32 %v1657_v57 }
 0x148   : > { %4684 = vmatpush3.msra.mxu1 %v7209_v15  ;;  %4773 = vpow2.f32 %v1659_v23  ;;  %v1663_v52 = vmul.f32 1.442695, %v1575_v56  ;;  %v992_v56 = vsub.f32 %v5864_v51, %v7220_v36 }
 0x149   : > { %4679 = vmatprep.subr.mxu1 %v7212_v24  ;;  %4775 = vpow2.f32 %v1661_v0  ;;  %v7221_v0 = vld [vmem:[#allocation34_spill] sm:$0xff] }
 0x14a   : > { %4457 = vmatmul.mubr.msk.f32.gmra.mxu1 %vm1757_vm7, %v4752_v11  ;;  %4568 = vmatmul.mubr.msk.f32.gmra.mxu0 %vm1757_vm7, %v4752_v11  ;;  %v4760_v41 = vpop.eup %4759  ;;  %v1667_v11 = vmul.f32 1.442695, %v7217_v60  ;;  %4777 = vpow2.f32 %v1663_v52 }
 0x14b   : > { %v6124_v29 = vpop.permute.xlu1 %1450  ;;  %v6126_v6 = vpop.permute.xlu0 %1445  ;;  %4459 = vmatprep.mubr.msk.f32.mxu1 %vm1757_vm7, %v4754_v35  ;;  %4570 = vmatprep.mubr.msk.f32.mxu0 %vm1757_vm7, %v4754_v35  ;;  %v7219_v35 = vld [vmem:[#allocation28_spill] sm:$0xff]  ;;  %4779 = vpow2.f32 %v1665_v55  ;;  %v994_v55 = vsub.f32 %v5889_v50, %v7222_v30 }
 0x14c   : > { %4685 = vmatpush3.msra.mxu1 %v7212_v24  ;;  %v4762_v47 = vpop.eup %4761  ;;  %v991_v24 = vsub.f32 %v5875_v31, %v7218_v37  ;;  %4781 = vpow2.f32 %v1667_v11  ;;  %v995_v37 = vsub.f32 %v5852_v40, %v5975_v27 }
 0x14d   : > { %4680 = vmatprep.subr.mxu1 %v7215_v32  ;;  %v4764_v26 = vpop.eup %4763 }
 0x14e   : > { %4460 = vmatmul.mubr.msk.f32.gmra.mxu1 %vm1757_vm7, %v4758_v34  ;;  %4571 = vmatmul.mubr.msk.f32.gmra.mxu0 %vm1757_vm7, %v4758_v34  ;;  %v4766_v46 = vpop.eup %4765 }
 0x14f   : > { %v6136_v38 = vpop.permute.xlu1 %876  ;;  %v6138_v2 = vpop.permute.xlu0 %871  ;;  %4462 = vmatprep.mubr.msk.f32.mxu1 %vm1757_vm7, %v4756_v43  ;;  %4573 = vmatprep.mubr.msk.f32.mxu0 %vm1757_vm7, %v4756_v43  ;;  %v1669_v43 = vmul.f32 1.442695, %v7219_v35  ;;  %v1679_v35 = vmul.f32 1.442695, %v6005_v44 }
 0x150   : > { %4686 = vmatpush3.msra.mxu1 %v7215_v32  ;;  %v1057_v32 = vmul.f32 %v991_v24, %v991_v24 }
 0x151   : > { %4783 = vpow2.f32 %v1669_v43 }
 0x152   : > { %4463 = vmatmul.mubr.msk.f32.gmra.mxu1 %vm1757_vm7, %v4760_v41  ;;  %4574 = vmatmul.mubr.msk.f32.gmra.mxu0 %vm1757_vm7, %v4760_v41  ;;  %v4768_v57 = vpop.eup %4767  ;;  %v993_v41 = vsub.f32 %v5948_v49, %v7221_v0  ;;  %4785 = vpow2.f32 %v1671_v20  ;;  %v1123_v24 = vsub.f32 0.0, %v1057_v32  ;;  %v7223_v20 = vld [vmem:[#allocation36_spill] sm:$0xff]  ;;  %v1061_v0 = vmul.f32 %v995_v37, %v995_v37 }
 0x153   : > { %v6146_v63 = vpop.permute.xlu1 %1460  ;;  %v6148_v15 = vpop.permute.xlu0 %1455  ;;  %4465 = vmatprep.mubr.msk.f32.mxu1 %vm1757_vm7, %v4762_v47  ;;  %4576 = vmatprep.mubr.msk.f32.mxu0 %vm1757_vm7, %v4762_v47  ;;  %v1675_v47 = vmul.f32 1.442695, %v6014_v54  ;;  %4787 = vpow2.f32 %v1673_v21  ;;  %v7224_v21 = vld [vmem:[#allocation35_spill] sm:$0xff] }
 0x154   : > { %v4770_v23 = vpop.eup %4769  ;;  %v1059_v54 = vmul.f32 %v993_v41, %v993_v41  ;;  %v1585_v27 = vmul.f32 %v7223_v20, %v1123_v24  ;;  %v997_v41 = vsub.f32 %v5875_v31, %v6018_v3  ;;  %v1127_v24 = vsub.f32 0.0, %v1061_v0 }
 0x155   : > { %v4772_v52 = vpop.eup %4771  ;;  %4789 = vpow2.f32 %v1675_v47 }
 0x156   : > { %4466 = vmatmul.mubr.msk.f32.gmra.mxu1 %vm1757_vm7, %v4764_v26  ;;  %4577 = vmatmul.mubr.msk.f32.gmra.mxu0 %vm1757_vm7, %v4764_v26  ;;  %v4774_v11 = vpop.eup %4773  ;;  %4791 = vpow2.f32 %v1677_v13  ;;  %v1125_v44 = vsub.f32 0.0, %v1059_v54  ;;  %v998_v54 = vsub.f32 %v5864_v51, %v6016_v59 }
 0x157   : > { %v6156_v17 = vpop.permute.xlu1 %886  ;;  %v6158_v39 = vpop.permute.xlu0 %881  ;;  %4468 = vmatprep.mubr.msk.f32.mxu1 %vm1757_vm7, %v4766_v46  ;;  %4579 = vmatprep.mubr.msk.f32.mxu0 %vm1757_vm7, %v4766_v46  ;;  %v1058_v46 = vmul.f32 %v992_v56, %v992_v56  ;;  %4793 = vpow2.f32 %v1679_v35  ;;  %v999_v35 = vsub.f32 %v5948_v49, %v6039_v4 }
 0x158   : > { %v4776_v43 = vpop.eup %4775  ;;  %v1587_v3 = vmul.f32 %v5999_v10, %v1125_v44 }
 0x159   : > { %v4778_v56 = vpop.eup %4777  ;;  %v1124_v32 = vsub.f32 0.0, %v1058_v46 }
 0x15a   : > { %4469 = vmatmul.mubr.msk.f32.gmra.mxu1 %vm1757_vm7, %v4768_v57  ;;  %4580 = vmatmul.mubr.msk.f32.gmra.mxu0 %vm1757_vm7, %v4768_v57  ;;  %v1060_v57 = vmul.f32 %v994_v55, %v994_v55  ;;  %v4780_v47 = vpop.eup %4779  ;;  %v1683_v55 = vmul.f32 1.442695, %v1585_v27  ;;  %v1687_v27 = vmul.f32 1.442695, %v1587_v3 }
 0x15b   : > { %v6168_v58 = vpop.permute.xlu1 %1470  ;;  %v6170_v34 = vpop.permute.xlu0 %1465  ;;  %4471 = vmatprep.mubr.msk.f32.mxu1 %vm1757_vm7, %v4770_v23  ;;  %4582 = vmatprep.mubr.msk.f32.mxu0 %vm1757_vm7, %v4770_v23  ;;  %v996_v23 = vsub.f32 %v5835_v48, %v5973_v42  ;;  %v1681_v42 = vmul.f32 1.442695, %v5995_v33 }
 0x15c   : > { %v1126_v30 = vsub.f32 0.0, %v1060_v57  ;;  %v4782_v13 = vpop.eup %4781  ;;  %v1589_v57 = vmul.f32 %v6029_v62, %v1127_v24 }
 0x15d   : > { %4795 = vpow2.f32 %v1681_v42  ;;  %v1065_v42 = vmul.f32 %v999_v35, %v999_v35 }
 0x15e   : > { %4472 = vmatmul.mubr.msk.f32.gmra.mxu1 %vm1757_vm7, %v4772_v52  ;;  %4583 = vmatmul.mubr.msk.f32.gmra.mxu0 %vm1757_vm7, %v4772_v52  ;;  %v1586_v52 = vmul.f32 %v7224_v21, %v1124_v32  ;;  %v1588_v33 = vmul.f32 %v5997_v28, %v1126_v30  ;;  %v4784_v20 = vpop.eup %4783  ;;  %4797 = vpow2.f32 %v1683_v55  ;;  %v1064_v32 = vmul.f32 %v998_v54, %v998_v54 }
 0x15f   : > { %v6184_v26 = vpop.permute.xlu1 %896  ;;  %v6186_v60 = vpop.permute.xlu0 %891  ;;  %4474 = vmatprep.mubr.msk.f32.mxu1 %vm1757_vm7, %v4774_v11  ;;  %4585 = vmatprep.mubr.msk.f32.mxu0 %vm1757_vm7, %v4774_v11  ;;  %v1062_v11 = vmul.f32 %v996_v23, %v996_v23  ;;  %v1000_v23 = vsub.f32 %v5889_v50, %v6037_v9  ;;  %v1691_v9 = vmul.f32 1.442695, %v1589_v57  ;;  %v1131_v24 = vsub.f32 0.0, %v1065_v42 }
 0x160   : > { %v1685_v10 = vmul.f32 1.442695, %v1586_v52  ;;  %v4786_v4 = vpop.eup %4785  ;;  %v1689_v62 = vmul.f32 1.442695, %v1588_v33  ;;  %v1004_v57 = vsub.f32 %v5864_v51, %v6084_v14 }
 0x161   : > { %v1128_v59 = vsub.f32 0.0, %v1062_v11  ;;  %v4788_v52 = vpop.eup %4787  ;;  %v1130_v11 = vsub.f32 0.0, %v1064_v32  ;;  %v1006_v32 = vsub.f32 %v5889_v50, %v6112_v22 }
 0x162   : > { %4475 = vmatmul.mubr.msk.f32.gmra.mxu1 %vm1757_vm7, %v4776_v43  ;;  %4586 = vmatmul.mubr.msk.f32.gmra.mxu0 %vm1757_vm7, %v4776_v43  ;;  %v1063_v43 = vmul.f32 %v997_v41, %v997_v41  ;;  %v1001_v41 = vsub.f32 %v5852_v40, %v6059_v12  ;;  %4799 = vpow2.f32 %v1685_v10  ;;  %v1002_v12 = vsub.f32 %v5835_v48, %v6057_v7 }
 0x163   : > { %v6199_v36 = vpop.permute.xlu1 %1480  ;;  %v6201_v5 = vpop.permute.xlu0 %1475  ;;  %4477 = vmatprep.mubr.msk.f32.mxu1 %vm1757_vm7, %v4778_v56  ;;  %4588 = vmatprep.mubr.msk.f32.mxu0 %vm1757_vm7, %v4778_v56  ;;  %v1590_v44 = vmul.f32 %v6027_v19, %v1128_v59  ;;  %4801 = vpow2.f32 %v1687_v27  ;;  %v1592_v54 = vmul.f32 %v6047_v25, %v1130_v11 }
 0x164   : > { %v1129_v0 = vsub.f32 0.0, %v1063_v43  ;;  %v4790_v19 = vpop.eup %4789  ;;  %v1067_v3 = vmul.f32 %v1001_v41, %v1001_v41  ;;  %4803 = vpow2.f32 %v1689_v62  ;;  %v1068_v10 = vmul.f32 %v1002_v12, %v1002_v12 }
 0x165   : > { %v4792_v7 = vpop.eup %4791  ;;  %4805 = vpow2.f32 %v1691_v9 }
 0x166   : > { %4478 = vmatmul.mubr.msk.f32.gmra.mxu1 %vm1757_vm7, %v4780_v47  ;;  %4589 = vmatmul.mubr.msk.f32.gmra.mxu0 %vm1757_vm7, %v4780_v47  ;;  %v1591_v21 = vmul.f32 %v6049_v8, %v1129_v0  ;;  %v1066_v47 = vmul.f32 %v1000_v23, %v1000_v23  ;;  %v1693_v8 = vmul.f32 1.442695, %v1590_v44  ;;  %v4794_v33 = vpop.eup %4793  ;;  %v1133_v27 = vsub.f32 0.0, %v1067_v3 }
 0x167   : > { %v6212_v46 = vpop.permute.xlu1 %906  ;;  %v6214_v37 = vpop.permute.xlu0 %901  ;;  %4480 = vmatprep.mubr.msk.f32.mxu1 %vm1757_vm7, %v4782_v13  ;;  %4591 = vmatprep.mubr.msk.f32.mxu0 %vm1757_vm7, %v4782_v13  ;;  %v1003_v13 = vsub.f32 %v5875_v31, %v6086_v61  ;;  %v1593_v61 = vmul.f32 %v6071_v45, %v1131_v24  ;;  %v1697_v45 = vmul.f32 1.442695, %v1592_v54  ;;  %v1134_v41 = vsub.f32 0.0, %v1068_v10 }
 0x168   : > { %v1695_v43 = vmul.f32 1.442695, %v1591_v21  ;;  %v1132_v35 = vsub.f32 0.0, %v1066_v47  ;;  %4807 = vpow2.f32 %v1693_v8  ;;  %v1595_v14 = vmul.f32 %v6102_v53, %v1133_v27 }
 0x169   : > { %v1069_v23 = vmul.f32 %v1003_v13, %v1003_v13  ;;  %v1699_v62 = vmul.f32 1.442695, %v1593_v61  ;;  %v1070_v44 = vmul.f32 %v1004_v57, %v1004_v57  ;;  %v1596_v22 = vmul.f32 %v6100_v1, %v1134_v41 }
 0x16a   : > { %4481 = vmatmul.mubr.msk.f32.gmra.mxu1 %vm1757_vm7, %v4784_v20  ;;  %4592 = vmatmul.mubr.msk.f32.gmra.mxu0 %vm1757_vm7, %v4784_v20  ;;  %v1594_v25 = vmul.f32 %v6069_v16, %v1132_v35  ;;  %4809 = vpow2.f32 %v1695_v43  ;;  %v4796_v0 = vpop.eup %4795  ;;  %v1007_v16 = vsub.f32 %v5852_v40, %v6138_v2  ;;  %v1703_v2 = vmul.f32 1.442695, %v1595_v14 }
 0x16b   : > { %v6228_v56 = vpop.permute.xlu1 %1490  ;;  %v6230_v28 = vpop.permute.xlu0 %1485  ;;  %4483 = vmatprep.mubr.msk.f32.mxu1 %vm1757_vm7, %v4786_v4  ;;  %4594 = vmatprep.mubr.msk.f32.mxu0 %vm1757_vm7, %v4786_v4  ;;  %v1005_v4 = vsub.f32 %v5948_v49, %v6114_v18  ;;  %v1135_v9 = vsub.f32 0.0, %v1069_v23  ;;  %4811 = vpow2.f32 %v1697_v45  ;;  %v1072_v47 = vmul.f32 %v1006_v32, %v1006_v32 }
 0x16c   : > { %v4798_v18 = vpop.eup %4797  ;;  %v1701_v53 = vmul.f32 1.442695, %v1594_v25  ;;  %4813 = vpow2.f32 %v1699_v62  ;;  %v1136_v11 = vsub.f32 0.0, %v1070_v44  ;;  %v1073_v3 = vmul.f32 %v1007_v16, %v1007_v16 }
 0x16d   : > { %v1597_v12 = vmul.f32 %v6126_v6, %v1135_v9  ;;  %v1009_v13 = vsub.f32 %v5875_v31, %v6158_v39  ;;  %v1008_v24 = vsub.f32 %v5835_v48, %v6136_v38  ;;  %v1705_v6 = vmul.f32 1.442695, %v1596_v22 }
 0x16e   : > { %4484 = vmatmul.mubr.msk.f32.gmra.mxu1 %vm1757_vm7, %v4788_v52  ;;  %4595 = vmatmul.mubr.msk.f32.gmra.mxu0 %vm1757_vm7, %v4788_v52  ;;  %v1071_v52 = vmul.f32 %v1005_v4, %v1005_v4  ;;  %4815 = vpow2.f32 %v1701_v53  ;;  %v1598_v43 = vmul.f32 %v6124_v29, %v1136_v11  ;;  %v1010_v38 = vsub.f32 %v5864_v51, %v6156_v17 }
 0x16f   : > { %v6242_v30 = vpop.permute.xlu1 %916  ;;  %v6244_v55 = vpop.permute.xlu0 %911  ;;  %4486 = vmatprep.mubr.msk.f32.mxu1 %vm1757_vm7, %v4790_v19  ;;  %4597 = vmatprep.mubr.msk.f32.mxu0 %vm1757_vm7, %v4790_v19  ;;  %4817 = vpow2.f32 %v1703_v2  ;;  %v1707_v35 = vmul.f32 1.442695, %v1597_v12  ;;  %v1139_v61 = vsub.f32 0.0, %v1073_v3  ;;  %v1075_v27 = vmul.f32 %v1009_v13, %v1009_v13 }
 0x170   : > { %v4800_v19 = vpop.eup %4799  ;;  %v1137_v54 = vsub.f32 0.0, %v1071_v52  ;;  %v1011_v23 = vsub.f32 %v5948_v49, %v6186_v60  ;;  %v1074_v25 = vmul.f32 %v1008_v24, %v1008_v24  ;;  %4819 = vpow2.f32 %v1705_v6 }
 0x171   : > { %v4802_v1 = vpop.eup %4801  ;;  %v1709_v17 = vmul.f32 1.442695, %v1598_v43  ;;  %4821 = vpow2.f32 %v1707_v35  ;;  %v1076_v14 = vmul.f32 %v1010_v38, %v1010_v38  ;;  %v1141_v41 = vsub.f32 0.0, %v1075_v27 }
 0x172   : > { %4487 = vmatmul.mubr.msk.f32.gmra.mxu1 %vm1757_vm7, %v4792_v7  ;;  %4598 = vmatmul.mubr.msk.f32.gmra.mxu0 %vm1757_vm7, %v4792_v7  ;;  %v4804_v39 = vpop.eup %4803  ;;  %v1599_v57 = vmul.f32 %v6148_v15, %v1137_v54  ;;  %v1601_v15 = vmul.f32 %v6170_v34, %v1139_v61  ;;  %v1077_v62 = vmul.f32 %v1011_v23, %v1011_v23 }
 0x173   : > { %v6256_v20 = vpop.permute.xlu1 %1500  ;;  %v6258_v59 = vpop.permute.xlu0 %1495  ;;  %4489 = vmatprep.mubr.msk.f32.mxu1 %vm1757_vm7, %v4794_v33  ;;  %4600 = vmatprep.mubr.msk.f32.mxu0 %vm1757_vm7, %v4794_v33  ;;  %v1138_v33 = vsub.f32 0.0, %v1072_v47  ;;  %v1013_v44 = vsub.f32 %v5852_v40, %v6214_v37  ;;  %4823 = vpow2.f32 %v1709_v17  ;;  %v1142_v22 = vsub.f32 0.0, %v1076_v14 }
 0x174   : > { %v4806_v10 = vpop.eup %4805  ;;  %v1715_v53 = vmul.f32 1.442695, %v1601_v15  ;;  %v1014_v2 = vsub.f32 %v5835_v48, %v6212_v46  ;;  %v1143_v12 = vsub.f32 0.0, %v1077_v62  ;;  %v1015_v11 = vsub.f32 %v5875_v31, %v6244_v55 }
 0x175   : > { %v1600_v4 = vmul.f32 %v6146_v63, %v1138_v33  ;;  %v4808_v60 = vpop.eup %4807  ;;  %v1012_v63 = vsub.f32 %v5889_v50, %v6184_v26  ;;  %v1603_v26 = vmul.f32 %v6201_v5, %v1141_v41  ;;  %v1604_v5 = vmul.f32 %v6199_v36, %v1142_v22 }
 0x176   : > { %4490 = vmatmul.mubr.msk.f32.gmra.mxu1 %vm1757_vm7, %v4796_v0  ;;  %4601 = vmatmul.mubr.msk.f32.gmra.mxu0 %vm1757_vm7, %v4796_v0  ;;  %v1711_v0 = vmul.f32 1.442695, %v1599_v57  ;;  %v1605_v13 = vmul.f32 %v6230_v28, %v1143_v12  ;;  %v1080_v54 = vmul.f32 %v1014_v2, %v1014_v2  ;;  %v1016_v43 = vsub.f32 %v5864_v51, %v6242_v30 }
 0x177   : > { %v6272_v42 = vpop.permute.xlu1 %926  ;;  %v6276_v21 = vpop.permute.xlu0 %921  ;;  %4492 = vmatprep.mubr.msk.f32.mxu1 %vm1757_vm7, %v4798_v18  ;;  %4603 = vmatprep.mubr.msk.f32.mxu0 %vm1757_vm7, %v4798_v18  ;;  %v1140_v18 = vsub.f32 0.0, %v1074_v25  ;;  %v1713_v9 = vmul.f32 1.442695, %v1600_v4  ;;  %v1078_v52 = vmul.f32 %v1012_v63, %v1012_v63  ;;  %v1719_v46 = vmul.f32 1.442695, %v1603_v26 }
 0x178   : > { %v4810_v32 = vpop.eup %4809  ;;  %4825 = vpow2.f32 %v1711_v0  ;;  %v1081_v33 = vmul.f32 %v1015_v11, %v1015_v11  ;;  %v1017_v35 = vsub.f32 %v5948_v49, %v6276_v21  ;;  %v1721_v28 = vmul.f32 1.442695, %v1604_v5 }
 0x179   : > { %v1602_v37 = vmul.f32 %v6168_v58, %v1140_v18  ;;  %v4812_v47 = vpop.eup %4811  ;;  %4827 = vpow2.f32 %v1713_v9  ;;  %v1144_v6 = vsub.f32 0.0, %v1078_v52  ;;  %v1723_v30 = vmul.f32 1.442695, %v1605_v13 }
 0x17a   : > { %4493 = vmatmul.mubr.msk.f32.gmra.mxu1 %vm1757_vm7, %v4800_v19  ;;  %4604 = vmatmul.mubr.msk.f32.gmra.mxu0 %vm1757_vm7, %v4800_v19  ;;  %v1079_v19 = vmul.f32 %v1013_v44, %v1013_v44  ;;  %v4814_v3 = vpop.eup %4813  ;;  %4829 = vpow2.f32 %v1715_v53  ;;  %v1146_v21 = vsub.f32 0.0, %v1080_v54  ;;  %v1082_v27 = vmul.f32 %v1016_v43, %v1016_v43 }
 0x17b   : > { %v6284_v8 = vpop.permute.xlu1 %1510  ;;  %v6290_v7 = vpop.permute.xlu0 %1505  ;;  %4495 = vmatprep.mubr.msk.f32.mxu1 %vm1757_vm7, %v4802_v1  ;;  %4606 = vmatprep.mubr.msk.f32.mxu0 %vm1757_vm7, %v4802_v1  ;;  %v1717_v24 = vmul.f32 1.442695, %v1602_v37  ;;  %v1606_v38 = vmul.f32 %v6228_v56, %v1144_v6  ;;  %4831 = vpow2.f32 %v1719_v46  ;;  %v1018_v23 = vsub.f32 %v5889_v50, %v6272_v42 }
 0x17c   : > { %v4816_v55 = vpop.eup %4815  ;;  %v1145_v36 = vsub.f32 0.0, %v1079_v19  ;;  %v1147_v4 = vsub.f32 0.0, %v1081_v33  ;;  %v1083_v56 = vmul.f32 %v1017_v35, %v1017_v35 }
 0x17d   : > { %4833 = vpow2.f32 %v1717_v24 }
 0x17e   : > { %4496 = vmatmul.mubr.msk.f32.gmra.mxu1 %vm1757_vm7, %v4804_v39  ;;  %4607 = vmatmul.mubr.msk.f32.gmra.mxu0 %vm1757_vm7, %v4804_v39  ;;  %v4818_v39 = vpop.eup %4817  ;;  %v1607_v61 = vmul.f32 %v6258_v59, %v1145_v36  ;;  %4835 = vpow2.f32 %v1721_v28  ;;  %v1725_v59 = vmul.f32 1.442695, %v1606_v38  ;;  %v1609_v14 = vmul.f32 %v6290_v7, %v1147_v4 }
 0x17f   : > { %v6300_v29 = vpop.permute.xlu1 %936  ;;  %v6305_v45 = vpop.permute.xlu0 %931  ;;  %4498 = vmatprep.mubr.msk.f32.mxu1 %vm1757_vm7, %v4806_v10  ;;  %4609 = vmatprep.mubr.msk.f32.mxu0 %vm1757_vm7, %v4806_v10  ;;  %4837 = vpow2.f32 %v1723_v30  ;;  %v1149_v41 = vsub.f32 0.0, %v1083_v56 }
 0x180   : > { %v4820_v57 = vpop.eup %4819  ;;  %v1019_v17 = vsub.f32 %v5852_v40, %v6305_v45  ;;  %v1727_v42 = vmul.f32 1.442695, %v1607_v61  ;;  %v1084_v40 = vmul.f32 %v1018_v23, %v1018_v23  ;;  %v1020_v45 = vsub.f32 %v5835_v48, %v6300_v29 }
 0x181   : > { %v4822_v25 = vpop.eup %4821  ;;  %4839 = vpow2.f32 %v1725_v59  ;;  %v1731_v48 = vmul.f32 1.442695, %v1609_v14 }
 0x182   : > { %4499 = vmatmul.mubr.msk.f32.gmra.mxu1 %vm1757_vm7, %v4808_v60  ;;  %4610 = vmatmul.mubr.msk.f32.gmra.mxu0 %vm1757_vm7, %v4808_v60  ;;  %v1608_v60 = vmul.f32 %v6256_v20, %v1146_v21  ;;  %v4824_v63 = vpop.eup %4823  ;;  %v1085_v62 = vmul.f32 %v1019_v17, %v1019_v17  ;;  %4841 = vpow2.f32 %v1727_v42  ;;  %v1150_v26 = vsub.f32 0.0, %v1084_v40 }
 0x183   : > { %v6314_v16 = vpop.permute.xlu1 %1520  ;;  %v6318_v34 = vpop.permute.xlu0 %1515  ;;  %4501 = vmatprep.mubr.msk.f32.mxu1 %vm1757_vm7, %v4810_v32  ;;  %4612 = vmatprep.mubr.msk.f32.mxu0 %vm1757_vm7, %v4810_v32  ;;  %v1148_v32 = vsub.f32 0.0, %v1082_v27  ;;  %v1086_v22 = vmul.f32 %v1020_v45, %v1020_v45 }
 0x184   : > { %v1729_v18 = vmul.f32 1.442695, %v1608_v60  ;;  %v1611_v29 = vmul.f32 %v6318_v34, %v1149_v41  ;;  %v1151_v52 = vsub.f32 0.0, %v1085_v62  ;;  %v1612_v12 = vmul.f32 %v6314_v16, %v1150_v26 }
 0x185   : > { %v4826_v20 = vpop.eup %4825  ;;  %v1610_v7 = vmul.f32 %v6284_v8, %v1148_v32 }
 0x186   : > { %4502 = vmatmul.mubr.msk.f32.gmra.mxu1 %vm1757_vm7, %v4812_v47  ;;  %4613 = vmatmul.mubr.msk.f32.gmra.mxu0 %vm1757_vm7, %v4812_v47  ;;  %v4828_v9 = vpop.eup %4827  ;;  %4843 = vpow2.f32 %v1729_v18  ;;  %v1735_v19 = vmul.f32 1.442695, %v1611_v29  ;;  %v1737_v16 = vmul.f32 1.442695, %v1612_v12 }
 0x187   : > { %v942_v58 = vpop.permute.xlu0 %941  ;;  %4504 = vmatprep.mubr.msk.f32.mxu1 %vm1757_vm7, %v4814_v3  ;;  %4615 = vmatprep.mubr.msk.f32.mxu0 %vm1757_vm7, %v4814_v3  ;;  %v6334_v1 = vpop.permute.xlu1 %946  ;;  %v1733_v47 = vmul.f32 1.442695, %v1610_v7  ;;  %4845 = vpow2.f32 %v1731_v48  ;;  %v1152_v3 = vsub.f32 0.0, %v1086_v22 }
 0x188   : > { %v1021_v44 = vsub.f32 %v5875_v31, %v942_v58  ;;  %v4830_v31 = vpop.eup %4829  ;;  %v1022_v37 = vsub.f32 %v5864_v51, %v6334_v1 }
 0x189   : > { %v4832_v11 = vpop.eup %4831  ;;  %4847 = vpow2.f32 %v1733_v47 }
 0x18a   : > { %4505 = vmatmul.mubr.msk.f32.gmra.mxu1 %vm1757_vm7, %v4816_v55  ;;  %4616 = vmatmul.mubr.msk.f32.gmra.mxu0 %vm1757_vm7, %v4816_v55  ;;  %v1087_v2 = vmul.f32 %v1021_v44, %v1021_v44  ;;  %v4834_v58 = vpop.eup %4833  ;;  %4849 = vpow2.f32 %v1735_v19 }
 0x18b   : > { %v6343_v10 = vpop.permute.xlu0 %1525  ;;  %4507 = vmatprep.mubr.msk.f32.mxu1 %vm1757_vm7, %v4818_v39  ;;  %4618 = vmatprep.mubr.msk.f32.mxu0 %vm1757_vm7, %v4818_v39  ;;  %v1531_v15 = vpop.permute.xlu1 %1530  ;;  %4851 = vpow2.f32 %v1737_v16 }
 0x18c   : > { %v1613_v51 = vmul.f32 %v6343_v10, %v1151_v52  ;;  %v1153_v46 = vsub.f32 0.0, %v1087_v2  ;;  %v1614_v55 = vmul.f32 %v1531_v15, %v1152_v3  ;;  %v4836_v24 = vpop.eup %4835 }
 0x18e   : > { %4508 = vmatmul.mubr.msk.f32.gmra.mxu1 %vm1757_vm7, %v4820_v57  ;;  %4619 = vmatmul.mubr.msk.f32.gmra.mxu0 %vm1757_vm7, %v4820_v57  ;;  %v1739_v6 = vmul.f32 1.442695, %v1613_v51  ;;  %v1741_v35 = vmul.f32 1.442695, %v1614_v55 }
 0x18f   : > { %4510 = vmatprep.mubr.msk.f32.mxu1 %vm1757_vm7, %v4822_v25  ;;  %4621 = vmatprep.mubr.msk.f32.mxu0 %vm1757_vm7, %v4822_v25  ;;  %v952_v0 = vpop.permute.xlu0 %951  ;;  %v957_v53 = vpop.permute.xlu1 %956 }
 0x190   : > { %v1023_v8 = vsub.f32 %v5948_v49, %v952_v0  ;;  %v1088_v49 = vmul.f32 %v1022_v37, %v1022_v37  ;;  %v1024_v5 = vsub.f32 %v5889_v50, %v957_v53  ;;  %v4838_v50 = vpop.eup %4837  ;;  %4853 = vpow2.f32 %v1739_v6 }
 0x191   : > { %v4840_v38 = vpop.eup %4839  ;;  %4855 = vpow2.f32 %v1741_v35 }
 0x192   : > { %4511 = vmatmul.mubr.msk.f32.gmra.mxu1 %vm1757_vm7, %v4824_v63  ;;  %4622 = vmatmul.mubr.msk.f32.gmra.mxu0 %vm1757_vm7, %v4824_v63  ;;  %v1089_v13 = vmul.f32 %v1023_v8, %v1023_v8  ;;  %v1154_v43 = vsub.f32 0.0, %v1088_v49  ;;  %v1090_v39 = vmul.f32 %v1024_v5, %v1024_v5  ;;  %v4842_v57 = vpop.eup %4841 }
 0x193   : > { %4513 = vmatprep.mubr.msk.f32.mxu1 %vm1757_vm7, %v4826_v20  ;;  %4624 = vmatprep.mubr.msk.f32.mxu0 %vm1757_vm7, %v4826_v20  ;;  %v1536_v34 = vpop.permute.xlu0 %1535  ;;  %v1541_v1 = vpop.permute.xlu1 %1540 }
 0x194   : > { %v1615_v54 = vmul.f32 %v1536_v34, %v1153_v46  ;;  %v1155_v33 = vsub.f32 0.0, %v1089_v13  ;;  %v1616_v28 = vmul.f32 %v1541_v1, %v1154_v43  ;;  %v1156_v21 = vsub.f32 0.0, %v1090_v39  ;;  %v4844_v25 = vpop.eup %4843 }
 0x195   : > { %v4846_v56 = vpop.eup %4845 }
 0x196   : > { %4514 = vmatmul.mubr.msk.f32.gmra.mxu1 %vm1757_vm7, %v4828_v9  ;;  %4625 = vmatmul.mubr.msk.f32.gmra.mxu0 %vm1757_vm7, %v4828_v9  ;;  %v1743_v10 = vmul.f32 1.442695, %v1615_v54  ;;  %v1745_v27 = vmul.f32 1.442695, %v1616_v28  ;;  %v4848_v15 = vpop.eup %4847 }
 0x197   : > { %4516 = vmatprep.mubr.msk.f32.mxu1 %vm1757_vm7, %v4830_v31  ;;  %4627 = vmatprep.mubr.msk.f32.mxu0 %vm1757_vm7, %v4830_v31  ;;  %v1546_v36 = vpop.permute.xlu0 %1545  ;;  %v1551_v30 = vpop.permute.xlu1 %1550 }
 0x198   : > { %v1617_v61 = vmul.f32 %v1546_v36, %v1155_v33  ;;  %v1618_v23 = vmul.f32 %v1551_v30, %v1156_v21  ;;  %4857 = vpow2.f32 %v1743_v10  ;;  %v4850_v59 = vpop.eup %4849 }
 0x199   : > { %4859 = vpow2.f32 %v1745_v27  ;;  %v4852_v60 = vpop.eup %4851 }
 0x19a   : > { %4517 = vmatmul.mubr.msk.f32.gmra.mxu1 %vm1757_vm7, %v4834_v58  ;;  %4628 = vmatmul.mubr.msk.f32.gmra.mxu0 %vm1757_vm7, %v4834_v58  ;;  %v1747_v4 = vmul.f32 1.442695, %v1617_v61  ;;  %v1749_v17 = vmul.f32 1.442695, %v1618_v23 }
 0x19b   : > { %4519 = vmatprep.mubr.msk.f32.mxu1 %vm1757_vm7, %v4832_v11  ;;  %4630 = vmatprep.mubr.msk.f32.mxu0 %vm1757_vm7, %v4832_v11 }
 0x19c   : > { %4861 = vpow2.f32 %v1747_v4 }
 0x19d   : > { %4863 = vpow2.f32 %v1749_v17  ;;  %v4854_v42 = vpop.eup %4853 }
 0x19e   : > { %4520 = vmatmul.mubr.msk.f32.gmra.mxu1 %vm1757_vm7, %v4836_v24  ;;  %4631 = vmatmul.mubr.msk.f32.gmra.mxu0 %vm1757_vm7, %v4836_v24  ;;  %v4856_v14 = vpop.eup %4855 }
 0x19f   : > { %4522 = vmatprep.mubr.msk.f32.mxu1 %vm1757_vm7, %v4838_v50  ;;  %4633 = vmatprep.mubr.msk.f32.mxu0 %vm1757_vm7, %v4838_v50 }
 0x1a2   : > { %4523 = vmatmul.mubr.msk.f32.gmra.mxu1 %vm1757_vm7, %v4840_v38  ;;  %4634 = vmatmul.mubr.msk.f32.gmra.mxu0 %vm1757_vm7, %v4840_v38 }
 0x1a3   : > { %4525 = vmatprep.mubr.msk.f32.mxu1 %vm1757_vm7, %v4842_v57  ;;  %4636 = vmatprep.mubr.msk.f32.mxu0 %vm1757_vm7, %v4842_v57 }
 0x1a5   : > { %v4858_v63 = vpop.eup %4857 }
 0x1a6   : > { %4526 = vmatmul.mubr.msk.f32.gmra.mxu1 %vm1757_vm7, %v4844_v25  ;;  %4637 = vmatmul.mubr.msk.f32.gmra.mxu0 %vm1757_vm7, %v4844_v25  ;;  %v4860_v32 = vpop.eup %4859 }
 0x1a7   : > { %4528 = vmatprep.mubr.msk.f32.mxu1 %vm1757_vm7, %v4846_v56  ;;  %4639 = vmatprep.mubr.msk.f32.mxu0 %vm1757_vm7, %v4846_v56 }
 0x1a9   : > { %v4862_v40 = vpop.eup %4861 }
 0x1aa   : > { %4529 = vmatmul.mubr.msk.f32.gmra.mxu1 %vm1757_vm7, %v4848_v15  ;;  %4640 = vmatmul.mubr.msk.f32.gmra.mxu0 %vm1757_vm7, %v4848_v15  ;;  %v4864_v45 = vpop.eup %4863 }
 0x1ab   : > { %4531 = vmatprep.mubr.msk.f32.mxu1 %vm1757_vm7, %v4850_v59  ;;  %4642 = vmatprep.mubr.msk.f32.mxu0 %vm1757_vm7, %v4850_v59 }
 0x1ae   : > { %4532 = vmatmul.mubr.msk.f32.gmra.mxu1 %vm1757_vm7, %v4852_v60  ;;  %4643 = vmatmul.mubr.msk.f32.gmra.mxu0 %vm1757_vm7, %v4852_v60 }
 0x1af   : > { %4534 = vmatprep.mubr.msk.f32.mxu1 %vm1757_vm7, %v4854_v42  ;;  %4645 = vmatprep.mubr.msk.f32.mxu0 %vm1757_vm7, %v4854_v42 }
 0x1b2   : > { %4535 = vmatmul.mubr.msk.f32.gmra.mxu1 %vm1757_vm7, %v4856_v14  ;;  %4646 = vmatmul.mubr.msk.f32.gmra.mxu0 %vm1757_vm7, %v4856_v14 }
 0x1b3   : > { %4537 = vmatprep.mubr.msk.f32.mxu1 %vm1757_vm7, %v4858_v63  ;;  %4648 = vmatprep.mubr.msk.f32.mxu0 %vm1757_vm7, %v4858_v63 }
 0x1b6   : > { %4538 = vmatmul.mubr.msk.f32.gmra.mxu1 %vm1757_vm7, %v4860_v32  ;;  %4649 = vmatmul.mubr.msk.f32.gmra.mxu0 %vm1757_vm7, %v4860_v32 }
 0x1b7   : > { %4540 = vmatprep.mubr.msk.f32.mxu1 %vm1757_vm7, %v4862_v40 }
 0x1ba   : > { %4541 = vmatmul.mubr.msk.f32.gmra.mxu1 %vm1757_vm7, %v4864_v45 }
 0x1bb   : > { %4651 = vmatprep.mubr.msk.f32.mxu1 %vm1757_vm7, %v4862_v40 }
 0x1be   : > { %4652 = vmatmul.mubr.msk.f32.vlgmr.msra.gmra.mxu1 %vm1757_vm7, %v4864_v45 }
 0x1fa   : > { %v4446_v0 = vpop.f32.mrf.mxu1  ;;  %v4557_v41 = vpop.f32.mrf.mxu0 }
 0x1fb   : > { %v2753_v62 = vmax.f32 %v4446_v0, 1e-10  ;;  %v2951_v44 = vmax.f32 %v4557_v41, 1e-10 }
 0x1fc   : > { %v2022_v20 = vpop.f32.mrf.mxu1  ;;  %v2423_v18 = vpop.f32.mrf.mxu0 }
 0x1fd   : > { %4865 = vlog2.f32 %v2753_v62  ;;  %v2752_v7 = vmax.f32 %v2022_v20, 1e-10  ;;  %v2950_v9 = vmax.f32 %v2423_v18, 1e-10 }
 0x1fe   : > { %4867 = vlog2.f32 %v2951_v44  ;;  %v4449_v48 = vpop.f32.mrf.mxu1  ;;  %v4560_v29 = vpop.f32.mrf.mxu0 }
 0x1ff   : > { %4869 = vlog2.f32 %v2752_v7  ;;  %v2755_v53 = vmax.f32 %v4449_v48, 1e-10  ;;  %v2953_v31 = vmax.f32 %v4560_v29, 1e-10 }
 0x200   : > { %4871 = vlog2.f32 %v2950_v9  ;;  %v2032_v26 = vpop.f32.mrf.mxu1  ;;  %v2433_v22 = vpop.f32.mrf.mxu0 }
 0x201   : > { %4873 = vlog2.f32 %v2755_v53  ;;  %v2754_v37 = vmax.f32 %v2032_v26, 1e-10  ;;  %v2952_v52 = vmax.f32 %v2433_v22, 1e-10 }
 0x202   : > { %4875 = vlog2.f32 %v2953_v31  ;;  %v4452_v2 = vpop.f32.mrf.mxu1  ;;  %v4563_v8 = vpop.f32.mrf.mxu0 }
 0x203   : > { %4877 = vlog2.f32 %v2754_v37  ;;  %v2757_v47 = vmax.f32 %v4452_v2, 1e-10  ;;  %v2955_v12 = vmax.f32 %v4563_v8, 1e-10 }
 0x204   : > { %4879 = vlog2.f32 %v2952_v52  ;;  %v2042_v34 = vpop.f32.mrf.mxu1  ;;  %v2443_v19 = vpop.f32.mrf.mxu0 }
 0x205   : > { %4881 = vlog2.f32 %v2757_v47  ;;  %v2756_v51 = vmax.f32 %v2042_v34, 1e-10  ;;  %v2954_v11 = vmax.f32 %v2443_v19, 1e-10 }
 0x206   : > { %4883 = vlog2.f32 %v2955_v12  ;;  %v4455_v3 = vpop.f32.mrf.mxu1  ;;  %v4566_v49 = vpop.f32.mrf.mxu0 }
 0x207   : > { %4885 = vlog2.f32 %v2756_v51  ;;  %v2759_v5 = vmax.f32 %v4455_v3, 1e-10  ;;  %v2957_v58 = vmax.f32 %v4566_v49, 1e-10 }
 0x208   : > { %4887 = vlog2.f32 %v2954_v11  ;;  %v2052_v46 = vpop.f32.mrf.mxu1  ;;  %v2453_v13 = vpop.f32.mrf.mxu0 }
 0x209   : > { %4889 = vlog2.f32 %v2759_v5  ;;  %v2758_v1 = vmax.f32 %v2052_v46, 1e-10  ;;  %v2956_v16 = vmax.f32 %v2453_v13, 1e-10 }
 0x20a   : > { %v4866_v55 = vpop.eup %4865  ;;  %4891 = vlog2.f32 %v2957_v58  ;;  %v4458_v24 = vpop.f32.mrf.mxu1 }
 0x20b   : > { %v4569_v6 = vpop.f32.mrf.mxu0  ;;  %v4868_v54 = vpop.eup %4867  ;;  %v2821_v50 = vmul.f32 0.6931472, %v4866_v55  ;;  %4893 = vlog2.f32 %v2758_v1  ;;  %v2761_v43 = vmax.f32 %v4458_v24, 1e-10 }
 0x20c   : > { %v2959_v39 = vmax.f32 %v4569_v6, 1e-10  ;;  %v4870_v36 = vpop.eup %4869  ;;  %v3019_v33 = vmul.f32 0.6931472, %v4868_v54  ;;  %4895 = vlog2.f32 %v2956_v16  ;;  %v2062_v35 = vpop.f32.mrf.mxu1 }
 0x20d   : > { %v2463_v28 = vpop.f32.mrf.mxu0  ;;  %v4872_v38 = vpop.eup %4871  ;;  %v3149_v10 = vmul.f32 -0.015163742, %v2821_v50  ;;  %v2819_v30 = vmul.f32 0.6931472, %v4870_v36  ;;  %4897 = vlog2.f32 %v2761_v43  ;;  %v2760_v61 = vmax.f32 %v2062_v35, 1e-10 }
 0x20e   : > { %v4874_v57 = vpop.eup %4873  ;;  %v3017_v21 = vmul.f32 0.6931472, %v4872_v38  ;;  %4899 = vlog2.f32 %v2959_v39  ;;  %v2958_v27 = vmax.f32 %v2463_v28, 1e-10  ;;  %v4461_v23 = vpop.f32.mrf.mxu1  ;;  %v6411_v56 = vmul.f32 -0.009802811, %v3019_v33 }
 0x20f   : > { %v4572_v25 = vpop.f32.mrf.mxu0  ;;  %v4876_v4 = vpop.eup %4875  ;;  %v3148_v17 = vmul.f32 -0.015163742, %v2819_v30  ;;  %v2825_v15 = vmul.f32 0.6931472, %v4874_v57  ;;  %4901 = vlog2.f32 %v2760_v61  ;;  %v3155_v60 = vadd.f32 0.009164343, %v3149_v10 }
 0x210   : > { %v4878_v59 = vpop.eup %4877  ;;  %v3023_v42 = vmul.f32 0.6931472, %v4876_v4  ;;  %4903 = vlog2.f32 %v2958_v27  ;;  %v2763_v14 = vmax.f32 %v4461_v23, 1e-10  ;;  %v2072_v63 = vpop.f32.mrf.mxu1  ;;  %v6413_v45 = vmul.f32 -0.009802811, %v3017_v21 }
 0x211   : > { %v2473_v32 = vpop.f32.mrf.mxu0  ;;  %v4880_v40 = vpop.eup %4879  ;;  %v3151_v0 = vmul.f32 -0.015163742, %v2825_v15  ;;  %v2823_v41 = vmul.f32 0.6931472, %v4878_v59  ;;  %v6415_v44 = vadd.f32 0.009164343, %v3148_v17 }
 0x212   : > { %v4882_v62 = vpop.eup %4881  ;;  %v3021_v20 = vmul.f32 0.6931472, %v4880_v40  ;;  %4905 = vlog2.f32 %v2763_v14  ;;  %v2961_v18 = vmax.f32 %v4572_v25, 1e-10  ;;  %v4464_v7 = vpop.f32.mrf.mxu1  ;;  %v6417_v29 = vmul.f32 -0.009802811, %v3023_v42 }
 0x213   : > { %v4575_v9 = vpop.f32.mrf.mxu0  ;;  %v4884_v48 = vpop.eup %4883  ;;  %v3150_v53 = vmul.f32 -0.015163742, %v2823_v41  ;;  %v2829_v31 = vmul.f32 0.6931472, %v4882_v62  ;;  %v6419_v22 = vadd.f32 0.009164343, %v3151_v0 }
 0x214   : > { %v4886_v26 = vpop.eup %4885  ;;  %v3027_v37 = vmul.f32 0.6931472, %v4884_v48  ;;  %4907 = vlog2.f32 %v2961_v18  ;;  %v2762_v52 = vmax.f32 %v2072_v63, 1e-10  ;;  %v2082_v2 = vpop.f32.mrf.mxu1  ;;  %v6423_v12 = vmul.f32 -0.009802811, %v3021_v20 }
 0x215   : > { %v6421_v8 = vpop.f32.mrf.mxu0  ;;  %v4888_v47 = vpop.eup %4887  ;;  %v3153_v34 = vmul.f32 -0.015163742, %v2829_v31  ;;  %v2827_v19 = vmul.f32 0.6931472, %v4886_v26  ;;  %v6425_v11 = vadd.f32 0.009164343, %v3150_v53 }
 0x216   : > { %v4890_v51 = vpop.eup %4889  ;;  %v6427_v3 = vmul.f32 -0.009802811, %v3027_v37  ;;  %4909 = vlog2.f32 %v2762_v52  ;;  %v2960_v49 = vmax.f32 %v2473_v32, 1e-10  ;;  %v4467_v5 = vpop.f32.mrf.mxu1  ;;  %v6431_v1 = vmul.f32 0.6931472, %v4888_v47 }
 0x217   : > { %v6429_v58 = vpop.f32.mrf.mxu0  ;;  %v4892_v46 = vpop.eup %4891  ;;  %v3152_v13 = vmul.f32 -0.015163742, %v2827_v19  ;;  %v2833_v16 = vmul.f32 0.6931472, %v4890_v51  ;;  %v6433_v24 = vadd.f32 0.009164343, %v3153_v34 }
 0x218   : > { %v4894_v55 = vpop.eup %4893  ;;  %v3031_v6 = vmul.f32 0.6931472, %v4892_v46  ;;  %4911 = vlog2.f32 %v2960_v49  ;;  %v2765_v54 = vmax.f32 %v4464_v7, 1e-10  ;;  %v2092_v50 = vpop.f32.mrf.mxu1  ;;  %v2963_v30 = vmax.f32 %v4575_v9, 1e-10 }
 0x219   : > { %v6435_v43 = vpop.f32.mrf.mxu0  ;;  %v4896_v39 = vpop.eup %4895  ;;  %v6437_v36 = vadd.f32 0.009164343, %v3152_v13  ;;  %v3173_v33 = vmul.f32 0.04698139, %v2833_v16  ;;  %v2831_v35 = vmul.f32 0.6931472, %v4894_v55 }
 0x21a   : > { %v4898_v28 = vpop.eup %4897  ;;  %v3185_v38 = vmul.f32 0.03314211, %v3031_v6  ;;  %v3029_v10 = vmul.f32 0.6931472, %v4896_v39  ;;  %4913 = vlog2.f32 %v2765_v54  ;;  %v4470_v61 = vpop.f32.mrf.mxu1  ;;  %v2764_v4 = vmax.f32 %v2082_v2, 1e-10 }
 0x21b   : > { %v6439_v57 = vpop.f32.mrf.mxu0  ;;  %v4900_v21 = vpop.eup %4899  ;;  %v6441_v27 = vadd.f32 %v3173_v33, %v3155_v60  ;;  %v3172_v23 = vmul.f32 0.04698139, %v2831_v35  ;;  %v2837_v25 = vmul.f32 0.6931472, %v4898_v28  ;;  %4915 = vlog2.f32 %v2963_v30 }
 0x21c   : > { %v4902_v17 = vpop.eup %4901  ;;  %v6444_v15 = vadd.f32 %v3185_v38, %v6411_v56  ;;  %v3184_v59 = vmul.f32 0.03314211, %v3029_v10  ;;  %v3035_v42 = vmul.f32 0.6931472, %v4900_v21  ;;  %v2102_v14 = vpop.f32.mrf.mxu1  ;;  %4917 = vlog2.f32 %v2764_v4 }
 0x21d   : > { %v6446_v63 = vpop.f32.mrf.mxu0  ;;  %v4904_v32 = vpop.eup %4903  ;;  %v6449_v40 = vadd.f32 %v3172_v23, %v6415_v44  ;;  %v3175_v0 = vmul.f32 0.04698139, %v2837_v25  ;;  %v2835_v60 = vmul.f32 0.6931472, %v4902_v17  ;;  %v2962_v56 = vmax.f32 %v6421_v8, 1e-10 }
 0x21e   : > { %v6452_v41 = vadd.f32 %v3184_v59, %v6413_v45  ;;  %v3187_v62 = vmul.f32 0.03314211, %v3035_v42  ;;  %v3033_v20 = vmul.f32 0.6931472, %v4904_v32  ;;  %v4473_v18 = vpop.f32.mrf.mxu1  ;;  %v2767_v44 = vmax.f32 %v4467_v5, 1e-10 }
 0x21f   : > { %v6455_v7 = vpop.f32.mrf.mxu0  ;;  %v4906_v9 = vpop.eup %4905  ;;  %v6458_v48 = vadd.f32 %v3175_v0, %v6419_v22  ;;  %v3174_v53 = vmul.f32 0.04698139, %v2835_v60  ;;  %v2965_v31 = vmax.f32 %v6429_v58, 1e-10  ;;  %4919 = vlog2.f32 %v2962_v56 }
 0x220   : > { %v6462_v26 = vadd.f32 %v3187_v62, %v6417_v29  ;;  %v3186_v45 = vmul.f32 0.03314211, %v3033_v20  ;;  %v2841_v37 = vmul.f32 0.6931472, %v4906_v9  ;;  %v2112_v52 = vpop.f32.mrf.mxu1  ;;  %4921 = vlog2.f32 %v2767_v44 }
 0x221   : > { %v2513_v2 = vpop.f32.mrf.mxu0  ;;  %v4908_v8 = vpop.eup %4907  ;;  %v6465_v47 = vadd.f32 %v3174_v53, %v6425_v11  ;;  %v2766_v34 = vmax.f32 %v2092_v50, 1e-10  ;;  %v2964_v22 = vmax.f32 %v6435_v43, 1e-10  ;;  %4923 = vlog2.f32 %v2965_v31 }
 0x222   : > { %v6469_v19 = vadd.f32 %v3186_v45, %v6423_v12  ;;  %v3177_v51 = vmul.f32 0.04698139, %v2841_v37  ;;  %v3039_v49 = vmul.f32 0.6931472, %v4908_v8  ;;  %v4476_v29 = vpop.f32.mrf.mxu1  ;;  %v2769_v46 = vmax.f32 %v4470_v61, 1e-10 }
 0x223   : > { %v6471_v5 = vpop.f32.mrf.mxu0  ;;  %v4910_v58 = vpop.eup %4909  ;;  %4925 = vlog2.f32 %v2766_v34  ;;  %v2967_v13 = vmax.f32 %v6439_v57, 1e-10  ;;  %v2768_v11 = vmax.f32 %v2102_v14, 1e-10  ;;  %v2966_v43 = vmax.f32 %v6446_v63, 1e-10 }
 0x224   : > { %v6475_v16 = vadd.f32 %v3177_v51, %v6433_v24  ;;  %v3189_v55 = vmul.f32 0.03314211, %v3039_v49  ;;  %v2839_v6 = vmul.f32 0.6931472, %v4910_v58  ;;  %4927 = vlog2.f32 %v2964_v22  ;;  %v2122_v12 = vpop.f32.mrf.mxu1 }
 0x225   : > { %v6477_v54 = vpop.f32.mrf.mxu0  ;;  %v4912_v50 = vpop.eup %4911  ;;  %4929 = vlog2.f32 %v2769_v46  ;;  %v2771_v39 = vmax.f32 %v4473_v18, 1e-10  ;;  %v2969_v33 = vmax.f32 %v6455_v7, 1e-10  ;;  %v3164_v61 = vmul.f32 -0.009802811, %v6431_v1 }
 0x226   : > { %v6482_v35 = vadd.f32 %v3189_v55, %v6427_v3  ;;  %v3176_v28 = vmul.f32 0.04698139, %v2839_v6  ;;  %v3037_v38 = vmul.f32 0.6931472, %v4912_v50  ;;  %4931 = vlog2.f32 %v2967_v13  ;;  %v4479_v24 = vpop.f32.mrf.mxu1 }
 0x227   : > { %v6484_v10 = vpop.f32.mrf.mxu0  ;;  %v4914_v30 = vpop.eup %4913  ;;  %4933 = vlog2.f32 %v2768_v11  ;;  %v2770_v57 = vmax.f32 %v2112_v52, 1e-10  ;;  %v2968_v21 = vmax.f32 %v2513_v2, 1e-10  ;;  %v2773_v42 = vmax.f32 %v4476_v29, 1e-10 }
 0x228   : > { %v6488_v23 = vadd.f32 %v3176_v28, %v6437_v36  ;;  %v3188_v25 = vmul.f32 0.03314211, %v3037_v38  ;;  %v2845_v4 = vmul.f32 0.6931472, %v4914_v30  ;;  %4935 = vlog2.f32 %v2966_v43  ;;  %v6490_v3 = vpop.f32.mrf.mxu1  ;;  %v4916_v59 = vpop.eup %4915 }
 0x229   : > { %v6492_v17 = vpop.f32.mrf.mxu0  ;;  %4937 = vlog2.f32 %v2771_v39  ;;  %v2971_v14 = vmax.f32 %v6471_v5, 1e-10  ;;  %v4918_v63 = vpop.eup %4917  ;;  %v3043_v0 = vmul.f32 0.6931472, %v4916_v59  ;;  %v2772_v20 = vmax.f32 %v2122_v12, 1e-10 }
 0x22a   : > { %v6495_v1 = vadd.f32 %v3188_v25, %v3164_v61  ;;  %v3197_v32 = vmul.f32 -0.002703527, %v2845_v4  ;;  %4939 = vlog2.f32 %v2969_v33  ;;  %v6497_v36 = vpop.f32.mrf.mxu1  ;;  %v2843_v62 = vmul.f32 0.6931472, %v4918_v63 }
 0x22b   : > { %v6499_v60 = vpop.f32.mrf.mxu0  ;;  %4941 = vlog2.f32 %v2770_v57  ;;  %v2970_v56 = vmax.f32 %v6477_v54, 1e-10  ;;  %v3209_v7 = vmul.f32 0.05203631, %v3043_v0  ;;  %v2775_v9 = vmax.f32 %v4479_v24, 1e-10 }
 0x22c   : > { %v6503_v18 = vadd.f32 %v3197_v32, %v6441_v27  ;;  %4943 = vlog2.f32 %v2968_v21  ;;  %v6505_v53 = vpop.f32.mrf.mxu1  ;;  %v4920_v31 = vpop.eup %4919  ;;  %v3196_v45 = vmul.f32 -0.002703527, %v2843_v62  ;;  %v2973_v37 = vmax.f32 %v6484_v10, 1e-10 }
 0x22d   : > { %v6507_v44 = vpop.f32.mrf.mxu0  ;;  %4945 = vlog2.f32 %v2773_v42  ;;  %v2774_v52 = vmax.f32 %v6490_v3, 1e-10  ;;  %v4922_v2 = vpop.eup %4921  ;;  %v6512_v8 = vadd.f32 %v3209_v7, %v6444_v15  ;;  %v3041_v27 = vmul.f32 0.6931472, %v4920_v31 }
 0x22e   : > { %4947 = vlog2.f32 %v2971_v14  ;;  %v2972_v34 = vmax.f32 %v6492_v17, 1e-10  ;;  %v6515_v22 = vpop.f32.mrf.mxu1  ;;  %v4924_v49 = vpop.eup %4923  ;;  %v6520_v29 = vadd.f32 %v3196_v45, %v6449_v40  ;;  %v2849_v5 = vmul.f32 0.6931472, %v4922_v2 }
 0x22f   : > { %v6517_v51 = vpop.f32.mrf.mxu0  ;;  %4949 = vlog2.f32 %v2772_v20  ;;  %v2777_v58 = vmax.f32 %v6497_v36, 1e-10  ;;  %v3208_v13 = vmul.f32 0.05203631, %v3041_v27  ;;  %v3047_v15 = vmul.f32 0.6931472, %v4924_v49 }
 0x230   : > { %v4926_v46 = vpop.eup %4925  ;;  %4951 = vlog2.f32 %v2970_v56  ;;  %v2975_v11 = vmax.f32 %v6499_v60, 1e-10  ;;  %v6524_v55 = vpop.f32.mrf.mxu1  ;;  %v3199_v54 = vmul.f32 -0.002703527, %v2849_v5  ;;  %v2776_v40 = vmax.f32 %v6505_v53, 1e-10 }
 0x231   : > { %v6526_v6 = vpop.f32.mrf.mxu0  ;;  %v4928_v12 = vpop.eup %4927  ;;  %v2847_v50 = vmul.f32 0.6931472, %v4926_v46  ;;  %4953 = vlog2.f32 %v2775_v9  ;;  %v6530_v39 = vadd.f32 %v3208_v13, %v6452_v41  ;;  %v3211_v33 = vmul.f32 0.05203631, %v3047_v15 }
 0x232   : > { %v4930_v43 = vpop.eup %4929  ;;  %v3045_v28 = vmul.f32 0.6931472, %v4928_v12  ;;  %4955 = vlog2.f32 %v2973_v37  ;;  %v6532_v38 = vpop.f32.mrf.mxu1  ;;  %v6537_v30 = vadd.f32 %v3199_v54, %v6458_v48  ;;  %v2779_v63 = vmax.f32 %v6515_v22, 1e-10 }
 0x233   : > { %v6534_v24 = vpop.f32.mrf.mxu0  ;;  %v4932_v10 = vpop.eup %4931  ;;  %v3198_v61 = vmul.f32 -0.002703527, %v2847_v50  ;;  %v2853_v57 = vmul.f32 0.6931472, %v4930_v43  ;;  %4957 = vlog2.f32 %v2774_v52  ;;  %v6540_v25 = vadd.f32 %v3211_v33, %v6462_v26 }
 0x234   : > { %v4934_v21 = vpop.eup %4933  ;;  %v3210_v41 = vmul.f32 0.05203631, %v3045_v28  ;;  %v3051_v4 = vmul.f32 0.6931472, %v4932_v10  ;;  %4959 = vlog2.f32 %v2972_v34  ;;  %v6542_v3 = vpop.f32.mrf.mxu1  ;;  %v2974_v9 = vmax.f32 %v6507_v44, 1e-10 }
 0x235   : > { %v6544_v17 = vpop.f32.mrf.mxu0  ;;  %v4936_v59 = vpop.eup %4935  ;;  %v6547_v42 = vadd.f32 %v3198_v61, %v6465_v47  ;;  %v3201_v48 = vmul.f32 -0.002703527, %v2853_v57  ;;  %v2851_v14 = vmul.f32 0.6931472, %v4934_v21  ;;  %4961 = vlog2.f32 %v2975_v11 }
 0x236   : > { %v4938_v32 = vpop.eup %4937  ;;  %v6551_v0 = vadd.f32 %v3210_v41, %v6469_v19  ;;  %v3213_v26 = vmul.f32 0.05203631, %v3051_v4  ;;  %v3049_v36 = vmul.f32 0.6931472, %v4936_v59  ;;  %v6553_v60 = vpop.f32.mrf.mxu1  ;;  %4963 = vlog2.f32 %v2777_v58 }
 0x237   : > { %v6555_v62 = vpop.f32.mrf.mxu0  ;;  %v4940_v20 = vpop.eup %4939  ;;  %v6558_v56 = vadd.f32 %v3201_v48, %v6475_v16  ;;  %v3200_v47 = vmul.f32 -0.002703527, %v2851_v14  ;;  %v2857_v7 = vmul.f32 0.6931472, %v4938_v32  ;;  %4965 = vlog2.f32 %v2779_v63 }
 0x238   : > { %v4942_v53 = vpop.eup %4941  ;;  %v6562_v31 = vadd.f32 %v3213_v26, %v6482_v35  ;;  %v3212_v19 = vmul.f32 0.05203631, %v3049_v36  ;;  %v3055_v45 = vmul.f32 0.6931472, %v4940_v20  ;;  %v6564_v37 = vpop.f32.mrf.mxu1  ;;  %v2977_v5 = vmax.f32 %v6517_v51, 1e-10 }
 0x239   : > { %v6566_v52 = vpop.f32.mrf.mxu0  ;;  %v4944_v2 = vpop.eup %4943  ;;  %v6569_v27 = vadd.f32 %v3200_v47, %v6488_v23  ;;  %v3221_v16 = vmul.f32 -0.011716746, %v2857_v7  ;;  %v2855_v34 = vmul.f32 0.6931472, %v4942_v53  ;;  %4967 = vlog2.f32 %v2776_v40 }
 0x23a   : > { %v4946_v22 = vpop.eup %4945  ;;  %v6572_v44 = vadd.f32 %v3212_v19, %v6495_v1  ;;  %v3233_v35 = vmul.f32 0.07976302, %v3055_v45  ;;  %v3053_v49 = vmul.f32 0.6931472, %v4944_v2  ;;  %v6575_v58 = vpop.f32.mrf.mxu1  ;;  %4969 = vlog2.f32 %v2977_v5 }
 0x23b   : > { %v6577_v46 = vpop.f32.mrf.mxu0  ;;  %v4948_v13 = vpop.eup %4947  ;;  %v6580_v15 = vadd.f32 %v3221_v16, %v6503_v18  ;;  %v3220_v23 = vmul.f32 -0.011716746, %v2855_v34  ;;  %v2861_v11 = vmul.f32 0.6931472, %v4946_v22  ;;  %4971 = vlog2.f32 %v2974_v9 }
 0x23c   : > { %v4950_v12 = vpop.eup %4949  ;;  %v6583_v54 = vadd.f32 %v3233_v35, %v6512_v8  ;;  %v3232_v1 = vmul.f32 0.07976302, %v3053_v49  ;;  %v3059_v50 = vmul.f32 0.6931472, %v4948_v13  ;;  %v6585_v43 = vpop.f32.mrf.mxu1  ;;  %v2778_v21 = vmax.f32 %v6524_v55, 1e-10 }
 0x23d   : > { %v6587_v51 = vpop.f32.mrf.mxu0  ;;  %v4952_v33 = vpop.eup %4951  ;;  %v6590_v28 = vadd.f32 %v3220_v23, %v6520_v29  ;;  %v3223_v18 = vmul.f32 -0.011716746, %v2861_v11  ;;  %v2859_v10 = vmul.f32 0.6931472, %v4950_v12  ;;  %v2781_v63 = vmax.f32 %v6532_v38, 1e-10 }
 0x23e   : > { %v4954_v61 = vpop.eup %4953  ;;  %v6593_v40 = vadd.f32 %v3232_v1, %v6530_v39  ;;  %v3235_v8 = vmul.f32 0.07976302, %v3059_v50  ;;  %v3057_v57 = vmul.f32 0.6931472, %v4952_v33  ;;  %v6596_v41 = vpop.f32.mrf.mxu1  ;;  %v2976_v20 = vmax.f32 %v6526_v6, 1e-10 }
 0x23f   : > { %v6598_v4 = vpop.f32.mrf.mxu0  ;;  %v4956_v59 = vpop.eup %4955  ;;  %v3229_v48 = vadd.f32 %v3223_v18, %v6537_v30  ;;  %v3222_v29 = vmul.f32 -0.011716746, %v2859_v10  ;;  %v2865_v14 = vmul.f32 0.6931472, %v4954_v61  ;;  %4973 = vlog2.f32 %v2781_v63 }
 0x240   : > { %v4958_v32 = vpop.eup %4957  ;;  %v6603_v26 = vadd.f32 %v3235_v8, %v6540_v25  ;;  %v3234_v39 = vmul.f32 0.07976302, %v3057_v57  ;;  %v3063_v36 = vmul.f32 0.6931472, %v4956_v59  ;;  %v6606_v55 = vpop.f32.mrf.mxu1  ;;  %v2979_v45 = vmax.f32 %v6534_v24, 1e-10 }
 0x241   : > { %v6608_v47 = vpop.f32.mrf.mxu0  ;;  %v4960_v7 = vpop.eup %4959  ;;  %v6611_v9 = vadd.f32 %v3222_v29, %v6547_v42  ;;  %v3225_v30 = vmul.f32 -0.011716746, %v2865_v14  ;;  %v2863_v53 = vmul.f32 0.6931472, %v4958_v32  ;;  %4975 = vlog2.f32 %v2778_v21 }
 0x242   : > { %v6614_v38 = vadd.f32 %v3234_v39, %v6551_v0  ;;  %v3237_v25 = vmul.f32 0.07976302, %v3063_v36  ;;  %v3061_v19 = vmul.f32 0.6931472, %v4960_v7  ;;  %v6617_v2 = vpop.f32.mrf.mxu1  ;;  %v4962_v16 = vpop.eup %4961  ;;  %v2780_v22 = vmax.f32 %v6542_v3, 1e-10 }
 0x243   : > { %v6619_v6 = vpop.f32.mrf.mxu0  ;;  %v6622_v34 = vadd.f32 %v3225_v30, %v6558_v56  ;;  %v3224_v42 = vmul.f32 -0.011716746, %v2863_v53  ;;  %v3067_v49 = vmul.f32 0.6931472, %v4962_v16  ;;  %4977 = vlog2.f32 %v2979_v45  ;;  %v4964_v13 = vpop.eup %4963 }
 0x244   : > { %v6626_v35 = vadd.f32 %v3237_v25, %v6562_v31  ;;  %v3236_v0 = vmul.f32 0.07976302, %v3061_v19  ;;  %v6628_v5 = vpop.f32.mrf.mxu1  ;;  %4979 = vlog2.f32 %v2976_v20  ;;  %v4966_v56 = vpop.eup %4965  ;;  %v2978_v31 = vmax.f32 %v6544_v17, 1e-10 }
 0x245   : > { %v6630_v24 = vpop.f32.mrf.mxu0  ;;  %v6633_v23 = vadd.f32 %v3224_v42, %v6569_v27  ;;  %v3257_v3 = vmul.f32 -0.066413924, %v3067_v49  ;;  %4981 = vlog2.f32 %v2780_v22  ;;  %v2873_v50 = vmul.f32 0.6931472, %v4966_v56 }
 0x246   : > { %v6636_v11 = vadd.f32 %v3236_v0, %v6572_v44  ;;  %v6639_v12 = vpop.f32.mrf.mxu1  ;;  %v2783_v33 = vmax.f32 %v6553_v60, 1e-10  ;;  %v4968_v18 = vpop.eup %4967  ;;  %4983 = vlog2.f32 %v2978_v31  ;;  %v2981_v10 = vmax.f32 %v6555_v62, 1e-10 }
 0x247   : > { %v6641_v1 = vpop.f32.mrf.mxu0  ;;  %v6645_v27 = vadd.f32 %v3257_v3, %v6583_v54  ;;  %v4970_v8 = vpop.eup %4969  ;;  %v3247_v17 = vmul.f32 0.07865145, %v2873_v50  ;;  %v2782_v57 = vmax.f32 %v6564_v37, 1e-10  ;;  %v2980_v60 = vmax.f32 %v6566_v52, 1e-10 }
 0x248   : > { %v6648_v44 = vpop.f32.mrf.mxu1  ;;  %4985 = vlog2.f32 %v2783_v33  ;;  %v4972_v21 = vpop.eup %4971  ;;  %v3071_v59 = vmul.f32 0.6931472, %v4970_v8  ;;  %v2869_v14 = vmul.f32 0.6931472, %v4964_v13  ;;  %v2785_v63 = vmax.f32 %v6575_v58, 1e-10 }
 0x249   : > { %v6650_v61 = vpop.f32.mrf.mxu0  ;;  %4987 = vlog2.f32 %v2981_v10  ;;  %v6658_v62 = vadd.f32 %v3247_v17, %v3229_v48  ;;  %v2983_v39 = vmax.f32 %v6577_v46, 1e-10  ;;  %v2784_v37 = vmax.f32 %v6585_v43, 1e-10 }
 0x24a   : > { %v6654_v29 = vpop.f32.mrf.mxu1  ;;  %4989 = vlog2.f32 %v2782_v57  ;;  %v3259_v32 = vmul.f32 -0.066413924, %v3071_v59  ;;  %v2982_v52 = vmax.f32 %v6587_v51, 1e-10  ;;  %v2787_v7 = vmax.f32 %v6596_v41, 1e-10 }
 0x24b   : > { %v6656_v54 = vpop.f32.mrf.mxu0  ;;  %4991 = vlog2.f32 %v2980_v60  ;;  %v2985_v58 = vmax.f32 %v6598_v4, 1e-10  ;;  %v2786_v25 = vmax.f32 %v6606_v55, 1e-10  ;;  %v3245_v45 = vmul.f32 0.07865145, %v2869_v14 }
 0x24c   : > { %v6663_v36 = vpop.f32.mrf.mxu1  ;;  %4993 = vlog2.f32 %v2785_v63  ;;  %v4974_v48 = vpop.eup %4973  ;;  %v6670_v30 = vadd.f32 %v3259_v32, %v6603_v26  ;;  %v2984_v51 = vmax.f32 %v6608_v47, 1e-10  ;;  %v2789_v4 = vmax.f32 %v6617_v2, 1e-10 }
 0x24d   : > { %v6665_v20 = vpop.f32.mrf.mxu0  ;;  %4995 = vlog2.f32 %v2983_v39  ;;  %v2877_v43 = vmul.f32 0.6931472, %v4974_v48  ;;  %v2867_v22 = vmul.f32 0.6931472, %v4968_v18  ;;  %v2987_v49 = vmax.f32 %v6619_v6, 1e-10 }
 0x24e   : > { %v6673_v53 = vpop.f32.mrf.mxu1  ;;  %4997 = vlog2.f32 %v2784_v37  ;;  %v4976_v19 = vpop.eup %4975  ;;  %v3065_v3 = vmul.f32 0.6931472, %v4972_v21  ;;  %v2788_v31 = vmax.f32 %v6628_v5, 1e-10  ;;  %v6692_v2 = vadd.f32 %v3245_v45, %v6580_v15 }
 0x24f   : > { %v6675_v46 = vpop.f32.mrf.mxu0  ;;  %4999 = vlog2.f32 %v2982_v52  ;;  %v3249_v16 = vmul.f32 0.07865145, %v2877_v43  ;;  %v2986_v33 = vmax.f32 %v6630_v24, 1e-10  ;;  %v2871_v10 = vmul.f32 0.6931472, %v4976_v19 }
 0x250   : > { %v6679_v41 = vpop.f32.mrf.mxu1  ;;  %v4978_v26 = vpop.eup %4977  ;;  %5001 = vlog2.f32 %v2787_v7  ;;  %v2791_v17 = vmax.f32 %v6639_v12, 1e-10  ;;  %v2989_v15 = vmax.f32 %v6641_v1, 1e-10  ;;  %v3244_v60 = vmul.f32 0.07865145, %v2867_v22 }
 0x251   : > { %v4980_v42 = vpop.eup %4979  ;;  %v3075_v0 = vmul.f32 0.6931472, %v4978_v26  ;;  %5003 = vlog2.f32 %v2985_v58  ;;  %v6683_v13 = vpop.f32.mrf.mxu0  ;;  %v6688_v47 = vadd.f32 %v3249_v16, %v6622_v34  ;;  %v3256_v14 = vmul.f32 -0.066413924, %v3065_v3 }
 0x252   : > { %v6685_v55 = vpop.f32.mrf.mxu1  ;;  %v4982_v56 = vpop.eup %4981  ;;  %5005 = vlog2.f32 %v2786_v25  ;;  %v3069_v8 = vmul.f32 0.6931472, %v4980_v42  ;;  %v2790_v63 = vmax.f32 %v6648_v44, 1e-10  ;;  %v3246_v52 = vmul.f32 0.07865145, %v2871_v10 }
 0x253   : > { %v3261_v50 = vmul.f32 -0.066413924, %v3075_v0  ;;  %5007 = vlog2.f32 %v2984_v51  ;;  %v4984_v18 = vpop.eup %4983  ;;  %v2875_v5 = vmul.f32 0.6931472, %v4982_v56  ;;  %v6702_v21 = vpop.f32.mrf.mxu0  ;;  %v3250_v51 = vadd.f32 %v3244_v60, %v6590_v28 }
 0x254   : > { %v6695_v6 = vpop.f32.mrf.mxu1  ;;  %5009 = vlog2.f32 %v2789_v4  ;;  %v3073_v12 = vmul.f32 0.6931472, %v4984_v18  ;;  %v3258_v58 = vmul.f32 -0.066413924, %v3069_v8  ;;  %v2991_v26 = vmax.f32 %v6656_v54, 1e-10 }
 0x255   : > { %v4986_v34 = vpop.eup %4985  ;;  %v6699_v57 = vadd.f32 %v3261_v50, %v6626_v35  ;;  %5011 = vlog2.f32 %v2987_v49  ;;  %v2988_v35 = vmax.f32 %v6650_v61, 1e-10  ;;  %v3248_v43 = vmul.f32 0.07865145, %v2875_v5  ;;  %v6708_v19 = vpop.f32.mrf.mxu0 }
 0x256   : > { %v6704_v59 = vpop.f32.mrf.mxu1  ;;  %v4988_v24 = vpop.eup %4987  ;;  %5013 = vlog2.f32 %v2788_v31  ;;  %v2881_v39 = vmul.f32 0.6931472, %v4986_v34  ;;  %v2793_v61 = vmax.f32 %v6654_v29, 1e-10  ;;  %v3260_v4 = vmul.f32 -0.066413924, %v3073_v12 }
 0x257   : > { %v4990_v32 = vpop.eup %4989  ;;  %5015 = vlog2.f32 %v2986_v33  ;;  %v3079_v7 = vmul.f32 0.6931472, %v4988_v24  ;;  %v3262_v49 = vadd.f32 %v3256_v14, %v6593_v40  ;;  %v3252_v33 = vadd.f32 %v3246_v52, %v6611_v9  ;;  %v6723_v18 = vpop.f32.mrf.mxu0 }
 0x258   : > { %v4992_v37 = vpop.eup %4991  ;;  %v2879_v1 = vmul.f32 0.6931472, %v4990_v32  ;;  %5017 = vlog2.f32 %v2791_v17  ;;  %v6710_v45 = vpop.f32.mrf.mxu1  ;;  %v3269_v42 = vmul.f32 -0.010583187, %v2881_v39  ;;  %v6718_v28 = vadd.f32 %v3258_v58, %v6614_v38 }
 0x259   : > { %v4994_v48 = vpop.eup %4993  ;;  %v3077_v25 = vmul.f32 0.6931472, %v4992_v37  ;;  %5019 = vlog2.f32 %v2989_v15  ;;  %v3281_v56 = vmul.f32 -0.007026886, %v3079_v7  ;;  %v6721_v29 = vadd.f32 %v3248_v43, %v6633_v23  ;;  %v6744_v12 = vpop.f32.mrf.mxu0 }
 0x25a   : > { %v4996_v44 = vpop.eup %4995  ;;  %5021 = vlog2.f32 %v2790_v63  ;;  %v2885_v22 = vmul.f32 0.6931472, %v4994_v48  ;;  %v3268_v3 = vmul.f32 -0.010583187, %v2879_v1  ;;  %v6725_v10 = vpop.f32.mrf.mxu1  ;;  %v2792_v40 = vmax.f32 %v6663_v36, 1e-10 }
 0x25b   : > { %v4998_v16 = vpop.eup %4997  ;;  %5023 = vlog2.f32 %v2988_v35  ;;  %v3083_v31 = vmul.f32 0.6931472, %v4996_v44  ;;  %v3280_v54 = vmul.f32 -0.007026886, %v3077_v25  ;;  %v2990_v17 = vmax.f32 %v6665_v20, 1e-10 }
 0x25c   : > { %v5000_v0 = vpop.eup %4999  ;;  %5025 = vlog2.f32 %v2793_v61  ;;  %v2795_v34 = vmax.f32 %v6673_v53, 1e-10  ;;  %v6731_v38 = vadd.f32 %v3260_v4, %v6636_v11  ;;  %v6734_v23 = vadd.f32 %v3269_v42, %v6692_v2  ;;  %v6746_v2 = vpop.f32.mrf.mxu1 }
 0x25d   : > { %v5002_v50 = vpop.eup %5001  ;;  %v3271_v5 = vmul.f32 -0.010583187, %v2885_v22  ;;  %v2883_v15 = vmul.f32 0.6931472, %v4998_v16  ;;  %v6737_v60 = vadd.f32 %v3281_v56, %v6645_v27  ;;  %v6739_v14 = vadd.f32 %v3268_v3, %v3250_v51 }
 0x25e   : > { %v5004_v8 = vpop.eup %5003  ;;  %v3283_v36 = vmul.f32 -0.007026886, %v3083_v31  ;;  %5027 = vlog2.f32 %v2991_v26  ;;  %v6741_v63 = vadd.f32 %v3280_v54, %v3262_v49  ;;  %v3081_v53 = vmul.f32 0.6931472, %v5000_v0  ;;  %v6756_v26 = vpop.f32.mrf.mxu0 }
 0x25f   : > { %v5006_v9 = vpop.eup %5005  ;;  %v2889_v32 = vmul.f32 0.6931472, %v5002_v50  ;;  %v2993_v11 = vmax.f32 %v6675_v46, 1e-10  ;;  %v3087_v35 = vmul.f32 0.6931472, %v5004_v8  ;;  %5029 = vlog2.f32 %v2792_v40 }
 0x260   : > { %v5008_v24 = vpop.eup %5007  ;;  %v2887_v37 = vmul.f32 0.6931472, %v5006_v9  ;;  %v2794_v27 = vmax.f32 %v6679_v41, 1e-10  ;;  %v6750_v7 = vadd.f32 %v3271_v5, %v6658_v62  ;;  %v3270_v1 = vmul.f32 -0.010583187, %v2883_v15  ;;  %v6758_v62 = vpop.f32.mrf.mxu1 }
 0x261   : > { %v5010_v20 = vpop.eup %5009  ;;  %v3085_v48 = vmul.f32 0.6931472, %v5008_v24  ;;  %5031 = vlog2.f32 %v2990_v17  ;;  %v6753_v46 = vadd.f32 %v3283_v36, %v6670_v30  ;;  %v3282_v51 = vmul.f32 -0.007026886, %v3081_v53  ;;  %v6763_v9 = vpop.f32.mrf.mxu0 }
 0x262   : > { %v5012_v39 = vpop.eup %5011  ;;  %v2893_v43 = vmul.f32 0.6931472, %v5010_v20  ;;  %5033 = vlog2.f32 %v2795_v34  ;;  %v3273_v61 = vmul.f32 -0.010583187, %v2889_v32  ;;  %v2992_v41 = vmax.f32 %v6683_v13, 1e-10  ;;  %v6765_v5 = vpop.f32.mrf.mxu1 }
 0x263   : > { %v5014_v52 = vpop.eup %5013  ;;  %v3091_v25 = vmul.f32 0.6931472, %v5012_v39  ;;  %5035 = vlog2.f32 %v2993_v11  ;;  %v3285_v4 = vmul.f32 -0.007026886, %v3087_v35  ;;  %v3272_v42 = vmul.f32 -0.010583187, %v2887_v37  ;;  %v4632_v37 = vpop.f32.mrf.mxu0 }
 0x264   : > { %v5016_v58 = vpop.eup %5015  ;;  %v2891_v22 = vmul.f32 0.6931472, %v5014_v52  ;;  %5037 = vlog2.f32 %v2794_v27  ;;  %v3284_v0 = vmul.f32 -0.007026886, %v3085_v48  ;;  %v2797_v56 = vmax.f32 %v6685_v55, 1e-10 }
 0x265   : > { %v5018_v44 = vpop.eup %5017  ;;  %v3089_v49 = vmul.f32 0.6931472, %v5016_v58  ;;  %5039 = vlog2.f32 %v2992_v41  ;;  %v3276_v31 = vadd.f32 %v3270_v1, %v3252_v33  ;;  %v3293_v50 = vmul.f32 0.047106758, %v2893_v43 }
 0x266   : > { %v5020_v16 = vpop.eup %5019  ;;  %v3305_v54 = vmul.f32 0.06243912, %v3091_v25  ;;  %v2897_v13 = vmul.f32 0.6931472, %v5018_v44  ;;  %v3288_v8 = vadd.f32 %v3282_v51, %v6718_v28  ;;  %v2995_v34 = vmax.f32 %v6702_v21, 1e-10  ;;  %v6777_v21 = vpop.f32.mrf.mxu1 }
 0x267   : > { %v5022_v30 = vpop.eup %5021  ;;  %v3095_v40 = vmul.f32 0.6931472, %v5020_v16  ;;  %v6768_v15 = vadd.f32 %v3273_v61, %v6688_v47  ;;  %v6771_v55 = vadd.f32 %v3285_v4, %v6699_v57  ;;  %v3292_v33 = vmul.f32 0.047106758, %v2891_v22 }
 0x268   : > { %v5024_v3 = vpop.eup %5023  ;;  %v2895_v17 = vmul.f32 0.6931472, %v5022_v30  ;;  %v2796_v24 = vmax.f32 %v6695_v6, 1e-10  ;;  %v6775_v28 = vadd.f32 %v3272_v42, %v6721_v29  ;;  %v3304_v20 = vmul.f32 0.06243912, %v3089_v49  ;;  %v6797_v58 = vpop.f32.mrf.mxu1 }
 0x269   : > { %v5026_v36 = vpop.eup %5025  ;;  %v3093_v53 = vmul.f32 0.6931472, %v5024_v3  ;;  %5041 = vlog2.f32 %v2797_v56  ;;  %v6780_v32 = vadd.f32 %v3284_v0, %v6731_v38  ;;  %v6783_v47 = vadd.f32 %v3293_v50, %v6734_v23 }
 0x26a   : > { %v3295_v57 = vmul.f32 0.047106758, %v2897_v13  ;;  %5043 = vlog2.f32 %v2995_v34  ;;  %v6786_v6 = vadd.f32 %v3305_v54, %v6737_v60  ;;  %v3307_v39 = vmul.f32 0.06243912, %v3095_v40  ;;  %v6809_v61 = vpop.f32.mrf.mxu1 }
 0x26b   : > { %v5028_v11 = vpop.eup %5027  ;;  %v3294_v29 = vmul.f32 0.047106758, %v2895_v17  ;;  %v2994_v35 = vmax.f32 %v6708_v19, 1e-10  ;;  %v6790_v27 = vadd.f32 %v3292_v33, %v6739_v14  ;;  %v2901_v52 = vmul.f32 0.6931472, %v5026_v36 }
 0x26c   : > { %5045 = vlog2.f32 %v2796_v24  ;;  %v2799_v38 = vmax.f32 %v6704_v59, 1e-10  ;;  %v5030_v23 = vpop.eup %5029  ;;  %v6794_v1 = vadd.f32 %v3304_v20, %v6741_v63  ;;  %v3306_v48 = vmul.f32 0.06243912, %v3093_v53  ;;  %v6818_v50 = vpop.f32.mrf.mxu1 }
 0x26d   : > { %5047 = vlog2.f32 %v2994_v35  ;;  %v2997_v60 = vmax.f32 %v6723_v18, 1e-10  ;;  %v6800_v19 = vadd.f32 %v3295_v57, %v6750_v7  ;;  %v3099_v14 = vmul.f32 0.6931472, %v5028_v11  ;;  %v2673_v18 = vpop.f32.mrf.mxu0 }
 0x26e   : > { %v5032_v43 = vpop.eup %5031  ;;  %5049 = vlog2.f32 %v2799_v38  ;;  %v2798_v25 = vmax.f32 %v6710_v45, 1e-10  ;;  %v6804_v59 = vadd.f32 %v3307_v39, %v6753_v46  ;;  %v6806_v63 = vadd.f32 %v3294_v29, %v3276_v31  ;;  %v6824_v34 = vpop.f32.mrf.mxu1 }
 0x26f   : > { %v5034_v44 = vpop.eup %5033  ;;  %5051 = vlog2.f32 %v2997_v60  ;;  %v2996_v51 = vmax.f32 %v6744_v12, 1e-10  ;;  %v3297_v16 = vmul.f32 0.047106758, %v2901_v52  ;;  %v2899_v7 = vmul.f32 0.6931472, %v5030_v23  ;;  %v4635_v30 = vpop.f32.mrf.mxu0 }
 0x270   : > { %v5036_v41 = vpop.eup %5035  ;;  %5053 = vlog2.f32 %v2798_v25  ;;  %v2801_v4 = vmax.f32 %v6725_v10, 1e-10  ;;  %v6812_v45 = vadd.f32 %v3306_v48, %v3288_v8  ;;  %v2999_v46 = vmax.f32 %v6756_v26, 1e-10  ;;  %v6831_v52 = vpop.f32.mrf.mxu1 }
 0x271   : > { %v5038_v42 = vpop.eup %5037  ;;  %5055 = vlog2.f32 %v2996_v51  ;;  %v2800_v22 = vmax.f32 %v6746_v2, 1e-10  ;;  %v3309_v12 = vmul.f32 0.06243912, %v3099_v14  ;;  %v2998_v49 = vmax.f32 %v6763_v9, 1e-10  ;;  %v2683_v17 = vpop.f32.mrf.mxu0 }
 0x272   : > { %v5040_v0 = vpop.eup %5039  ;;  %5057 = vlog2.f32 %v2801_v4  ;;  %v2803_v56 = vmax.f32 %v6758_v62, 1e-10  ;;  %v3097_v3 = vmul.f32 0.6931472, %v5032_v43  ;;  %v2905_v31 = vmul.f32 0.6931472, %v5034_v44  ;;  %v6843_v44 = vpop.f32.mrf.mxu1 }
 0x273   : > { %5059 = vlog2.f32 %v2999_v46  ;;  %v3001_v10 = vmax.f32 %v4632_v37, 1e-10  ;;  %v3103_v54 = vmul.f32 0.6931472, %v5036_v41  ;;  %v2903_v13 = vmul.f32 0.6931472, %v5038_v42  ;;  %v4638_v53 = vpop.f32.mrf.mxu0 }
 0x274   : > { %5061 = vlog2.f32 %v2800_v22  ;;  %v2802_v26 = vmax.f32 %v6765_v5, 1e-10  ;;  %v6822_v2 = vadd.f32 %v3297_v16, %v6768_v15  ;;  %v3101_v8 = vmul.f32 0.6931472, %v5040_v0 }
 0x275   : > { %5063 = vlog2.f32 %v2998_v49  ;;  %v3000_v40 = vmax.f32 %v2673_v18, 1e-10  ;;  %v6827_v9 = vadd.f32 %v3309_v12, %v6771_v55  ;;  %v3296_v33 = vmul.f32 0.047106758, %v2899_v7  ;;  %v2693_v25 = vpop.f32.mrf.mxu0  ;;  %v6856_v12 = vpop.f32.mrf.mxu1 }
 0x276   : > { %v5042_v62 = vpop.eup %5041  ;;  %5065 = vlog2.f32 %v2803_v56  ;;  %v2805_v24 = vmax.f32 %v6777_v21, 1e-10  ;;  %v3308_v20 = vmul.f32 0.06243912, %v3097_v3  ;;  %v3317_v5 = vmul.f32 0.035096683, %v2905_v31 }
 0x277   : > { %v5044_v36 = vpop.eup %5043  ;;  %5067 = vlog2.f32 %v3001_v10  ;;  %v3003_v15 = vmax.f32 %v4635_v30, 1e-10  ;;  %v3329_v57 = vmul.f32 -0.013583913, %v3103_v54  ;;  %v3316_v11 = vmul.f32 0.035096683, %v2903_v13  ;;  %v4641_v7 = vpop.f32.mrf.mxu0 }
 0x278   : > { %5069 = vlog2.f32 %v2802_v26  ;;  %v2804_v39 = vmax.f32 %v6797_v58, 1e-10  ;;  %v3328_v35 = vmul.f32 -0.013583913, %v3101_v8  ;;  %v2909_v37 = vmul.f32 0.6931472, %v5042_v62  ;;  %v6861_v8 = vpop.f32.mrf.mxu1 }
 0x279   : > { %v5046_v29 = vpop.eup %5045  ;;  %5071 = vlog2.f32 %v3000_v40  ;;  %v3002_v55 = vmax.f32 %v2683_v17, 1e-10  ;;  %v6834_v21 = vadd.f32 %v3296_v33, %v6775_v28  ;;  %v3107_v23 = vmul.f32 0.6931472, %v5044_v36  ;;  %v2703_v26 = vpop.f32.mrf.mxu0 }
 0x27a   : > { %v5048_v38 = vpop.eup %5047  ;;  %5073 = vlog2.f32 %v2805_v24  ;;  %v2807_v48 = vmax.f32 %v6809_v61, 1e-10  ;;  %v6838_v43 = vadd.f32 %v3308_v20, %v6780_v32  ;;  %v6841_v58 = vadd.f32 %v3317_v5, %v6783_v47 }
 0x27b   : > { %v5050_v60 = vpop.eup %5049  ;;  %5075 = vlog2.f32 %v3003_v15  ;;  %v3005_v14 = vmax.f32 %v4638_v53, 1e-10  ;;  %v6846_v28 = vadd.f32 %v3329_v57, %v6786_v6  ;;  %v6849_v18 = vadd.f32 %v3316_v11, %v6790_v27  ;;  %v4644_v57 = vpop.f32.mrf.mxu0 }
 0x27c   : > { %v5052_v51 = vpop.eup %5051  ;;  %5077 = vlog2.f32 %v2804_v39  ;;  %v2806_v61 = vmax.f32 %v6818_v50, 1e-10  ;;  %v6853_v41 = vadd.f32 %v3328_v35, %v6794_v1  ;;  %v3319_v47 = vmul.f32 0.035096683, %v2909_v37  ;;  %v6871_v37 = vpop.f32.mrf.mxu1 }
 0x27d   : > { %v5054_v32 = vpop.eup %5053  ;;  %v2907_v16 = vmul.f32 0.6931472, %v5046_v29  ;;  %5079 = vlog2.f32 %v3002_v55  ;;  %v3331_v42 = vmul.f32 -0.013583913, %v3107_v23  ;;  %v3105_v46 = vmul.f32 0.6931472, %v5048_v38 }
 0x27e   : > { %v5056_v4 = vpop.eup %5055  ;;  %5081 = vlog2.f32 %v2807_v48  ;;  %v3004_v6 = vmax.f32 %v2693_v25, 1e-10  ;;  %v2913_v30 = vmul.f32 0.6931472, %v5050_v60  ;;  %v3111_v27 = vmul.f32 0.6931472, %v5052_v51  ;;  %v6882_v51 = vpop.f32.mrf.mxu1 }
 0x27f   : > { %v5058_v22 = vpop.eup %5057  ;;  %5083 = vlog2.f32 %v3005_v14  ;;  %v2809_v0 = vmax.f32 %v6824_v34, 1e-10  ;;  %v2911_v1 = vmul.f32 0.6931472, %v5054_v32  ;;  %v3109_v56 = vmul.f32 0.6931472, %v5056_v4 }
 0x280   : > { %v5060_v49 = vpop.eup %5059  ;;  %5085 = vlog2.f32 %v2806_v61  ;;  %v3007_v3 = vmax.f32 %v4641_v7, 1e-10  ;;  %v6859_v10 = vadd.f32 %v3319_v47, %v6800_v19  ;;  %v3318_v50 = vmul.f32 0.035096683, %v2907_v16  ;;  %v2713_v16 = vpop.f32.mrf.mxu0 }
 0x281   : > { %v5062_v31 = vpop.eup %5061  ;;  %v2917_v54 = vmul.f32 0.6931472, %v5058_v22  ;;  %v3115_v13 = vmul.f32 0.6931472, %v5060_v49  ;;  %v6864_v17 = vadd.f32 %v3331_v42, %v6804_v59  ;;  %v3330_v34 = vmul.f32 -0.013583913, %v3105_v46 }
 0x282   : > { %v5064_v40 = vpop.eup %5063  ;;  %v2915_v62 = vmul.f32 0.6931472, %v5062_v31  ;;  %5087 = vlog2.f32 %v3004_v6  ;;  %v3321_v24 = vmul.f32 0.035096683, %v2913_v30  ;;  %v3333_v36 = vmul.f32 -0.013583913, %v3111_v27 }
 0x283   : > { %v5066_v33 = vpop.eup %5065  ;;  %5089 = vlog2.f32 %v2809_v0  ;;  %v2808_v19 = vmax.f32 %v6831_v52, 1e-10  ;;  %v3320_v5 = vmul.f32 0.035096683, %v2911_v1  ;;  %v3332_v15 = vmul.f32 -0.013583913, %v3109_v56  ;;  %v6900_v0 = vpop.f32.mrf.mxu1 }
 0x284   : > { %v5068_v20 = vpop.eup %5067  ;;  %5091 = vlog2.f32 %v3007_v3  ;;  %v3006_v53 = vmax.f32 %v2703_v26, 1e-10  ;;  %v6868_v39 = vadd.f32 %v3318_v50, %v6806_v63  ;;  %v3341_v59 = vmul.f32 -0.09801339, %v2917_v54  ;;  %v4647_v56 = vpop.f32.mrf.mxu0 }
 0x285   : > { %v5070_v11 = vpop.eup %5069  ;;  %v3353_v29 = vmul.f32 0.06314009, %v3115_v13  ;;  %v2811_v35 = vmax.f32 %v6843_v44, 1e-10  ;;  %v6874_v38 = vadd.f32 %v3330_v34, %v6812_v45  ;;  %v3340_v52 = vmul.f32 -0.09801339, %v2915_v62 }
 0x286   : > { %v5072_v55 = vpop.eup %5071  ;;  %v3113_v23 = vmul.f32 0.6931472, %v5064_v40  ;;  %v2921_v48 = vmul.f32 0.6931472, %v5066_v33  ;;  %v6877_v14 = vadd.f32 %v3321_v24, %v6822_v2  ;;  %v6880_v63 = vadd.f32 %v3333_v36, %v6827_v9  ;;  %v6915_v33 = vpop.f32.mrf.mxu1 }
 0x287   : > { %v5074_v60 = vpop.eup %5073  ;;  %v3119_v25 = vmul.f32 0.6931472, %v5068_v20  ;;  %5093 = vlog2.f32 %v2808_v19  ;;  %v6885_v61 = vadd.f32 %v3320_v5, %v6834_v21  ;;  %v6888_v45 = vadd.f32 %v3332_v15, %v6838_v43  ;;  %v6921_v20 = vld [vmem:[%s6907_s21 + $0x8] sm:$0xff]  ;;  %v2723_v5 = vpop.f32.mrf.mxu0 }
 0x288   : > { %v5076_v44 = vpop.eup %5075  ;;  %v2919_v32 = vmul.f32 0.6931472, %v5070_v11  ;;  %v3009_v47 = vmax.f32 %v4644_v57, 1e-10  ;;  %v6891_v2 = vadd.f32 %v3341_v59, %v6841_v58  ;;  %v6894_v9 = vadd.f32 %v3353_v29, %v6846_v28  ;;  %v6930_v59 = vld [vmem:[%s6907_s21] sm:$0xff] }
 0x289   : > { %v5078_v7 = vpop.eup %5077  ;;  %v3117_v4 = vmul.f32 0.6931472, %v5072_v55  ;;  %v2810_v42 = vmax.f32 %v6856_v12, 1e-10  ;;  %v6898_v21 = vadd.f32 %v3340_v52, %v6849_v18  ;;  %v3352_v6 = vmul.f32 0.06314009, %v3113_v23  ;;  %v4650_v55 = vpop.f32.mrf.mxu0 }
 0x28a   : > { %v5080_v46 = vpop.eup %5079  ;;  %v3343_v43 = vmul.f32 -0.09801339, %v2921_v48  ;;  %5095 = vlog2.f32 %v3006_v53  ;;  %v3355_v30 = vmul.f32 0.06314009, %v3119_v25  ;;  %v2925_v27 = vmul.f32 0.6931472, %v5074_v60  ;;  %v2342_v48 = vpop.f32.mrf.mxu1 }
 0x28b   : > { %v5082_v22 = vpop.eup %5081  ;;  %5097 = vlog2.f32 %v2811_v35  ;;  %v3008_v58 = vmax.f32 %v2713_v16, 1e-10  ;;  %v3342_v49 = vmul.f32 -0.09801339, %v2919_v32  ;;  %v3123_v1 = vmul.f32 0.6931472, %v5076_v44 }
 0x28c   : > { %v5084_v28 = vpop.eup %5083  ;;  %5099 = vlog2.f32 %v3009_v47  ;;  %v2813_v12 = vmax.f32 %v6861_v8, 1e-10  ;;  %v3354_v3 = vmul.f32 0.06314009, %v3117_v4  ;;  %v2923_v31 = vmul.f32 0.6931472, %v5078_v7 }
 0x28d   : > { %v5086_v18 = vpop.eup %5085  ;;  %v3121_v50 = vmul.f32 0.6931472, %v5080_v46  ;;  %5101 = vlog2.f32 %v2810_v42  ;;  %v6910_v54 = vadd.f32 %v3352_v6, %v6853_v41  ;;  %v2929_v13 = vmul.f32 0.6931472, %v5082_v22  ;;  %v6953_v42 = vld [vmem:[%s6907_s21 + $0x18] sm:$0xff]  ;;  %v2733_v46 = vpop.f32.mrf.mxu0  ;;  %v6956_v6 = vld [vmem:[%s6907_s21 + $0x10] sm:$0xff] }
 0x28e   : > { %v3127_v26 = vmul.f32 0.6931472, %v5084_v28  ;;  %5103 = vlog2.f32 %v2813_v12  ;;  %v6913_v8 = vadd.f32 %v3343_v43, %v6859_v10  ;;  %v3345_v34 = vmul.f32 -0.09801339, %v2925_v27  ;;  %v4653_v27 = vpop.f32.mrf.mxu1 }
 0x28f   : > { %v5088_v40 = vpop.eup %5087  ;;  %v2927_v62 = vmul.f32 0.6931472, %v5086_v18  ;;  %5105 = vlog2.f32 %v3008_v58  ;;  %v6918_v36 = vadd.f32 %v3355_v30, %v6864_v17  ;;  %v3357_v19 = vmul.f32 0.06314009, %v3123_v1 }
 0x290   : > { %v5090_v24 = vpop.eup %5089  ;;  %v3011_v41 = vmax.f32 %v4647_v56, 1e-10  ;;  %v6924_v10 = vadd.f32 %v3342_v49, %v6868_v39  ;;  %v6927_v53 = vadd.f32 %v3354_v3, %v6874_v38  ;;  %v3344_v57 = vmul.f32 -0.09801339, %v2923_v31  ;;  %v6968_v56 = vpop.permute.xlu1 %3487 }
 0x291   : > { %v5092_v15 = vpop.eup %5091  ;;  %v3356_v11 = vmul.f32 0.06314009, %v3121_v50  ;;  %v3365_v29 = vmul.f32 -0.02905037, %v2929_v13  ;;  %v3377_v17 = vmul.f32 -0.0046912925, %v3127_v26  ;;  %v6933_v52 = vadd.f32 %v3345_v34, %v6877_v14 }
 0x292   : > { %v3125_v35 = vmul.f32 0.6931472, %v5088_v40  ;;  %5107 = vlog2.f32 %v3011_v41  ;;  %v3364_v23 = vmul.f32 -0.02905037, %v2927_v62  ;;  %v3443_v39 = vsel %vm3424_vm8, %v6921_v20, 0.0  ;;  %v6976_v13 = vld [vmem:[%s6907_s21 + $0x28] sm:$0xff] }
 0x293   : > { %v2812_v38 = vmax.f32 %v6871_v37, 1e-10  ;;  %v6939_v25 = vadd.f32 %v3357_v19, %v6880_v63  ;;  %v2933_v44 = vmul.f32 0.6931472, %v5090_v24  ;;  %v3131_v32 = vmul.f32 0.6931472, %v5092_v15  ;;  %v2743_v24 = vpop.f32.mrf.mxu1 }
 0x294   : > { %v5094_v60 = vpop.eup %5093  ;;  %v3010_v47 = vmax.f32 %v2723_v5, 1e-10  ;;  %v6942_v16 = vadd.f32 %v3344_v57, %v6885_v61  ;;  %v6945_v14 = vadd.f32 %v3356_v11, %v6888_v45  ;;  %v3442_v7 = vsel %vm3424_vm8, %v6930_v59, 0.0 }
 0x295   : > { %5109 = vlog2.f32 %v2812_v38  ;;  %v6950_v37 = vadd.f32 %v3365_v29, %v6891_v2  ;;  %v3376_v4 = vmul.f32 -0.0046912925, %v3125_v35  ;;  %v3444_v63 = vadd.f32 %v3443_v39, %v3442_v7 }
 0x296   : > { %5111 = vlog2.f32 %v3010_v47  ;;  %v6959_v43 = vadd.f32 %v3377_v17, %v6894_v9  ;;  %v2931_v45 = vmul.f32 0.6931472, %v5094_v60  ;;  %v2815_v22 = vmax.f32 %v6882_v51, 1e-10  ;;  %v6996_v60 = vpop.permute.xlu1 %3493 }
 0x297   : > { %v5096_v61 = vpop.eup %5095  ;;  %v3013_v30 = vmax.f32 %v4650_v55, 1e-10  ;;  %v6963_v2 = vadd.f32 %v3364_v23, %v6898_v21  ;;  %v3367_v28 = vmul.f32 -0.02905037, %v2933_v44  ;;  %v6965_v49 = vmul.f32 -0.0046912925, %v3131_v32 }
 0x298   : > { %v5098_v58 = vpop.eup %5097  ;;  %v2814_v1 = vmax.f32 %v6900_v0, 1e-10  ;;  %5113 = vlog2.f32 %v2815_v22  ;;  %v3447_v51 = vsel %vm3424_vm8, %v6953_v42, 0.0  ;;  %v3012_v9 = vmax.f32 %v2733_v46, 1e-10  ;;  %v6979_v0 = vld [vmem:[%s6907_s21 + $0x20] sm:$0xff] }
 0x299   : > { %v5100_v12 = vpop.eup %5099  ;;  %v3445_v18 = vsel %vm3424_vm8, %v6956_v6, 0.0  ;;  %v3129_v3 = vmul.f32 0.6931472, %v5096_v61  ;;  %5115 = vlog2.f32 %v3013_v30  ;;  %v2817_v50 = vmax.f32 %v6915_v33, 1e-10  ;;  %v6988_v33 = vpop.permute.xlu0 %3484  ;;  %v3514_v23 = vld [vmem:[%s6985_s26 + $0x8] sm:$0xff] }
 0x29a   : > { %v5102_v21 = vpop.eup %5101  ;;  %v3446_v31 = vadd.f32 %v3445_v18, %v3444_v63  ;;  %v3366_v40 = vmul.f32 -0.02905037, %v2931_v45  ;;  %v2937_v34 = vmul.f32 0.6931472, %v5098_v58  ;;  %5117 = vlog2.f32 %v2814_v1  ;;  %v3513_v63 = vld [vmem:[%s6985_s26] sm:$0xff]  ;;  %s3928_s21 = scalar_lea.sflag [#allocation3], %s406_s14 }
 0x29b   : > { %v5104_v26 = vpop.eup %5103  ;;  %v2816_v62 = vmax.f32 %v2342_v48, 1e-10  ;;  %vm3502_vm9 = vcmp.eq.s32.totalorder %v6968_v56, 1  ;;  %v3135_v41 = vmul.f32 0.6931472, %v5100_v12  ;;  %5119 = vlog2.f32 %v3012_v9 }
 0x29c   : > { %v5106_v19 = vpop.eup %5105  ;;  %v2941_v5 = vmul.f32 0.6931472, %v5104_v26  ;;  %v3448_v15 = vadd.f32 %v3447_v51, %v3446_v31  ;;  %v2935_v57 = vmul.f32 0.6931472, %v5102_v21  ;;  %5121 = vlog2.f32 %v2817_v50  ;;  %v3500_v26 = vpop.permute.xlu1 %3499 }
 0x29d   : > { %v3015_v11 = vmax.f32 %v4653_v27, 1e-10  ;;  %v3451_v29 = vsel %vm3424_vm8, %v6976_v13, 0.0  ;;  %5123 = vlog2.f32 %v2816_v62  ;;  %v3014_v35 = vmax.f32 %v2743_v24, 1e-10  ;;  %v7005_v27 = vpop.permute.xlu0 %3490 }
 0x29e   : > { %v3389_v17 = vmul.f32 -0.022746628, %v2941_v5  ;;  %v3449_v55 = vsel %vm3424_vm8, %v6979_v0, 0.0  ;;  %v3133_v38 = vmul.f32 0.6931472, %v5106_v19  ;;  %vm3501_vm10 = vcmp.eq.s32.totalorder %v6988_v33, 1 }
 0x29f   : > { %v5108_v39 = vpop.eup %5107  ;;  %5125 = vlog2.f32 %v3015_v11  ;;  %v3450_v48 = vadd.f32 %v3449_v55, %v3448_v15  ;;  %v3382_v44 = vadd.f32 %v3376_v4, %v6910_v54  ;;  %v3378_v32 = vmul.f32 -0.0046912925, %v3129_v3 }
 0x2a0   : > { %v3139_v47 = vmul.f32 0.6931472, %v5108_v39  ;;  %v5212_v7 = vmov 0.0   ;;  %v3373_v46 = vadd.f32 %v3367_v28, %v6913_v8  ;;  %v3369_v61 = vmul.f32 -0.02905037, %v2937_v34 }
 0x2a1   : > { %4654 = vmatprep.subr.mxu1 %v5212_v7  ;;  %v3395_v45 = vadd.f32 %v3389_v17, %v6950_v37  ;;  %v3452_v22 = vadd.f32 %v3451_v29, %v3450_v48  ;;  %4658 = vmatprep.mubr.msk.f32.mxu1 %vm5213_vm11, %v5212_v7  ;;  %v3381_v54 = vmul.f32 -0.0046912925, %v3135_v41  ;;  %v3368_v4 = vmul.f32 -0.02905037, %v2935_v57  ;;  %v3497_v41 = vpop.permute.xlu0 %3496 }
 0x2a2   : > { %4655 = vmatpush3.msra.mxu1 %v3514_v23  ;;  %v5110_v30 = vpop.eup %5109  ;;  %v3401_v58 = vmul.f32 -0.037808433, %v3139_v47  ;;  %5127 = vlog2.f32 %v3014_v35  ;;  %v3385_v8 = vadd.f32 %v6965_v49, %v6918_v36  ;;  %v3380_v37 = vmul.f32 -0.0046912925, %v3133_v38 }
 0x2a3   : > { %4656 = vmatprep.subr.mxu1 %v5212_v7  ;;  %v5112_v1 = vpop.eup %5111  ;;  %v2939_v28 = vmul.f32 0.6931472, %v5110_v30  ;;  %v3453_v12 = vrot.slane %v3452_v22, 4  ;;  %vm3504_vm12 = vcmp.eq.s32.totalorder %v6996_v60, 1  ;;  %v3372_v51 = vadd.f32 %v3366_v40, %v6924_v10 }
 0x2a4   : > { %4657 = vmatpush3.msra.mxu1 %v3513_v63  ;;  %v3384_v9 = vadd.f32 %v3378_v32, %v6927_v53  ;;  %v3407_v18 = vadd.f32 %v3401_v58, %v6959_v43  ;;  %v3137_v21 = vmul.f32 0.6931472, %v5112_v1  ;;  %v3375_v3 = vadd.f32 %v3369_v61, %v6933_v52 }
 0x2a5   : > { %4661 = vmatprep.subr.mxu1 %v5212_v7  ;;  %v7018_v36 = vsel %vm3502_vm9, %v3395_v45, -10000.0  ;;  %v3388_v49 = vmul.f32 -0.022746628, %v2939_v28  ;;  %v3454_v31 = vadd.f32 %v3453_v12, %v3452_v22  ;;  %v5114_v50 = vpop.eup %5113  ;;  %vm3503_vm13 = vcmp.eq.s32.totalorder %v7005_v27, 1 }
 0x2a6   : > { %v7022_v10 = vadd.f32 %v3381_v54, %v6939_v25  ;;  %v3374_v53 = vadd.f32 %v3368_v4, %v6942_v16  ;;  %v3419_v43 = vmul.f32 %v6921_v20, %v3407_v18  ;;  %v3400_v40 = vmul.f32 -0.037808433, %v3137_v21  ;;  %v5116_v34 = vpop.eup %5115 }
 0x2a7   : > { %v7027_v52 = vadd.f32 %v3380_v37, %v6945_v14  ;;  %v3394_v56 = vadd.f32 %v3388_v49, %v6963_v2  ;;  %v2945_v62 = vmul.f32 0.6931472, %v5114_v50  ;;  %v3455_v24 = vrot.slane %v3454_v31, 2  ;;  %v5118_v19 = vpop.eup %5117 }
 0x2a8   : > { %v3520_v5 = vsel %vm3424_vm8, %v7018_v36, -inf  ;;  %v3426_v25 = vsel %vm3424_vm8, %v3419_v43, 0.0  ;;  %v3406_v15 = vadd.f32 %v3400_v40, %v3382_v44  ;;  %v3143_v16 = vmul.f32 0.6931472, %v5116_v34  ;;  %v5120_v57 = vpop.eup %5119 }
 0x2a9   : > { %vm3506_vm14 = vcmp.eq.s32.totalorder %v3500_v26, 1  ;;  %v7035_v20 = vsel %vm3501_vm10, %v3394_v56, -10000.0  ;;  %v3391_v14 = vmul.f32 -0.022746628, %v2945_v62  ;;  %v2943_v11 = vmul.f32 0.6931472, %v5118_v19  ;;  %v5122_v29 = vpop.eup %5121 }
 0x2aa   : > { %v3456_v2 = vadd.f32 %v3455_v24, %v3454_v31  ;;  %v3519_v17 = vsel %vm3424_vm8, %v7035_v20, -inf  ;;  %v3418_v35 = vmul.f32 %v6930_v59, %v3406_v15  ;;  %v3403_v55 = vmul.f32 -0.037808433, %v3143_v16  ;;  %v5124_v39 = vpop.eup %5123 }
 0x2ab   : > { %v3141_v23 = vmul.f32 0.6931472, %v5120_v57  ;;  %vm3505_vm15 = vcmp.eq.s32.totalorder %v3497_v41, 1  ;;  %v3521_v38 = vmax.f32 %v3519_v17, %v3520_v5  ;;  %v3397_v48 = vadd.f32 %v3391_v14, %v3373_v46 }
 0x2ac   : > { %v3390_v44 = vmul.f32 -0.022746628, %v2943_v11  ;;  %v2949_v32 = vmul.f32 0.6931472, %v5122_v29  ;;  %v5126_v33 = vpop.eup %5125  ;;  %v3425_v47 = vsel %vm3424_vm8, %v3418_v35, 0.0  ;;  %v3409_v63 = vadd.f32 %v3403_v55, %v3385_v8 }
 0x2ad   : > { %v3402_v61 = vmul.f32 -0.037808433, %v3141_v23  ;;  %v2947_v45 = vmul.f32 0.6931472, %v5124_v39  ;;  %v3522_v22 = vrot.slane %v3521_v38, 4  ;;  %v3427_v30 = vadd.f32 %v3426_v25, %v3425_v47 }
 0x2ae   : > { %v7043_v54 = vsel %vm3504_vm12, %v3397_v48, -10000.0  ;;  %v3396_v59 = vadd.f32 %v3390_v44, %v3372_v51  ;;  %v3421_v46 = vmul.f32 %v6953_v42, %v3409_v63  ;;  %v3393_v1 = vmul.f32 -0.022746628, %v2949_v32 }
 0x2af   : > { %v3655_v4 = vsel %vm3424_vm8, %v7043_v54, -inf  ;;  %v3408_v58 = vadd.f32 %v3402_v61, %v3384_v9  ;;  %v5128_v37 = vpop.eup %5127  ;;  %v3523_v28 = vmax.f32 %v3521_v38, %v3522_v22  ;;  %v3392_v12 = vmul.f32 -0.022746628, %v2947_v45 }
 0x2b0   : > { %v3509_v8 = vsel %vm3503_vm13, %v3396_v59, -10000.0  ;;  %v3147_v18 = vmul.f32 0.6931472, %v5126_v33  ;;  %v3430_v21 = vsel %vm3424_vm8, %v3421_v46, 0.0  ;;  %v3399_v49 = vadd.f32 %v3393_v1, %v3375_v3 }
 0x2b1   : > { %v3654_v60 = vsel %vm3424_vm8, %v3509_v8, -inf  ;;  %v3420_v51 = vmul.f32 %v6956_v6, %v3408_v58  ;;  %v3524_v31 = vrot.slane %v3523_v28, 2  ;;  %v3398_v43 = vadd.f32 %v3392_v12, %v3374_v53 }
 0x2b2   : > { %v3656_v50 = vmax.f32 %v3654_v60, %v3655_v4  ;;  %v3405_v42 = vmul.f32 -0.037808433, %v3147_v18  ;;  %v3512_v40 = vsel %vm3506_vm14, %v3399_v49, -10000.0  ;;  %v3145_v34 = vmul.f32 0.6931472, %v5128_v37 }
 0x2b3   : > { %v3428_v9 = vsel %vm3424_vm8, %v3420_v51, 0.0  ;;  %v3457_v27 = vrot.slane %v3456_v2, 1  ;;  %v3525_v56 = vmax.f32 %v3523_v28, %v3524_v31  ;;  %v3789_v19 = vsel %vm3424_vm8, %v3512_v40, -inf }
 0x2b4   : > { %v3657_v62 = vrot.slane %v3656_v50, 4  ;;  %v3429_v24 = vadd.f32 %v3428_v9, %v3427_v30  ;;  %v3511_v5 = vsel %vm3505_vm15, %v3398_v43, -10000.0  ;;  %v3411_v6 = vadd.f32 %v3405_v42, %v7022_v10 }
 0x2b5   : > { %v3404_v3 = vmul.f32 -0.037808433, %v3145_v34  ;;  %v3458_v25 = vadd.f32 %v3457_v27, %v3456_v2  ;;  %v3526_v15 = vrot.slane %v3525_v56, 1  ;;  %v3788_v57 = vsel %vm3424_vm8, %v3511_v5, -inf }
 0x2b6   : > { %v3658_v53 = vmax.f32 %v3656_v50, %v3657_v62  ;;  %v3431_v16 = vadd.f32 %v3430_v21, %v3429_v24  ;;  %v3790_v26 = vmax.f32 %v3788_v57, %v3789_v19  ;;  %v3423_v55 = vmul.f32 %v6976_v13, %v3411_v6 }
 0x2b7   : > { %v3410_v14 = vadd.f32 %v3404_v3, %v7027_v52  ;;  %v3459_v11 = vadd.f32 1e-10, %v3458_v25  ;;  %v3527_v29 = vmax.f32 %v3525_v56, %v3526_v15 }
 0x2b8   : > { %v3659_v17 = vrot.slane %v3658_v53, 2  ;;  %v3791_v35 = vrot.slane %v3790_v26, 4  ;;  %v3434_v47 = vsel %vm3424_vm8, %v3423_v55, 0.0 }
 0x2b9   : > { %v3422_v41 = vmul.f32 %v6979_v0, %v3410_v14  ;;  %v3528_v10 = vsub.f32 %v7035_v20, %v3527_v29  ;;  %v3529_v2 = vsub.f32 %v7018_v36, %v3527_v29  ;;  %5129 = vrcp.f32 %v3459_v11 }
 0x2ba   : > { %v3660_v23 = vmax.f32 %v3658_v53, %v3659_v17  ;;  %v3792_v39 = vmax.f32 %v3790_v26, %v3791_v35 }
 0x2bb   : > { %v3432_v38 = vsel %vm3424_vm8, %v3422_v41, 0.0  ;;  %v3530_v48 = vmul.f32 1.442695, %v3528_v10  ;;  %v3532_v44 = vmul.f32 1.442695, %v3529_v2 }
 0x2bc   : > { %v3661_v52 = vrot.slane %v3660_v23, 1  ;;  %v3433_v32 = vadd.f32 %v3432_v38, %v3431_v16  ;;  %v3793_v33 = vrot.slane %v3792_v39, 2 }
 0x2bd   : > { %5131 = vpow2.f32 %v3530_v48 }
 0x2be   : > { %v3662_v13 = vmax.f32 %v3660_v23, %v3661_v52  ;;  %v3435_v63 = vadd.f32 %v3434_v47, %v3433_v32  ;;  %5133 = vpow2.f32 %v3532_v44  ;;  %v3794_v0 = vmax.f32 %v3792_v39, %v3793_v33 }
 0x2c0   : > { %v3663_v20 = vsub.f32 %v3509_v8, %v3662_v13  ;;  %v3664_v36 = vsub.f32 %v7043_v54, %v3662_v13  ;;  %v3436_v61 = vrot.slane %v3435_v63, 4  ;;  %v3795_v45 = vrot.slane %v3794_v0, 1 }
 0x2c2   : > { %v3665_v22 = vmul.f32 1.442695, %v3663_v20  ;;  %v3667_v30 = vmul.f32 1.442695, %v3664_v36  ;;  %v3437_v59 = vadd.f32 %v3436_v61, %v3435_v63  ;;  %v3796_v4 = vmax.f32 %v3794_v0, %v3795_v45  ;;  %v3516_v63 = vld [vmem:[%s6985_s26 + $0x18] sm:$0xff]  ;;  %v3515_v20 = vld [vmem:[%s6985_s26 + $0x10] sm:$0xff] }
 0x2c3   : > { %v3518_v36 = vld [vmem:[%s6985_s26 + $0x28] sm:$0xff]  ;;  %v3517_v45 = vld [vmem:[%s6985_s26 + $0x20] sm:$0xff]  ;;  %s5153_s26 = sshll.u32 %s5214_s24, 4  ;;  %s5154_s26 = int_to_ptr.vmem [resolvable:$false] %s5153_s26 }
 0x2c4   : > { %5135 = vpow2.f32 %v3665_v22  ;;  %v3438_v46 = vrot.slane %v3437_v59, 2  ;;  %v3797_v58 = vsub.f32 %v3511_v5, %v3796_v4  ;;  %v3798_v1 = vsub.f32 %v3512_v40, %v3796_v4  ;;  %s5155_s0 = scalar_lea.vmem %s5154_s26, 32  ;;  %p5156_p0 = scmp.lt.s32.totalorder %s3944_s23, %s5154_s26 }
 0x2c5   : > { %5137 = vpow2.f32 %v3667_v30  ;;  %p5157_p1 = scmp.lt.s32.totalorder %s5155_s0, %s5149_s22 }
 0x2c6   : > { %v3439_v37 = vadd.f32 %v3438_v46, %v3437_v59  ;;  %v3799_v28 = vmul.f32 1.442695, %v3797_v58  ;;  %v3801_v12 = vmul.f32 1.442695, %v3798_v1  ;;  %v5130_v18 = vpop.eup %5129 }
 0x2c7   : > { %p5158_p2 = por %p5157_p1, %p5156_p0 }
 0x2c8   : > { %v3440_v8 = vrot.slane %v3439_v37, 1  ;;  %5139 = vpow2.f32 %v3799_v28 }
 0x2c9   : > { %5141 = vpow2.f32 %v3801_v12  ;;  %p5159_p3 = pnand %p5158_p2, %p5152_p13 }
 0x2ca   : > { %v3441_v54 = vadd.f32 %v3440_v8, %v3439_v37  ;;  %v5132_v21 = vpop.eup %5131 }
 0x2cb   : > { %v5134_v60 = vpop.eup %5133  ;;  %v3534_v51 = vsel %vm3424_vm8, %v5132_v21, 0.0 }
 0x2cc   : > { %v3461_v49 = vmul.f32 %v5130_v18, %v3441_v54  ;;  %v3535_v31 = vsel %vm3424_vm8, %v5134_v60, 0.0 }
 0x2cd   : > { %v3536_v50 = vadd.f32 %v3535_v31, %v3534_v51 }
 0x2ce   : > { %v3462_v43 = vadd.f32 -0.020789549, %v3461_v49 }
 0x2cf   : > { %v3537_v42 = vrot.slane %v3536_v50, 4 }
 0x2d0   : > { %3464 = vst.msk [vmem:[%s7072_s27] sm:$0x1] %vm3463_vm0, %v3462_v43 }
 0x2d1   : > { %v5136_v9 = vpop.eup %5135  ;;  %v3538_v27 = vadd.f32 %v3537_v42, %v3536_v50 }
 0x2d2   : > { %v5138_v40 = vpop.eup %5137  ;;  %v3669_v34 = vsel %vm3424_vm8, %v5136_v9, 0.0 }
 0x2d3   : > { %v3670_v56 = vsel %vm3424_vm8, %v5138_v40, 0.0  ;;  %v3539_v24 = vrot.slane %v3538_v27, 2 }
 0x2d4   : > { %v3671_v62 = vadd.f32 %v3670_v56, %v3669_v34 }
 0x2d5   : > { %v5140_v19 = vpop.eup %5139  ;;  %v3540_v5 = vadd.f32 %v3539_v24, %v3538_v27 }
 0x2d6   : > { %v3672_v6 = vrot.slane %v3671_v62, 4  ;;  %v5142_v3 = vpop.eup %5141  ;;  %v3803_v25 = vsel %vm3424_vm8, %v5140_v19, 0.0 }
 0x2d7   : > { %v3804_v15 = vsel %vm3424_vm8, %v5142_v3, 0.0  ;;  %v3541_v53 = vrot.slane %v3540_v5, 1 }
 0x2d8   : > { %v3673_v16 = vadd.f32 %v3672_v6, %v3671_v62  ;;  %v3805_v57 = vadd.f32 %v3804_v15, %v3803_v25 }
 0x2d9   : > { %v3542_v26 = vadd.f32 %v3541_v53, %v3540_v5 }
 0x2da   : > { %v3674_v14 = vrot.slane %v3673_v16, 2  ;;  %v3806_v11 = vrot.slane %v3805_v57, 4 }
 0x2db   : > { %5143 = vrcp.f32 %v3542_v26 }
 0x2dc   : > { %v3675_v29 = vadd.f32 %v3674_v14, %v3673_v16  ;;  %v3807_v17 = vadd.f32 %v3806_v11, %v3805_v57 }
 0x2de   : > { %v3676_v35 = vrot.slane %v3675_v29, 1  ;;  %v3808_v55 = vrot.slane %v3807_v17, 2 }
 0x2e0   : > { %v3677_v41 = vadd.f32 %v3676_v35, %v3675_v29  ;;  %v3809_v10 = vadd.f32 %v3808_v55, %v3807_v17 }
 0x2e2   : > { %5145 = vrcp.f32 %v3677_v41  ;;  %v3810_v2 = vrot.slane %v3809_v10, 1 }
 0x2e4   : > { %v3811_v23 = vadd.f32 %v3810_v2, %v3809_v10 }
 0x2e6   : > { %5147 = vrcp.f32 %v3811_v23 }
 0x2e8   : > { %v5144_v39 = vpop.eup %5143 }
 0x2e9   : > { %v3544_v38 = vmul.f32 %v5144_v39, %v5132_v21  ;;  %v3545_v48 = vmul.f32 %v5144_v39, %v5134_v60 }
 0x2eb   : > { %3546 = vxpose.xlu0.b32.start [1/2] (short) (narrow) %v3544_v38, 8 }
 0x2ef   : > { %v5146_v44 = vpop.eup %5145  ;;  %3547 = vxpose.xlu0.b32.end [2/2] (short) (narrow) %v3545_v48, 8 }
 0x2f0   : > { %v3679_v52 = vmul.f32 %v5146_v44, %v5136_v9  ;;  %v3680_v32 = vmul.f32 %v5146_v44, %v5138_v40 }
 0x2f2   : > { %3681 = vxpose.xlu1.b32.start [1/2] (short) (narrow) %v3679_v52, 8 }
 0x2f3   : > { %v5148_v33 = vpop.eup %5147 }
 0x2f4   : > { %v3813_v47 = vmul.f32 %v5148_v33, %v5140_v19  ;;  %v3814_v13 = vmul.f32 %v5148_v33, %v5142_v3 }
 0x2f6   : > { %3682 = vxpose.xlu1.b32.end [2/2] (short) (narrow) %v3680_v32, 8  ;;  %3815 = vxpose.xlu0.b32.start [1/2] (short) (narrow) %v3813_v47, 8 }
 0x2fa   : > { %3816 = vxpose.xlu0.b32.end [2/2] (short) (narrow) %v3814_v13, 8 }
 0x367   : > { %v3562_v0 = vpop.trf.xlu0 }
 0x368   : > { %4659 = vmatmul.mubr.msk.f32.vlgmr.msra.gmra.mxu1 %vm3578_vm1, %v3562_v0 }
 0x369   : > { %4662 = vmatpush3.msra.mxu1 %v3516_v63  ;;  %4665 = vmatprep.mubr.msk.f32.mxu1 %vm5213_vm11, %v5212_v7 }
 0x36a   : > { %4663 = vmatprep.subr.mxu1 %v5212_v7 }
 0x36b   : > { %4664 = vmatpush3.msra.mxu1 %v3515_v20 }
 0x36c   : > { %4668 = vmatprep.subr.mxu1 %v5212_v7 }
 0x36e   : > { %v3697_v61 = vpop.trf.xlu1 }
 0x36f   : > { %4666 = vmatmul.mubr.msk.f32.vlgmr.msra.gmra.mxu1 %vm3578_vm1, %v3697_v61 }
 0x370   : > { %4669 = vmatpush3.msra.mxu1 %v3518_v36  ;;  %4672 = vmatprep.mubr.msk.f32.mxu1 %vm5213_vm11, %v5212_v7 }
 0x371   : > { %4670 = vmatprep.subr.mxu1 %v5212_v7 }
 0x372   : > { %4671 = vmatpush3.msra.mxu1 %v3517_v45  ;;  %v3831_v22 = vpop.trf.xlu0 }
 0x373   : > { %4673 = vmatmul.mubr.msk.f32.vlgmr.msra.gmra.mxu1 %vm3578_vm1, %v3831_v22 }
 0x374   : > { %5162 = shalt.err (!%p5159_p3)
}
 0x375   : > { %s5163_s13 = scalar_lea.hbm %s3941_s16, 16  ;;  %s5167_s28 = scalar_lea.hbm %s7142_s9, 32 }
 0x376   : > { %p5164_p4 = scmp.ne.s32.totalorder %s3941_s16, %s5163_s13  ;;  %p5168_p9 = scmp.lt.s32.totalorder %s3941_s16, %s7142_s9 }
 0x377   : > { %p5169_p10 = scmp.lt.s32.totalorder %s5167_s28, %s5163_s13 }
 0x378   : > { %p5165_p7 = pnand %p5164_p4, %p5303_p5 }
 0x379   : > { %p5170_p11 = por %p5169_p10, %p5168_p9 }
 0x37a   : > { %p5166_p8 = pneg %p5165_p7 }
 0x37c   : > { %p5171_p12 = pnand %p5170_p11, %p5166_p8 }
 0x37e   : > { %5174 = shalt.err (!%p5171_p12)
}
 0x37f   : > { %4689 = dma.vmem_to_hbm [thread:$0]  (%p5303_p5), %s3944_s23, 16, %s3941_s16, %s3928_s21   ;;  %vm3652_vm2 = vcmask 256000  }
 0x380   : > { %s4688_s0 = smul.u32 12, %s5323_s25 }
 0x382   : > { %s442_s26 = scalar_lea.vmem %s7141_s8, %s4688_s0 }
 0x428   : > { %v3648_v7 = vpop.f32.mrf.mxu1 }
 0x429   : > { %3653 = vst.msk [vmem:[%s442_s26] sm:$0x7] %vm3652_vm2, %v3648_v7 }
 0x42a   : > { %v4660_v30 = vpop.f32.mrf.mxu1 }
 0x42f   : > { %v3782_v59 = vpop.f32.mrf.mxu1 }
 0x430   : > { %4240 = vst.msk [vmem:[%s442_s26 + $0x4] sm:$0x7] %vm3652_vm2, %v3782_v59 }
 0x431   : > { %v4667_v4 = vpop.f32.mrf.mxu1 }
 0x433   : > { %v3916_v46 = vpop.f32.mrf.mxu1 }
 0x434   : > { %4242 = vst.msk [vmem:[%s442_s26 + $0x8] sm:$0x7] %vm3652_vm2, %v3916_v46 }
 0x435   : > { %v4674_v58 = vpop.f32.mrf.mxu1 }
 0x436 PF: > { %p4695_p5 = scmp.ge.s32.totalorder %s5209_s12, 2  ;;  %s3963_s19 = sand.u32 1, %s5197_s30  }
 0x437   : > { %s3964_s25 = scalar_lea.sflag [#allocation3], %s3963_s19 }
 0x438   : > { %p4692_p13 = pnand %p4695_p5, %p5307_p6 }
 0x43a   : > { %p4693_p0 = pneg %p4692_p13 }
 0x43c   : > { %5192 = dma.done.wait (%p4693_p0), %s3964_s25, 16  }
 0x43d   : > { %5194 = vsyncadd (%p4693_p0), %s3964_s25, 4294967280  ;;  %p20_p1 = scmp.ge.s32.totalorder %s5290_s15, 4   ;;  %s7225_s30 = smov %s5201_s10 }
 0x43e   : > { %s7226_s10 = smov %s5205_s11  ;;  %s7227_s11 = smov %s5301_s18 }
 0x43f   : > { %s7228_s12 = smov %s5290_s15  ;;  %22 = sbr.rel (!%p20_p1) target bundleno = 5 (0x5), region = 116 }
 0x444   :  { %3968 = vsyncpa [#allocation3], 1 }
 0x445   :  { %3970 = vsyncpa [#allocation3 + $0x1], 1 }

</bundles_post_ra>
